<compile_context>
chip_gen: v6e
topology: v6e:2x2x1
jax: 0.10.0
libtpu: 0.0.40
codegen_flags: <defaults>
</compile_context>

<pallas_src>
import functools
import numpy as np
import jax
import jax.numpy as jnp
from jax.experimental import pallas as pl
from jax.experimental.pallas import tpu as pltpu

VMEM = pltpu.MemorySpace.VMEM
SCALER = 20.0


def _vmem_specs(n):
    return [pl.BlockSpec(memory_space=VMEM) for _ in range(n)]


def _round_up(x, m):
    return ((x + m - 1) // m) * m


def _pick_tile(L, max_tl=2048):
    return _round_up(L, 128) if L <= max_tl else max_tl


# ----------------------------- Pallas kernels -----------------------------

def _encoder_kernel(x_ref, w_ref, b_ref, o_ref):
    # x: (Cin, TL) lane tile of the flattened image batch; w: (C, Cin) bf16;
    # b: (C, 1). One MXU pass + bias + ReLU; lane-dense stores.
    y = jnp.dot(w_ref[...], x_ref[...].astype(jnp.bfloat16),
                preferred_element_type=jnp.float32) + b_ref[...]
    o_ref[...] = jnp.maximum(y, 0.0)


def _masked_avg_kernel(m_ref, f_ref, d_ref, o_ref):
    # Masked average pooling at FEATURE resolution (mask already downsampled
    # through the bilinear matrices, which is exact).  m: (1, 1, Lf);
    # f: (1, Lf, C); d: (1, 1, 1) holds 1/(mask.sum()+1e-5).
    num = jnp.dot(m_ref[0].astype(jnp.bfloat16), f_ref[0].astype(jnp.bfloat16),
                  preferred_element_type=jnp.float32)          # (1, C)
    o_ref[0] = num * d_ref[0]


def _cos_pred_kernel(p_ref, t_ref, f_ref, o_ref, *, scaler):
    # getPred: cosine(features, prototype) -> sigmoid.  Lane-dense (1, TL).
    # p: (1, C) prototype pre-normalized by max(||p||, 1e-8);
    # t: (1, TL) per-position threshold; f: (1, C, TL).
    f = f_ref[0]                                                # (C, TL)
    dot = jnp.dot(p_ref[...].astype(jnp.bfloat16), f.astype(jnp.bfloat16),
                  preferred_element_type=jnp.float32)           # (1, TL)  MXU
    ssq = jnp.sum(f * f, axis=0, keepdims=True)                 # (1, TL)
    cos = dot * jax.lax.rsqrt(jnp.maximum(ssq, 1e-16))          # EUP rsqrt
    sim = -cos * scaler
    o_ref[...] = 1.0 - jax.nn.sigmoid(0.5 * (sim - t_ref[...]))


def _fg_pool_kernel(s_ref, e_ref, iw_ref, m_ref, r_ref, f_ref, o_ref, acc_ref):
    # Foreground gather + AdaptiveAvgPool1d folded into one tiled contraction.
    # Window i of the foreground-packed sequence selects image positions j
    # with mask[j]==1 and s_i <= rank[j] < e_i (rank = row-major fg cumsum).
    # s/e/iw: (1, Np, 1); m/r: (1, 1, TL); f: (1, TL, C); out: (1, Np, C).
    l = pl.program_id(1)

    @pl.when(l == 0)
    def _():
        acc_ref[...] = jnp.zeros_like(acc_ref)

    r = r_ref[0]                                                # (1, TL)
    m = m_ref[0]                                                # (1, TL)
    s = s_ref[0]                                                # (Np, 1)
    e = e_ref[0]
    sel = jnp.where((r >= s) & (r < e), m, 0.0) * iw_ref[0]     # (Np, TL)
    acc_ref[...] += jnp.dot(sel.astype(jnp.bfloat16),
                            f_ref[0].astype(jnp.bfloat16),
                            preferred_element_type=jnp.float32)

    @pl.when(l == pl.num_programs(1) - 1)
    def _():
        o_ref[0] = acc_ref[...]


def _fam_kernel(s_ref, q_ref, gt_ref, g_ref, mid_ref,
                w1s_ref, b1s_ref, w2s_ref, b2s_ref,
                w1q_ref, b1q_ref, w2q_ref, b2q_ref,
                wf1a_ref, wf1b_ref, bf1_ref, wf2_ref, bf2_ref, o_ref):
    # Fused AttentionMacthcing for all three bands, TOKEN-MAJOR:
    # s, q: (N, 3C) (tokens on sublanes, band-channels on lanes);
    # Gt: (3C, 3) band-sum, G: (3, 3C) band-expand, mid: (1, 3) selector.
    # Output: (2N, 3C) — directly consumable by MSFM (no transposes).
    s = s_ref[...]
    q = q_ref[...]
    gt = gt_ref[...]                                            # bf16 0/1

    num = jnp.dot((s * q).astype(jnp.bfloat16), gt,
                  preferred_element_type=jnp.float32)           # (N, 3)
    ss = jnp.dot((s * s).astype(jnp.bfloat16), gt,
                 preferred_element_type=jnp.float32)
    qq = jnp.dot((q * q).astype(jnp.bfloat16), gt,
                 preferred_element_type=jnp.float32)
    # torch F.normalize clamps each norm to 1e-12 separately.
    inv = jax.lax.rsqrt(jnp.maximum(ss, 1e-24)) * jax.lax.rsqrt(jnp.maximum(qq, 1e-24))
    sim = jax.nn.sigmoid(num * inv)                             # (N, 3)
    mid = mid_ref[...]
    wband = mid * sim + (1.0 - mid) * (1.0 - sim)               # (N, 3)
    wfull = jnp.dot(wband, g_ref[...],
                    preferred_element_type=jnp.float32)         # (N, 3C)

    def mlp(x, w1T, b1, w2T, b2):
        h = jnp.maximum(jnp.dot(w1T[...], x.astype(jnp.bfloat16),
                                preferred_element_type=jnp.float32) + b1[...], 0.0)
        y = jnp.dot(w2T[...], h.astype(jnp.bfloat16),
                    preferred_element_type=jnp.float32) + b2[...]
        return jnp.maximum(y, 0.0)          # inner ReLU + outer F.relu

    ws = wfull * mlp(s, w1s_ref, b1s_ref, w2s_ref, b2s_ref)     # (N, 3C)
    wq = wfull * mlp(q, w1q_ref, b1q_ref, w2q_ref, b2q_ref)

    # fc_fusion on token-concat([ws, wq]) without an in-kernel concat:
    # Wf1^T is split into its spt/qry column halves.
    h = jnp.maximum(
        jnp.dot(wf1a_ref[...], ws.astype(jnp.bfloat16),
                preferred_element_type=jnp.float32) +
        jnp.dot(wf1b_ref[...], wq.astype(jnp.bfloat16),
                preferred_element_type=jnp.float32) + bf1_ref[...], 0.0)
    fused = jnp.dot(wf2_ref[...], h.astype(jnp.bfloat16),
                    preferred_element_type=jnp.float32) + bf2_ref[...]
    o_ref[...] = jnp.maximum(fused, 0.0)                        # (2N, 3C)


def _msfm_kernel(x_ref,
                 wq1_ref, bq1_ref, wk1_ref, bk1_ref, wv1_ref, bv1_ref,
                 wq2_ref, bq2_ref, wk2_ref, bk2_ref, wv2_ref, bv2_ref,
                 o_ref, *, inv_sqrt_c, inv_ntok, C):
    # Fused MSFM: CA1(mid, low) + CA2(mid, high) + add + ReLU + proto mean.
    # x: (T, 3C) token-major [low | mid | high] along lanes -> (1, C) proto.
    x = x_ref[...]
    lowT = x[:, 0:C]
    midT = x[:, C:2 * C]
    highT = x[:, 2 * C:3 * C]

    def attend(kvT, wq, bq, wk, bk, wv, bv):
        Q = jnp.dot(midT.astype(jnp.bfloat16), wq[...],
                    preferred_element_type=jnp.float32) + bq[...]
        K = jnp.dot(kvT.astype(jnp.bfloat16), wk[...],
                    preferred_element_type=jnp.float32) + bk[...]
        V = jnp.dot(kvT.astype(jnp.bfloat16), wv[...],
                    preferred_element_type=jnp.float32) + bv[...]
        S = jax.lax.dot_general(Q.astype(jnp.bfloat16), K.astype(jnp.bfloat16),
                                (((1,), (1,)), ((), ())),
                                preferred_element_type=jnp.float32) * inv_sqrt_c
        S = S - jnp.max(S, axis=-1, keepdims=True)
        E = jnp.exp(S)
        P = E * pl.reciprocal(jnp.sum(E, axis=-1, keepdims=True), approx=True)
        return jnp.dot(P.astype(jnp.bfloat16), V.astype(jnp.bfloat16),
                       preferred_element_type=jnp.float32)      # (T, C)

    low_new = attend(lowT, wq1_ref, bq1_ref, wk1_ref, bk1_ref, wv1_ref, bv1_ref)
    high_new = attend(highT, wq2_ref, bq2_ref, wk2_ref, bk2_ref, wv2_ref, bv2_ref)
    fused = jnp.maximum(low_new + midT + high_new, 0.0)         # (T, C)
    o_ref[...] = jnp.sum(fused, axis=0, keepdims=True) * inv_ntok


# ------------------------------ kernel wrappers -----------------------------

def encoder_forward(imgs, enc_params):
    # TODO(synk): Res50Encoder is not provided in the reference module;
    # deterministic stand-in: 2x2 avg-pool (glue) + 1x1-conv + ReLU as one
    # lane-dense MXU Pallas kernel over the whole batch; tao = per-image mean.
    B, Cin, H, W = imgs.shape
    x = imgs.reshape(B, Cin, H // 2, 2, W // 2, 2).mean(axis=(3, 5))
    fh, fw = x.shape[-2:]
    hw = fh * fw
    L = B * hw
    xf = x.transpose(1, 0, 2, 3).reshape(Cin, L).astype(jnp.float32)
    TL = _pick_tile(L)
    Lp = _round_up(L, TL)
    if Lp != L:
        xf = jnp.pad(xf, ((0, 0), (0, Lp - L)))
    wT = jnp.asarray(enc_params['w'], jnp.float32).T.astype(jnp.bfloat16)   # (C, Cin)
    b = jnp.asarray(enc_params['b'], jnp.float32).reshape(-1, 1)            # (C, 1)
    C = wT.shape[0]
    out = pl.pallas_call(
        _encoder_kernel,
        out_shape=jax.ShapeDtypeStruct((C, Lp), jnp.float32),
        grid=(Lp // TL,),
        in_specs=[pl.BlockSpec((Cin, TL), lambda i: (0, i)),
                  pl.BlockSpec((C, Cin), lambda i: (0, 0)),
                  pl.BlockSpec((C, 1), lambda i: (0, 0))],
        out_specs=pl.BlockSpec((C, TL), lambda i: (0, i)),
        compiler_params=pltpu.CompilerParams(
            dimension_semantics=("parallel",)),
    )(xf, wT, b)
    fts_flat = out[:, :L].reshape(C, B, hw).transpose(1, 0, 2)   # (B, C, hw)
    fts = fts_flat.reshape(B, C, fh, fw)
    tao = jnp.mean(fts_flat, axis=(1, 2))
    return fts, tao


def masked_avg_batched(m_down, f_ws, invd):
    # m_down: (WS, 1, Lf) downsampled masks; f_ws: (WS, Lf, C) features at
    # feature resolution; invd: (WS, 1, 1) = 1/(image-res mask sum + 1e-5).
    WS, _, Lf = m_down.shape
    C = f_ws.shape[-1]
    out = pl.pallas_call(
        _masked_avg_kernel,
        out_shape=jax.ShapeDtypeStruct((WS, 1, C), jnp.float32),
        grid=(WS,),
        in_specs=[pl.BlockSpec((1, 1, Lf), lambda b: (b, 0, 0)),
                  pl.BlockSpec((1, Lf, C), lambda b: (b, 0, 0)),
                  pl.BlockSpec((1, 1, 1), lambda b: (b, 0, 0))],
        out_specs=pl.BlockSpec((1, 1, C), lambda b: (b, 0, 0)),
        compiler_params=pltpu.CompilerParams(
            dimension_semantics=("parallel",)),
    )(m_down, f_ws, invd)
    return out[:, 0, :]                                          # (WS, C)


def get_pred_batched(fts_stack, protos, thresh_vec, scaler=SCALER):
    # fts_stack: (Wn, Nq, C, h, w); protos: (Wn, C); thresh_vec: (Nq,) or (1,)
    Wn, Nq, C, h, w = fts_stack.shape
    L = Nq * h * w
    f = fts_stack.reshape(Wn, Nq, C, h * w).transpose(0, 2, 1, 3).reshape(Wn, C, L)
    f = f.astype(jnp.float32)
    TL = _pick_tile(L)
    Lp = _round_up(L, TL)
    if Lp != L:
        f = jnp.pad(f, ((0, 0), (0, 0), (0, Lp - L)))
    # torch F.cosine_similarity clamps each norm to eps=1e-8 separately:
    # pre-normalize the prototype here; the per-position feature norm is
    # clamped in-kernel via rsqrt(max(ssq, eps^2)).
    pnorm = jnp.sqrt(jnp.sum(protos.astype(jnp.float32) ** 2, axis=1, keepdims=True))
    pn = protos.astype(jnp.float32) / jnp.maximum(pnorm, 1e-8)
    tv = jnp.asarray(thresh_vec, jnp.float32).reshape(-1)
    if tv.shape[0] == Nq:
        tmap = jnp.broadcast_to(tv[:, None], (Nq, h * w)).reshape(1, L)
    else:
        # reference threshold broadcasting is only well-defined for Nq == 1
        tmap = jnp.broadcast_to(tv[:1], (1, L))
    if Lp != L:
        tmap = jnp.pad(tmap, ((0, 0), (0, Lp - L)))
    out = pl.pallas_call(
        functools.partial(_cos_pred_kernel, scaler=scaler),
        out_shape=jax.ShapeDtypeStruct((Wn, Lp), jnp.float32),
        grid=(Wn, Lp // TL),
        in_specs=[pl.BlockSpec((1, C), lambda a, l: (a, 0)),
                  pl.BlockSpec((1, TL), lambda a, l: (0, l)),
                  pl.BlockSpec((1, C, TL), lambda a, l: (a, 0, l))],
        out_specs=pl.BlockSpec((1, TL), lambda a, l: (a, l)),
        compiler_params=pltpu.CompilerParams(
            dimension_semantics=("parallel", "parallel")),
    )(pn, tmap, f)
    return out[:, :L].reshape(Wn, Nq, h, w)


def fg_adaptive_pool_batched(f_stack, m_stack, n_pool):
    # f_stack: (B2, L, C) image-resolution features (token-major);
    # m_stack: (B2, L) rounded 0/1 masks. Returns (B2, n_pool, C), equal to
    # AdaptiveAvgPool1d(n_pool) over the row-major foreground-packed sequence
    # (torch get_fg + adapt_pooling, incl. the K==1 duplicate / K==0 pad cases).
    B2, L, C = f_stack.shape
    mi = m_stack.astype(jnp.int32)
    K = jnp.maximum(jnp.sum(mi, axis=1), 1)                      # (B2,)
    rank = (jnp.cumsum(mi, axis=1) - 1).astype(jnp.float32)      # (B2, L)
    i = jnp.arange(n_pool, dtype=jnp.int32)
    s = (i[None, :] * K[:, None]) // n_pool                      # (B2, Np)
    e = ((i[None, :] + 1) * K[:, None] + n_pool - 1) // n_pool
    iw = 1.0 / jnp.maximum(e - s, 1).astype(jnp.float32)
    s = s.astype(jnp.float32)[:, :, None]                        # (B2, Np, 1)
    e = e.astype(jnp.float32)[:, :, None]
    iw = iw[:, :, None]

    TL = _pick_tile(L)
    Lp = _round_up(L, TL)
    f = f_stack.astype(jnp.float32)
    m = m_stack.astype(jnp.float32)
    r = rank
    if Lp != L:
        f = jnp.pad(f, ((0, 0), (0, Lp - L), (0, 0)))
        m = jnp.pad(m, ((0, 0), (0, Lp - L)))
        r = jnp.pad(r, ((0, 0), (0, Lp - L)))
    m = m[:, None, :]
    r = r[:, None, :]

    return pl.pallas_call(
        _fg_pool_kernel,
        out_shape=jax.ShapeDtypeStruct((B2, n_pool, C), jnp.float32),
        grid=(B2, Lp // TL),
        in_specs=[pl.BlockSpec((1, n_pool, 1), lambda b, l: (b, 0, 0)),
                  pl.BlockSpec((1, n_pool, 1), lambda b, l: (b, 0, 0)),
                  pl.BlockSpec((1, n_pool, 1), lambda b, l: (b, 0, 0)),
                  pl.BlockSpec((1, 1, TL), lambda b, l: (b, 0, l)),
                  pl.BlockSpec((1, 1, TL), lambda b, l: (b, 0, l)),
                  pl.BlockSpec((1, TL, C), lambda b, l: (b, l, 0))],
        out_specs=pl.BlockSpec((1, n_pool, C), lambda b, l: (b, 0, 0)),
        scratch_shapes=[pltpu.VMEM((n_pool, C), jnp.float32)],
        compiler_params=pltpu.CompilerParams(
            dimension_semantics=("parallel", "arbitrary")),
    )(s, e, iw, m, r, f)


def fam_fused(spt_t, qry_t, p):
    # spt_t, qry_t: (N, 3C) token-major band stacks -> fused (2N, 3C)
    N, threeC = spt_t.shape
    C = threeC // 3
    twoN = 2 * N
    f32 = jnp.float32
    bf = lambda a: jnp.asarray(a, jnp.bfloat16)

    def pad_rows(a, r):
        return jnp.pad(a, ((0, r - a.shape[0]), (0, 0)))

    def pad_cols(a, c):
        return jnp.pad(a, ((0, 0), (0, c - a.shape[1])))

    # Zero-pad hidden widths to sublane multiples (exact through ReLU).
    h = p['spt_w1'].shape[1]
    h8 = _round_up(max(h, 8), 8)
    hf = p['fus_w1'].shape[1]
    hf8 = _round_up(max(hf, 8), 8)

    def mlp_prep(w1, b1, w2, b2):
        w1T = pad_rows(jnp.asarray(w1, f32).T, h8)                  # (h8, N)
        b1c = pad_rows(jnp.asarray(b1, f32).reshape(-1, 1), h8)     # (h8, 1)
        w2T = pad_cols(jnp.asarray(w2, f32).T, h8)                  # (N, h8)
        b2c = jnp.asarray(b2, f32).reshape(-1, 1)                   # (N, 1)
        return bf(w1T), b1c, bf(w2T), b2c

    w1s, b1s, w2s, b2s = mlp_prep(p['spt_w1'], p['spt_b1'], p['spt_w2'], p['spt_b2'])
    w1q, b1q, w2q, b2q = mlp_prep(p['qry_w1'], p['qry_b1'], p['qry_w2'], p['qry_b2'])

    wf1T = pad_rows(jnp.asarray(p['fus_w1'], f32).T, hf8)           # (hf8, 2N)
    bf1c = pad_rows(jnp.asarray(p['fus_b1'], f32).reshape(-1, 1), hf8)
    wf2T = pad_cols(jnp.asarray(p['fus_w2'], f32).T, hf8)           # (2N, hf8)
    bf2c = jnp.asarray(p['fus_b2'], f32).reshape(-1, 1)             # (2N, 1)

    Gt = jnp.asarray(np.kron(np.eye(3, dtype=np.float32),
                             np.ones((C, 1), np.float32)))          # (3C, 3)
    G3 = jnp.asarray(Gt.T, f32)                                     # (3, 3C)
    mid_sel = jnp.asarray(np.array([[0.0, 1.0, 0.0]], np.float32))

    return pl.pallas_call(
        _fam_kernel,
        out_shape=jax.ShapeDtypeStruct((twoN, threeC), jnp.float32),
        in_specs=_vmem_specs(18),
        out_specs=pl.BlockSpec(memory_space=VMEM),
    )(spt_t.astype(f32), qry_t.astype(f32), bf(Gt), G3, mid_sel,
      w1s, b1s, w2s, b2s, w1q, b1q, w2q, b2q,
      bf(wf1T[:, :N]), bf(wf1T[:, N:]), bf1c, bf(wf2T), bf2c)


def msfm_proto(fused_t, p, C, n_tok):
    # fused_t: (n_tok, 3C) token-major -> prototype (1, C) (MSFM + get_proto_new)
    bf = lambda a: jnp.asarray(a, jnp.bfloat16)
    row = lambda a: jnp.asarray(a, jnp.float32).reshape(1, -1)
    ca1, ca2 = p['ca1'], p['ca2']
    return pl.pallas_call(
        functools.partial(_msfm_kernel, inv_sqrt_c=1.0 / float(np.sqrt(C)),
                          inv_ntok=1.0 / (n_tok + 1e-5), C=C),
        out_shape=jax.ShapeDtypeStruct((1, C), jnp.float32),
        in_specs=_vmem_specs(13),
        out_specs=pl.BlockSpec(memory_space=VMEM),
    )(fused_t.astype(jnp.float32),
      bf(ca1['wq']), row(ca1['bq']), bf(ca1['wk']), row(ca1['bk']),
      bf(ca1['wv']), row(ca1['bv']),
      bf(ca2['wq']), row(ca2['bq']), bf(ca2['wk']), row(ca2['bk']),
      bf(ca2['wv']), row(ca2['bv']))


# ------------------------------ JAX glue ----------------------------------

def _bilinear_matrix(in_size, out_size, align_corners):
    H, OH = in_size, out_size
    if align_corners:
        if OH == 1:
            src = jnp.zeros((1,), jnp.float32)
        else:
            src = jnp.arange(OH, dtype=jnp.float32) * (H - 1) / (OH - 1)
    else:
        src = jnp.clip((jnp.arange(OH, dtype=jnp.float32) + 0.5) * H / OH - 0.5,
                       0.0, float(H - 1))
    i0 = jnp.floor(src).astype(jnp.int32)
    i1 = jnp.minimum(i0 + 1, H - 1)
    w1 = src - i0.astype(jnp.float32)
    w0 = 1.0 - w1
    return (jax.nn.one_hot(i0, H) * w0[:, None]
            + jax.nn.one_hot(i1, H) * w1[:, None])


def bilinear_resize(x, out_hw, align_corners):
    # x: (B, C, H, W) -> (B, C, OH, OW)  (matches F.interpolate bilinear)
    B, C, H, W = x.shape
    Ry = _bilinear_matrix(H, out_hw[0], align_corners)
    Cx = _bilinear_matrix(W, out_hw[1], align_corners)
    return jnp.einsum('oh,bchw,pw->bcop', Ry, x.astype(jnp.float32), Cx)


def filter_frequency_bands_tok(x_tok, cutoff=0.3):
    # TODO(synk): FFT has no Pallas TPU primitive; jnp.fft used in plain JAX.
    # x_tok: (N, C) token-major -> (N, 3C) with [low | mid | high] along lanes.
    N, C = x_tok.shape
    side = int(np.ceil(np.sqrt(N)))
    padded = side * side
    sq = jnp.zeros((padded, C), jnp.float32).at[:N].set(x_tok.astype(jnp.float32))
    sq = sq.reshape(side, side, C)
    max_radius = np.sqrt((side // 2) ** 2 + (side // 2) ** 2)
    low_cut = max_radius * cutoff
    high_cut = max_radius * (1 - cutoff)
    fft = jnp.fft.fftshift(jnp.fft.fft2(sq, axes=(0, 1)), axes=(0, 1))
    yy, xx = np.meshgrid(np.arange(side), np.arange(side), indexing='ij')
    dist = np.sqrt((yy - side // 2) ** 2 + (xx - side // 2) ** 2)
    low_m = (dist <= low_cut).astype(np.float32)
    high_m = (dist >= high_cut).astype(np.float32)
    mid_m = ((dist > low_cut) & (dist < high_cut)).astype(np.float32)

    def band(mask):
        filt = fft * jnp.asarray(mask)[:, :, None]
        out = jnp.fft.ifft2(jnp.fft.ifftshift(filt, axes=(0, 1)),
                            axes=(0, 1)).real
        return out.reshape(padded, C)[:N].astype(jnp.float32)

    return jnp.concatenate([band(low_m), band(mid_m), band(high_m)], axis=1)


# --------------------------- FewShotSeg forward ----------------------------

@functools.partial(jax.jit, static_argnames=(
    "n_ways", "n_shots", "supp_bs", "qry_bs", "n_queries",
    "img_hw", "n_pool", "train"))
def _forward_core(imgs_concat, supp_mask_t, params, *, n_ways, n_shots,
                  supp_bs, qry_bs, n_queries, img_hw, n_pool, train):
    img_fts, tao = encoder_forward(imgs_concat, params['encoder'])
    C = img_fts.shape[1]
    fh, fw = img_fts.shape[-2:]
    H, W = img_hw
    n_supp = n_ways * n_shots * supp_bs
    supp_fts = img_fts[:n_supp].reshape(supp_bs, n_ways, n_shots, C, fh, fw)
    qry_fts = img_fts[n_supp:].reshape(qry_bs, n_queries, C, fh, fw)
    t = tao[n_supp:]
    Nq = n_queries
    tvec = t if t.shape[0] == Nq else t[:1]

    # Bilinear matrices feature-res <-> image-res (align_corners=False).
    RyF = _bilinear_matrix(fh, H, False)     # (H, fh)
    CxF = _bilinear_matrix(fw, W, False)     # (W, fw)

    outputs_qry = []
    # TODO(synk): NLLLoss training branch omitted (train=False path).
    coarse_loss = jnp.zeros((1,), jnp.float32)

    WS = n_ways * n_shots
    Lf = fh * fw
    L_img = H * W

    for epi in range(supp_bs):
        # Masked average pooling at FEATURE resolution (mask downsampled),
        # batched over way*shot in a single pallas_call.
        masks_ws = supp_mask_t[epi].reshape(WS, H, W)
        m_down = jnp.einsum('hf,bhw,wg->bfg', RyF, masks_ws, CxF).reshape(WS, 1, Lf)
        den = jnp.sum(masks_ws, axis=(1, 2)).reshape(WS, 1, 1)
        invd = 1.0 / (den + 1e-5)
        f_ws = supp_fts[epi].reshape(WS, C, Lf).transpose(0, 2, 1)   # (WS, Lf, C)
        spt_feats = masked_avg_batched(m_down, f_ws, invd)           # (WS, C)
        protos = spt_feats.reshape(n_ways, n_shots, C).mean(axis=1)  # (n_ways, C)

        def fg_branch(_):
            # Coarse prediction (reference uses qry_fts[way] in this branch).
            qstack = jnp.stack([qry_fts[way] for way in range(n_ways)], axis=0)
            qry_pred = get_pred_batched(qstack, protos, tvec)        # (Wn, Nq, fh, fw)
            qry_pred = qry_pred.transpose(1, 0, 2, 3)                # (Nq, Wn, fh, fw)
            qry_pred_coarse = bilinear_resize(qry_pred, (H, W), align_corners=True)

            # get_fg + AdaptiveAvgPool1d, both spt and qry in ONE call.
            # Reference FAM only consumes spt_fg_fts[0][0] / qry_fg_fts[0];
            # supp_fts[way][shot] indexing in the reference is well-defined
            # only for the 1-way / 1-shot configuration -> use [0, 0, 0].
            spt_img = bilinear_resize(supp_fts[0:1, 0, 0], (H, W), False)[0]
            qry_img = bilinear_resize(qry_fts[0][0:1], (H, W), False)[0]
            f_stack = jnp.stack([spt_img.reshape(C, L_img).T,
                                 qry_img.reshape(C, L_img).T], axis=0)
            m_stack = jnp.stack([jnp.round(supp_mask_t[0, 0, 0]).reshape(L_img),
                                 jnp.round(qry_pred_coarse[epi, 0]).reshape(L_img)],
                                axis=0)
            pooled = fg_adaptive_pool_batched(f_stack, m_stack, n_pool)  # (2, Np, C)

            spt_bands = filter_frequency_bands_tok(pooled[0], cutoff=0.3)  # (Np, 3C)
            qry_bands = filter_frequency_bands_tok(pooled[1], cutoff=0.3)
            fused_t = fam_fused(spt_bands, qry_bands,
                                params['fam']['attention_matching'])      # (2Np, 3C)
            fg_proto = msfm_proto(fused_t, params['msfm'], C, 2 * n_pool)  # (1, C)
            protos_final = jnp.broadcast_to(fg_proto, (n_ways, C))

            pred = get_pred_batched(qstack, protos_final, tvec).transpose(1, 0, 2, 3)
            pred_up = bilinear_resize(pred, (H, W), align_corners=True)
            return jnp.concatenate([1.0 - pred_up, pred_up], axis=1)

        def bg_branch(_):
            qstack = jnp.stack([qry_fts[epi] for _ in range(n_ways)], axis=0)
            qp = get_pred_batched(qstack, protos, tvec).transpose(1, 0, 2, 3)
            qp_up = bilinear_resize(qp, (H, W), align_corners=True)
            return jnp.concatenate([1.0 - qp_up, qp_up], axis=1)

        # Episode-0 foreground check stays on-device (no host sync).
        has_fg = jnp.max(supp_mask_t[0, 0, 0]) > 0.0
        outputs_qry.append(jax.lax.cond(has_fg, fg_branch, bg_branch, 0))

    output_qry = jnp.stack(outputs_qry, axis=1)
    output_qry = output_qry.reshape(-1, *output_qry.shape[2:])
    return output_qry, coarse_loss


def few_shot_seg_forward(supp_imgs, supp_mask, qry_imgs, qry_mask, params,
                         train=False):
    n_ways = len(supp_imgs)
    n_shots = len(supp_imgs[0])
    n_queries = len(qry_imgs)
    assert n_ways == 1 and n_queries == 1
    qry_bs = qry_imgs[0].shape[0]
    supp_bs = supp_imgs[0][0].shape[0]
    img_size = tuple(int(v) for v in supp_imgs[0][0].shape[-2:])
    n_pool = int(params['N'])

    supp_mask_t = jnp.stack([jnp.stack(way, axis=0) for way in supp_mask], axis=0)
    supp_mask_t = supp_mask_t.reshape(supp_bs, n_ways, n_shots,
                                      *img_size).astype(jnp.float32)
    imgs_concat = jnp.concatenate(
        [jnp.concatenate(way, axis=0) for way in supp_imgs]
        + [jnp.concatenate(qry_imgs, axis=0)], axis=0).astype(jnp.float32)

    jit_params = {k: v for k, v in params.items() if k != 'N'}
    return _forward_core(imgs_concat, supp_mask_t, jit_params,
                         n_ways=n_ways, n_shots=n_shots, supp_bs=supp_bs,
                         qry_bs=qry_bs, n_queries=n_queries, img_hw=img_size,
                         n_pool=n_pool, train=train)


# ------------------------------- params ------------------------------------

def init_params(key, C=32, N=64):
    ks = jax.random.split(key, 32)

    def w(k, shape, scale=0.1):
        return jax.random.normal(k, shape, jnp.float32) * scale

    return {
        'N': N,
        'encoder': {'w': w(ks[0], (3, C)), 'b': w(ks[1], (C,))},
        'fam': {'attention_matching': {
            'spt_w1': w(ks[2], (N, N // 10)), 'spt_b1': w(ks[3], (N // 10,)),
            'spt_w2': w(ks[4], (N // 10, N)), 'spt_b2': w(ks[5], (N,)),
            'qry_w1': w(ks[6], (N, N // 10)), 'qry_b1': w(ks[7], (N // 10,)),
            'qry_w2': w(ks[8], (N // 10, N)), 'qry_b2': w(ks[9], (N,)),
            'fus_w1': w(ks[10], (2 * N, N // 5)), 'fus_b1': w(ks[11], (N // 5,)),
            'fus_w2': w(ks[12], (N // 5, 2 * N)), 'fus_b2': w(ks[13], (2 * N,)),
        }},
        'msfm': {
            'ca1': {'wq': w(ks[14], (C, C)), 'bq': w(ks[15], (C,)),
                    'wk': w(ks[16], (C, C)), 'bk': w(ks[17], (C,)),
                    'wv': w(ks[18], (C, C)), 'bv': w(ks[19], (C,))},
            'ca2': {'wq': w(ks[20], (C, C)), 'bq': w(ks[21], (C,)),
                    'wk': w(ks[22], (C, C)), 'bk': w(ks[23], (C,)),
                    'wv': w(ks[24], (C, C)), 'bv': w(ks[25], (C,))},
        },
    }


if __name__ == "__main__":
    key = jax.random.PRNGKey(0)
    k1, k2, k3, kp = jax.random.split(key, 4)
    H = W = 16
    supp_img = jax.random.normal(k1, (1, 3, H, W), jnp.float32)
    qry_img = jax.random.normal(k2, (1, 3, H, W), jnp.float32)
    supp_msk = (jax.random.uniform(k3, (1, H, W)) > 0.6).astype(jnp.float32)
    qry_msk = jnp.zeros((1, H, W), jnp.int32)   # unused when train=False

    params = init_params(kp, C=32, N=64)

    supp_imgs = [[supp_img]]        # way x shot x [B,3,H,W]
    supp_mask = [[supp_msk]]        # way x shot x [B,H,W]
    qry_imgs = [qry_img]            # N x [B,3,H,W]

    out, loss = few_shot_seg_forward(supp_imgs, supp_mask, qry_imgs, qry_msk,
                                     params, train=False)
    jax.block_until_ready(out)
    jax.block_until_ready(loss)
    assert out.shape == (1, 2, H, W), out.shape
    assert bool(jnp.all(jnp.isfinite(out)))
    print("KERNEL_OK")
</pallas_src>

<mosaic_0001>
module attributes {stable_mosaic.version = 11 : i64} {
  func.func @_encoder_kernel(%arg0: i32, %arg1: memref<3x128xf32, #tpu.memory_space<vmem>>, %arg2: memref<32x3xbf16, #tpu.memory_space<vmem>>, %arg3: memref<32x1xf32, #tpu.memory_space<vmem>>, %arg4: memref<32x128xf32, #tpu.memory_space<vmem>>) attributes {dimension_semantics = [#tpu.dimension_semantics<parallel>], iteration_bounds = array<i64: 1>, scalar_prefetch = 0 : i64, scratch_operands = 0 : i64, tpu.core_type = #tpu.core_type<tc>, window_params = [{transform_indices = @transform_0, window_bounds = array<i64: 3, 128>}, {pipeline_mode = #tpu.pipeline_mode<synchronous>, transform_indices = @transform_1, window_bounds = array<i64: 32, 3>}, {pipeline_mode = #tpu.pipeline_mode<synchronous>, transform_indices = @transform_2, window_bounds = array<i64: 32, 1>}, {transform_indices = @transform_3, window_bounds = array<i64: 32, 128>}]} {
    %c0 = arith.constant 0 : index
    %c0_0 = arith.constant 0 : index
    %0 = vector.load %arg2[%c0, %c0_0] : memref<32x3xbf16, #tpu.memory_space<vmem>>, vector<32x3xbf16>
    %c0_1 = arith.constant 0 : index
    %c0_2 = arith.constant 0 : index
    %1 = vector.load %arg1[%c0_1, %c0_2] : memref<3x128xf32, #tpu.memory_space<vmem>>, vector<3x128xf32>
    %2 = arith.truncf %1 : vector<3x128xf32> to vector<3x128xbf16>
    %cst = arith.constant dense<0.000000e+00> : vector<32x128xf32>
    %3 = tpu.matmul %0, %2, %cst {dimension_numbers = #tpu.dot_dimension_numbers<[1], [0], [0], [1], [0, 0, 1, 1], [], []>} : vector<32x3xbf16>, vector<3x128xbf16>, vector<32x128xf32> -> vector<32x128xf32>
    %c0_3 = arith.constant 0 : index
    %c0_4 = arith.constant 0 : index
    %4 = vector.load %arg3[%c0_3, %c0_4] : memref<32x1xf32, #tpu.memory_space<vmem>>, vector<32x1xf32>
    %5 = vector.broadcast %4 : vector<32x1xf32> to vector<32x128xf32>
    %6 = arith.addf %3, %5 : vector<32x128xf32>
    %cst_5 = arith.constant 0.000000e+00 : f32
    %7 = vector.broadcast %cst_5 : f32 to vector<32x128xf32>
    %8 = arith.maximumf %6, %7 : vector<32x128xf32>
    %c0_6 = arith.constant 0 : index
    %c0_7 = arith.constant 0 : index
    %9 = vector.load %arg4[%c0_6, %c0_7] : memref<32x128xf32, #tpu.memory_space<vmem>>, vector<32x128xf32>
    tpu.vector_store %arg4[%c0_6, %c0_7], %8 {strides = array<i32>} : memref<32x128xf32, #tpu.memory_space<vmem>>, vector<32x128xf32>,
    return
  }
  func.func @transform_0(%arg0: i32) -> (i32, i32) {
    %c0_i32 = arith.constant 0 : i32
    %c0_i32_0 = arith.constant 0 : i32
    return %c0_i32, %arg0 : i32, i32
  }
  func.func @transform_1(%arg0: i32) -> (i32, i32) {
    %c0_i32 = arith.constant 0 : i32
    %c0_i32_0 = arith.constant 0 : i32
    %c0_i32_1 = arith.constant 0 : i32
    return %c0_i32, %c0_i32_0 : i32, i32
  }
  func.func @transform_2(%arg0: i32) -> (i32, i32) {
    %c0_i32 = arith.constant 0 : i32
    %c0_i32_0 = arith.constant 0 : i32
    %c0_i32_1 = arith.constant 0 : i32
    return %c0_i32, %c0_i32_0 : i32, i32
  }
  func.func @transform_3(%arg0: i32) -> (i32, i32) {
    %c0_i32 = arith.constant 0 : i32
    %c0_i32_0 = arith.constant 0 : i32
    return %c0_i32, %arg0 : i32, i32
  }
}

module attributes {stable_mosaic.version = 11 : i64} {
  func.func @_masked_avg_kernel(%arg0: i32, %arg1: memref<1x1x64xf32, #tpu.memory_space<vmem>>, %arg2: memref<1x64x32xf32, #tpu.memory_space<vmem>>, %arg3: memref<1x1x1xf32, #tpu.memory_space<vmem>>, %arg4: memref<1x1x32xf32, #tpu.memory_space<vmem>>) attributes {dimension_semantics = [#tpu.dimension_semantics<parallel>], iteration_bounds = array<i64: 1>, scalar_prefetch = 0 : i64, scratch_operands = 0 : i64, tpu.core_type = #tpu.core_type<tc>, window_params = [{transform_indices = @transform_0, window_bounds = array<i64: 1, 1, 64>}, {transform_indices = @transform_1, window_bounds = array<i64: 1, 64, 32>}, {transform_indices = @transform_2, window_bounds = array<i64: 1, 1, 1>}, {transform_indices = @transform_3, window_bounds = array<i64: 1, 1, 32>}]} {
    %c0 = arith.constant 0 : index
    %c0_0 = arith.constant 0 : index
    %c0_1 = arith.constant 0 : index
    %0 = vector.load %arg1[%c0, %c0_0, %c0_1] : memref<1x1x64xf32, #tpu.memory_space<vmem>>, vector<1x1x64xf32>
    %1 = vector.shape_cast %0 : vector<1x1x64xf32> to vector<1x64xf32>
    %2 = arith.truncf %1 : vector<1x64xf32> to vector<1x64xbf16>
    %c0_2 = arith.constant 0 : index
    %c0_3 = arith.constant 0 : index
    %c0_4 = arith.constant 0 : index
    %3 = vector.load %arg2[%c0_2, %c0_3, %c0_4] : memref<1x64x32xf32, #tpu.memory_space<vmem>>, vector<1x64x32xf32>
    %4 = vector.shape_cast %3 : vector<1x64x32xf32> to vector<64x32xf32>
    %5 = arith.truncf %4 : vector<64x32xf32> to vector<64x32xbf16>
    %cst = arith.constant dense<0.000000e+00> : vector<1x32xf32>
    %6 = tpu.matmul %2, %5, %cst {dimension_numbers = #tpu.dot_dimension_numbers<[1], [0], [0], [1], [0, 0, 1, 1], [], []>} : vector<1x64xbf16>, vector<64x32xbf16>, vector<1x32xf32> -> vector<1x32xf32>
    %c0_5 = arith.constant 0 : index
    %c0_6 = arith.constant 0 : index
    %c0_7 = arith.constant 0 : index
    %7 = vector.load %arg3[%c0_5, %c0_6, %c0_7] : memref<1x1x1xf32, #tpu.memory_space<vmem>>, vector<1x1x1xf32>
    %8 = vector.shape_cast %7 : vector<1x1x1xf32> to vector<1x1xf32>
    %9 = vector.broadcast %8 : vector<1x1xf32> to vector<1x32xf32>
    %10 = arith.mulf %6, %9 : vector<1x32xf32>
    %c0_8 = arith.constant 0 : index
    %c0_9 = arith.constant 0 : index
    %c0_10 = arith.constant 0 : index
    %11 = vector.load %arg4[%c0_8, %c0_9, %c0_10] : memref<1x1x32xf32, #tpu.memory_space<vmem>>, vector<1x1x32xf32>
    %12 = vector.shape_cast %11 : vector<1x1x32xf32> to vector<1x32xf32>
    %13 = vector.shape_cast %10 : vector<1x32xf32> to vector<1x1x32xf32>
    tpu.vector_store %arg4[%c0_8, %c0_9, %c0_10], %13 {strides = array<i32>} : memref<1x1x32xf32, #tpu.memory_space<vmem>>, vector<1x1x32xf32>,
    return
  }
  func.func @transform_0(%arg0: i32) -> (i32, i32, i32) {
    %c0_i32 = arith.constant 0 : i32
    %c0_i32_0 = arith.constant 0 : i32
    %c0_i32_1 = arith.constant 0 : i32
    return %arg0, %c0_i32, %c0_i32_0 : i32, i32, i32
  }
  func.func @transform_1(%arg0: i32) -> (i32, i32, i32) {
    %c0_i32 = arith.constant 0 : i32
    %c0_i32_0 = arith.constant 0 : i32
    %c0_i32_1 = arith.constant 0 : i32
    return %arg0, %c0_i32, %c0_i32_0 : i32, i32, i32
  }
  func.func @transform_2(%arg0: i32) -> (i32, i32, i32) {
    %c0_i32 = arith.constant 0 : i32
    %c0_i32_0 = arith.constant 0 : i32
    %c0_i32_1 = arith.constant 0 : i32
    return %arg0, %c0_i32, %c0_i32_0 : i32, i32, i32
  }
  func.func @transform_3(%arg0: i32) -> (i32, i32, i32) {
    %c0_i32 = arith.constant 0 : i32
    %c0_i32_0 = arith.constant 0 : i32
    %c0_i32_1 = arith.constant 0 : i32
    return %arg0, %c0_i32, %c0_i32_0 : i32, i32, i32
  }
}

module attributes {stable_mosaic.version = 11 : i64} {
  func.func @_cos_pred_kernel(%arg0: i32, %arg1: i32, %arg2: memref<1x32xf32, #tpu.memory_space<vmem>>, %arg3: memref<1x128xf32, #tpu.memory_space<vmem>>, %arg4: memref<1x32x128xf32, #tpu.memory_space<vmem>>, %arg5: memref<1x128xf32, #tpu.memory_space<vmem>>) attributes {dimension_semantics = [#tpu.dimension_semantics<parallel>, #tpu.dimension_semantics<parallel>], iteration_bounds = array<i64: 1, 1>, scalar_prefetch = 0 : i64, scratch_operands = 0 : i64, tpu.core_type = #tpu.core_type<tc>, window_params = [{transform_indices = @transform_0, window_bounds = array<i64: 1, 32>}, {transform_indices = @transform_1, window_bounds = array<i64: 1, 128>}, {transform_indices = @transform_2, window_bounds = array<i64: 1, 32, 128>}, {transform_indices = @transform_3, window_bounds = array<i64: 1, 128>}]} {
    %c0 = arith.constant 0 : index
    %c0_0 = arith.constant 0 : index
    %c0_1 = arith.constant 0 : index
    %0 = vector.load %arg4[%c0, %c0_0, %c0_1] : memref<1x32x128xf32, #tpu.memory_space<vmem>>, vector<1x32x128xf32>
    %1 = vector.shape_cast %0 : vector<1x32x128xf32> to vector<32x128xf32>
    %c0_2 = arith.constant 0 : index
    %c0_3 = arith.constant 0 : index
    %2 = vector.load %arg2[%c0_2, %c0_3] : memref<1x32xf32, #tpu.memory_space<vmem>>, vector<1x32xf32>
    %3 = arith.truncf %2 : vector<1x32xf32> to vector<1x32xbf16>
    %4 = arith.truncf %1 : vector<32x128xf32> to vector<32x128xbf16>
    %cst = arith.constant dense<0.000000e+00> : vector<1x128xf32>
    %5 = tpu.matmul %3, %4, %cst {dimension_numbers = #tpu.dot_dimension_numbers<[1], [0], [0], [1], [0, 0, 1, 1], [], []>} : vector<1x32xbf16>, vector<32x128xbf16>, vector<1x128xf32> -> vector<1x128xf32>
    %6 = arith.mulf %1, %1 : vector<32x128xf32>
    %cst_4 = arith.constant dense<0.000000e+00> : vector<128xf32>
    %7 = vector.multi_reduction <add>, %6, %cst_4 [0] : vector<32x128xf32> to vector<128xf32>
    %8 = vector.shape_cast %7 : vector<128xf32> to vector<1x128xf32>
    %cst_5 = arith.constant 1.000000e-16 : f32
    %9 = vector.broadcast %cst_5 : f32 to vector<1x128xf32>
    %10 = arith.maximumf %8, %9 : vector<1x128xf32>
    %11 = math.rsqrt %10 : vector<1x128xf32>
    %12 = arith.mulf %5, %11 : vector<1x128xf32>
    %cst_6 = arith.constant 0.000000e+00 : f32
    %13 = vector.broadcast %cst_6 : f32 to vector<1x128xf32>
    %14 = arith.subf %13, %12 : vector<1x128xf32>
    %cst_7 = arith.constant 2.000000e+01 : f32
    %15 = vector.broadcast %cst_7 : f32 to vector<1x128xf32>
    %16 = arith.mulf %14, %15 : vector<1x128xf32>
    %c0_8 = arith.constant 0 : index
    %c0_9 = arith.constant 0 : index
    %17 = vector.load %arg3[%c0_8, %c0_9] : memref<1x128xf32, #tpu.memory_space<vmem>>, vector<1x128xf32>
    %18 = arith.subf %16, %17 : vector<1x128xf32>
    %cst_10 = arith.constant 5.000000e-01 : f32
    %19 = vector.broadcast %cst_10 : f32 to vector<1x128xf32>
    %20 = arith.mulf %19, %18 : vector<1x128xf32>
    %21 = arith.negf %20 : vector<1x128xf32>
    %22 = math.exp %21 : vector<1x128xf32>
    %cst_11 = arith.constant 1.000000e+00 : f32
    %23 = vector.broadcast %cst_11 : f32 to vector<1x128xf32>
    %24 = arith.addf %23, %22 : vector<1x128xf32>
    %25 = arith.divf %23, %24 : vector<1x128xf32>
    %cst_12 = arith.constant 1.000000e+00 : f32
    %26 = vector.broadcast %cst_12 : f32 to vector<1x128xf32>
    %27 = arith.subf %26, %25 : vector<1x128xf32>
    %c0_13 = arith.constant 0 : index
    %c0_14 = arith.constant 0 : index
    %28 = vector.load %arg5[%c0_13, %c0_14] : memref<1x128xf32, #tpu.memory_space<vmem>>, vector<1x128xf32>
    tpu.vector_store %arg5[%c0_13, %c0_14], %27 {strides = array<i32>} : memref<1x128xf32, #tpu.memory_space<vmem>>, vector<1x128xf32>,
    return
  }
  func.func @transform_0(%arg0: i32, %arg1: i32) -> (i32, i32) {
    %c0_i32 = arith.constant 0 : i32
    %c0_i32_0 = arith.constant 0 : i32
    return %arg0, %c0_i32 : i32, i32
  }
  func.func @transform_1(%arg0: i32, %arg1: i32) -> (i32, i32) {
    %c0_i32 = arith.constant 0 : i32
    %c0_i32_0 = arith.constant 0 : i32
    return %c0_i32, %arg1 : i32, i32
  }
  func.func @transform_2(%arg0: i32, %arg1: i32) -> (i32, i32, i32) {
    %c0_i32 = arith.constant 0 : i32
    %c0_i32_0 = arith.constant 0 : i32
    return %arg0, %c0_i32, %arg1 : i32, i32, i32
  }
  func.func @transform_3(%arg0: i32, %arg1: i32) -> (i32, i32) {
    %c0_i32 = arith.constant 0 : i32
    return %arg0, %arg1 : i32, i32
  }
}

module attributes {stable_mosaic.version = 11 : i64} {
  func.func @_fg_pool_kernel(%arg0: i32, %arg1: i32, %arg2: memref<1x64x1xf32, #tpu.memory_space<vmem>>, %arg3: memref<1x64x1xf32, #tpu.memory_space<vmem>>, %arg4: memref<1x64x1xf32, #tpu.memory_space<vmem>>, %arg5: memref<1x1x256xf32, #tpu.memory_space<vmem>>, %arg6: memref<1x1x256xf32, #tpu.memory_space<vmem>>, %arg7: memref<1x256x32xf32, #tpu.memory_space<vmem>>, %arg8: memref<1x64x32xf32, #tpu.memory_space<vmem>>, %arg9: memref<64x32xf32, #tpu.memory_space<vmem>>) attributes {dimension_semantics = [#tpu.dimension_semantics<parallel>, #tpu.dimension_semantics<arbitrary>], iteration_bounds = array<i64: 2, 1>, scalar_prefetch = 0 : i64, scratch_operands = 1 : i64, tpu.core_type = #tpu.core_type<tc>, window_params = [{transform_indices = @transform_0, window_bounds = array<i64: 1, 64, 1>}, {transform_indices = @transform_1, window_bounds = array<i64: 1, 64, 1>}, {transform_indices = @transform_2, window_bounds = array<i64: 1, 64, 1>}, {transform_indices = @transform_3, window_bounds = array<i64: 1, 1, 256>}, {transform_indices = @transform_4, window_bounds = array<i64: 1, 1, 256>}, {transform_indices = @transform_5, window_bounds = array<i64: 1, 256, 32>}, {transform_indices = @transform_6, window_bounds = array<i64: 1, 64, 32>}]} {
    %c0_i32 = arith.constant 0 : i32
    %0 = arith.cmpi eq, %arg1, %c0_i32 : i32
    %1 = arith.extui %0 : i1 to i32
    %c0_i32_0 = arith.constant 0 : i32
    %2 = arith.cmpi ne, %1, %c0_i32_0 : i32
    scf.if %2 {
      %cst_25 = arith.constant 0.000000e+00 : f32
      %37 = vector.broadcast %cst_25 : f32 to vector<64x32xf32>
      %c0_26 = arith.constant 0 : index
      %c0_27 = arith.constant 0 : index
      %38 = vector.load %arg9[%c0_26, %c0_27] : memref<64x32xf32, #tpu.memory_space<vmem>>, vector<64x32xf32>
      tpu.vector_store %arg9[%c0_26, %c0_27], %37 {strides = array<i32>} : memref<64x32xf32, #tpu.memory_space<vmem>>, vector<64x32xf32>,
    } else {
    }
    %c0 = arith.constant 0 : index
    %c0_1 = arith.constant 0 : index
    %c0_2 = arith.constant 0 : index
    %3 = vector.load %arg6[%c0, %c0_1, %c0_2] : memref<1x1x256xf32, #tpu.memory_space<vmem>>, vector<1x1x256xf32>
    %4 = vector.shape_cast %3 : vector<1x1x256xf32> to vector<1x256xf32>
    %c0_3 = arith.constant 0 : index
    %c0_4 = arith.constant 0 : index
    %c0_5 = arith.constant 0 : index
    %5 = vector.load %arg5[%c0_3, %c0_4, %c0_5] : memref<1x1x256xf32, #tpu.memory_space<vmem>>, vector<1x1x256xf32>
    %6 = vector.shape_cast %5 : vector<1x1x256xf32> to vector<1x256xf32>
    %c0_6 = arith.constant 0 : index
    %c0_7 = arith.constant 0 : index
    %c0_8 = arith.constant 0 : index
    %7 = vector.load %arg2[%c0_6, %c0_7, %c0_8] : memref<1x64x1xf32, #tpu.memory_space<vmem>>, vector<1x64x1xf32>
    %8 = vector.shape_cast %7 : vector<1x64x1xf32> to vector<64x1xf32>
    %c0_9 = arith.constant 0 : index
    %c0_10 = arith.constant 0 : index
    %c0_11 = arith.constant 0 : index
    %9 = vector.load %arg3[%c0_9, %c0_10, %c0_11] : memref<1x64x1xf32, #tpu.memory_space<vmem>>, vector<1x64x1xf32>
    %10 = vector.shape_cast %9 : vector<1x64x1xf32> to vector<64x1xf32>
    %11 = vector.broadcast %4 : vector<1x256xf32> to vector<64x256xf32>
    %12 = vector.broadcast %8 : vector<64x1xf32> to vector<64x256xf32>
    %13 = arith.cmpf oge, %11, %12 : vector<64x256xf32>
    %14 = vector.broadcast %4 : vector<1x256xf32> to vector<64x256xf32>
    %15 = vector.broadcast %10 : vector<64x1xf32> to vector<64x256xf32>
    %16 = arith.cmpf olt, %14, %15 : vector<64x256xf32>
    %17 = arith.andi %13, %16 : vector<64x256xi1>
    %cst = arith.constant 0.000000e+00 : f32
    %18 = vector.shape_cast %6 : vector<1x256xf32> to vector<1x256xf32>
    %19 = vector.broadcast %18 : vector<1x256xf32> to vector<64x256xf32>
    %20 = vector.broadcast %cst : f32 to vector<64x256xf32>
    %21 = arith.select %17, %19, %20 : vector<64x256xi1>, vector<64x256xf32>
    %c0_12 = arith.constant 0 : index
    %c0_13 = arith.constant 0 : index
    %c0_14 = arith.constant 0 : index
    %22 = vector.load %arg4[%c0_12, %c0_13, %c0_14] : memref<1x64x1xf32, #tpu.memory_space<vmem>>, vector<1x64x1xf32>
    %23 = vector.shape_cast %22 : vector<1x64x1xf32> to vector<64x1xf32>
    %24 = vector.broadcast %23 : vector<64x1xf32> to vector<64x256xf32>
    %25 = arith.mulf %21, %24 : vector<64x256xf32>
    %c0_15 = arith.constant 0 : index
    %c0_16 = arith.constant 0 : index
    %26 = vector.load %arg9[%c0_15, %c0_16] : memref<64x32xf32, #tpu.memory_space<vmem>>, vector<64x32xf32>
    %27 = arith.truncf %25 : vector<64x256xf32> to vector<64x256xbf16>
    %c0_17 = arith.constant 0 : index
    %c0_18 = arith.constant 0 : index
    %c0_19 = arith.constant 0 : index
    %28 = vector.load %arg7[%c0_17, %c0_18, %c0_19] : memref<1x256x32xf32, #tpu.memory_space<vmem>>, vector<1x256x32xf32>
    %29 = vector.shape_cast %28 : vector<1x256x32xf32> to vector<256x32xf32>
    %30 = arith.truncf %29 : vector<256x32xf32> to vector<256x32xbf16>
    %cst_20 = arith.constant dense<0.000000e+00> : vector<64x32xf32>
    %31 = tpu.matmul %27, %30, %cst_20 {dimension_numbers = #tpu.dot_dimension_numbers<[1], [0], [0], [1], [0, 0, 1, 1], [], []>} : vector<64x256xbf16>, vector<256x32xbf16>, vector<64x32xf32> -> vector<64x32xf32>
    %32 = arith.addf %26, %31 : vector<64x32xf32>
    %c0_21 = arith.constant 0 : index
    %c0_22 = arith.constant 0 : index
    %33 = vector.load %arg9[%c0_21, %c0_22] : memref<64x32xf32, #tpu.memory_space<vmem>>, vector<64x32xf32>
    tpu.vector_store %arg9[%c0_21, %c0_22], %32 {strides = array<i32>} : memref<64x32xf32, #tpu.memory_space<vmem>>, vector<64x32xf32>,
    %c0_i32_23 = arith.constant 0 : i32
    %34 = arith.cmpi eq, %arg1, %c0_i32_23 : i32
    %35 = arith.extui %34 : i1 to i32
    %c0_i32_24 = arith.constant 0 : i32
    %36 = arith.cmpi ne, %35, %c0_i32_24 : i32
    scf.if %36 {
      %c0_25 = arith.constant 0 : index
      %c0_26 = arith.constant 0 : index
      %37 = vector.load %arg9[%c0_25, %c0_26] : memref<64x32xf32, #tpu.memory_space<vmem>>, vector<64x32xf32>
      %c0_27 = arith.constant 0 : index
      %c0_28 = arith.constant 0 : index
      %c0_29 = arith.constant 0 : index
      %38 = vector.load %arg8[%c0_27, %c0_28, %c0_29] : memref<1x64x32xf32, #tpu.memory_space<vmem>>, vector<1x64x32xf32>
      %39 = vector.shape_cast %38 : vector<1x64x32xf32> to vector<64x32xf32>
      %40 = vector.shape_cast %37 : vector<64x32xf32> to vector<1x64x32xf32>
      tpu.vector_store %arg8[%c0_27, %c0_28, %c0_29], %40 {strides = array<i32>} : memref<1x64x32xf32, #tpu.memory_space<vmem>>, vector<1x64x32xf32>,
    } else {
    }
    return
  }
  func.func @transform_0(%arg0: i32, %arg1: i32) -> (i32, i32, i32) {
    %c0_i32 = arith.constant 0 : i32
    %c0_i32_0 = arith.constant 0 : i32
    %c0_i32_1 = arith.constant 0 : i32
    return %arg0, %c0_i32, %c0_i32_0 : i32, i32, i32
  }
  func.func @transform_1(%arg0: i32, %arg1: i32) -> (i32, i32, i32) {
    %c0_i32 = arith.constant 0 : i32
    %c0_i32_0 = arith.constant 0 : i32
    %c0_i32_1 = arith.constant 0 : i32
    return %arg0, %c0_i32, %c0_i32_0 : i32, i32, i32
  }
  func.func @transform_2(%arg0: i32, %arg1: i32) -> (i32, i32, i32) {
    %c0_i32 = arith.constant 0 : i32
    %c0_i32_0 = arith.constant 0 : i32
    %c0_i32_1 = arith.constant 0 : i32
    return %arg0, %c0_i32, %c0_i32_0 : i32, i32, i32
  }
  func.func @transform_3(%arg0: i32, %arg1: i32) -> (i32, i32, i32) {
    %c0_i32 = arith.constant 0 : i32
    %c0_i32_0 = arith.constant 0 : i32
    return %arg0, %c0_i32, %arg1 : i32, i32, i32
  }
  func.func @transform_4(%arg0: i32, %arg1: i32) -> (i32, i32, i32) {
    %c0_i32 = arith.constant 0 : i32
    %c0_i32_0 = arith.constant 0 : i32
    return %arg0, %c0_i32, %arg1 : i32, i32, i32
  }
  func.func @transform_5(%arg0: i32, %arg1: i32) -> (i32, i32, i32) {
    %c0_i32 = arith.constant 0 : i32
    %c0_i32_0 = arith.constant 0 : i32
    return %arg0, %arg1, %c0_i32 : i32, i32, i32
  }
  func.func @transform_6(%arg0: i32, %arg1: i32) -> (i32, i32, i32) {
    %c0_i32 = arith.constant 0 : i32
    %c0_i32_0 = arith.constant 0 : i32
    %c0_i32_1 = arith.constant 0 : i32
    return %arg0, %c0_i32, %c0_i32_0 : i32, i32, i32
  }
}

module attributes {stable_mosaic.version = 11 : i64} {
  func.func @_fam_kernel(%arg0: memref<64x96xf32, #tpu.memory_space<vmem>>, %arg1: memref<64x96xf32, #tpu.memory_space<vmem>>, %arg2: memref<96x3xbf16, #tpu.memory_space<vmem>>, %arg3: memref<3x96xf32, #tpu.memory_space<vmem>>, %arg4: memref<1x3xf32, #tpu.memory_space<vmem>>, %arg5: memref<8x64xbf16, #tpu.memory_space<vmem>>, %arg6: memref<8x1xf32, #tpu.memory_space<vmem>>, %arg7: memref<64x8xbf16, #tpu.memory_space<vmem>>, %arg8: memref<64x1xf32, #tpu.memory_space<vmem>>, %arg9: memref<8x64xbf16, #tpu.memory_space<vmem>>, %arg10: memref<8x1xf32, #tpu.memory_space<vmem>>, %arg11: memref<64x8xbf16, #tpu.memory_space<vmem>>, %arg12: memref<64x1xf32, #tpu.memory_space<vmem>>, %arg13: memref<16x64xbf16, #tpu.memory_space<vmem>>, %arg14: memref<16x64xbf16, #tpu.memory_space<vmem>>, %arg15: memref<16x1xf32, #tpu.memory_space<vmem>>, %arg16: memref<128x16xbf16, #tpu.memory_space<vmem>>, %arg17: memref<128x1xf32, #tpu.memory_space<vmem>>, %arg18: memref<128x96xf32, #tpu.memory_space<vmem>>) attributes {dimension_semantics = [], scalar_prefetch = 0 : i64, scratch_operands = 0 : i64, tpu.core_type = #tpu.core_type<tc>} {
    %c0 = arith.constant 0 : index
    %c0_0 = arith.constant 0 : index
    %0 = vector.load %arg0[%c0, %c0_0] : memref<64x96xf32, #tpu.memory_space<vmem>>, vector<64x96xf32>
    %c0_1 = arith.constant 0 : index
    %c0_2 = arith.constant 0 : index
    %1 = vector.load %arg1[%c0_1, %c0_2] : memref<64x96xf32, #tpu.memory_space<vmem>>, vector<64x96xf32>
    %c0_3 = arith.constant 0 : index
    %c0_4 = arith.constant 0 : index
    %2 = vector.load %arg2[%c0_3, %c0_4] : memref<96x3xbf16, #tpu.memory_space<vmem>>, vector<96x3xbf16>
    %3 = arith.mulf %0, %1 : vector<64x96xf32>
    %4 = arith.truncf %3 : vector<64x96xf32> to vector<64x96xbf16>
    %cst = arith.constant dense<0.000000e+00> : vector<64x3xf32>
    %5 = tpu.matmul %4, %2, %cst {dimension_numbers = #tpu.dot_dimension_numbers<[1], [0], [0], [1], [0, 0, 1, 1], [], []>} : vector<64x96xbf16>, vector<96x3xbf16>, vector<64x3xf32> -> vector<64x3xf32>
    %6 = arith.mulf %0, %0 : vector<64x96xf32>
    %7 = arith.truncf %6 : vector<64x96xf32> to vector<64x96xbf16>
    %cst_5 = arith.constant dense<0.000000e+00> : vector<64x3xf32>
    %8 = tpu.matmul %7, %2, %cst_5 {dimension_numbers = #tpu.dot_dimension_numbers<[1], [0], [0], [1], [0, 0, 1, 1], [], []>} : vector<64x96xbf16>, vector<96x3xbf16>, vector<64x3xf32> -> vector<64x3xf32>
    %9 = arith.mulf %1, %1 : vector<64x96xf32>
    %10 = arith.truncf %9 : vector<64x96xf32> to vector<64x96xbf16>
    %cst_6 = arith.constant dense<0.000000e+00> : vector<64x3xf32>
    %11 = tpu.matmul %10, %2, %cst_6 {dimension_numbers = #tpu.dot_dimension_numbers<[1], [0], [0], [1], [0, 0, 1, 1], [], []>} : vector<64x96xbf16>, vector<96x3xbf16>, vector<64x3xf32> -> vector<64x3xf32>
    %cst_7 = arith.constant 1.000000e-24 : f32
    %12 = vector.broadcast %cst_7 : f32 to vector<64x3xf32>
    %13 = arith.maximumf %8, %12 : vector<64x3xf32>
    %14 = math.rsqrt %13 : vector<64x3xf32>
    %cst_8 = arith.constant 1.000000e-24 : f32
    %15 = vector.broadcast %cst_8 : f32 to vector<64x3xf32>
    %16 = arith.maximumf %11, %15 : vector<64x3xf32>
    %17 = math.rsqrt %16 : vector<64x3xf32>
    %18 = arith.mulf %14, %17 : vector<64x3xf32>
    %19 = arith.mulf %5, %18 : vector<64x3xf32>
    %20 = arith.negf %19 : vector<64x3xf32>
    %21 = math.exp %20 : vector<64x3xf32>
    %cst_9 = arith.constant 1.000000e+00 : f32
    %22 = vector.broadcast %cst_9 : f32 to vector<64x3xf32>
    %23 = arith.addf %22, %21 : vector<64x3xf32>
    %24 = arith.divf %22, %23 : vector<64x3xf32>
    %c0_10 = arith.constant 0 : index
    %c0_11 = arith.constant 0 : index
    %25 = vector.load %arg4[%c0_10, %c0_11] : memref<1x3xf32, #tpu.memory_space<vmem>>, vector<1x3xf32>
    %26 = vector.broadcast %25 : vector<1x3xf32> to vector<64x3xf32>
    %27 = arith.mulf %26, %24 : vector<64x3xf32>
    %cst_12 = arith.constant 1.000000e+00 : f32
    %28 = vector.broadcast %cst_12 : f32 to vector<1x3xf32>
    %29 = arith.subf %28, %25 : vector<1x3xf32>
    %cst_13 = arith.constant 1.000000e+00 : f32
    %30 = vector.broadcast %cst_13 : f32 to vector<64x3xf32>
    %31 = arith.subf %30, %24 : vector<64x3xf32>
    %32 = vector.broadcast %29 : vector<1x3xf32> to vector<64x3xf32>
    %33 = arith.mulf %32, %31 : vector<64x3xf32>
    %34 = arith.addf %27, %33 : vector<64x3xf32>
    %c0_14 = arith.constant 0 : index
    %c0_15 = arith.constant 0 : index
    %35 = vector.load %arg3[%c0_14, %c0_15] : memref<3x96xf32, #tpu.memory_space<vmem>>, vector<3x96xf32>
    %cst_16 = arith.constant dense<0.000000e+00> : vector<64x96xf32>
    %36 = tpu.matmul %34, %35, %cst_16 {dimension_numbers = #tpu.dot_dimension_numbers<[1], [0], [0], [1], [0, 0, 1, 1], [], []>} : vector<64x3xf32>, vector<3x96xf32>, vector<64x96xf32> -> vector<64x96xf32>
    %c0_17 = arith.constant 0 : index
    %c0_18 = arith.constant 0 : index
    %37 = vector.load %arg5[%c0_17, %c0_18] : memref<8x64xbf16, #tpu.memory_space<vmem>>, vector<8x64xbf16>
    %38 = arith.truncf %0 : vector<64x96xf32> to vector<64x96xbf16>
    %cst_19 = arith.constant dense<0.000000e+00> : vector<8x96xf32>
    %39 = tpu.matmul %37, %38, %cst_19 {dimension_numbers = #tpu.dot_dimension_numbers<[1], [0], [0], [1], [0, 0, 1, 1], [], []>} : vector<8x64xbf16>, vector<64x96xbf16>, vector<8x96xf32> -> vector<8x96xf32>
    %c0_20 = arith.constant 0 : index
    %c0_21 = arith.constant 0 : index
    %40 = vector.load %arg6[%c0_20, %c0_21] : memref<8x1xf32, #tpu.memory_space<vmem>>, vector<8x1xf32>
    %41 = vector.broadcast %40 : vector<8x1xf32> to vector<8x96xf32>
    %42 = arith.addf %39, %41 : vector<8x96xf32>
    %cst_22 = arith.constant 0.000000e+00 : f32
    %43 = vector.broadcast %cst_22 : f32 to vector<8x96xf32>
    %44 = arith.maximumf %42, %43 : vector<8x96xf32>
    %c0_23 = arith.constant 0 : index
    %c0_24 = arith.constant 0 : index
    %45 = vector.load %arg7[%c0_23, %c0_24] : memref<64x8xbf16, #tpu.memory_space<vmem>>, vector<64x8xbf16>
    %46 = arith.truncf %44 : vector<8x96xf32> to vector<8x96xbf16>
    %cst_25 = arith.constant dense<0.000000e+00> : vector<64x96xf32>
    %47 = tpu.matmul %45, %46, %cst_25 {dimension_numbers = #tpu.dot_dimension_numbers<[1], [0], [0], [1], [0, 0, 1, 1], [], []>} : vector<64x8xbf16>, vector<8x96xbf16>, vector<64x96xf32> -> vector<64x96xf32>
    %c0_26 = arith.constant 0 : index
    %c0_27 = arith.constant 0 : index
    %48 = vector.load %arg8[%c0_26, %c0_27] : memref<64x1xf32, #tpu.memory_space<vmem>>, vector<64x1xf32>
    %49 = vector.broadcast %48 : vector<64x1xf32> to vector<64x96xf32>
    %50 = arith.addf %47, %49 : vector<64x96xf32>
    %cst_28 = arith.constant 0.000000e+00 : f32
    %51 = vector.broadcast %cst_28 : f32 to vector<64x96xf32>
    %52 = arith.maximumf %50, %51 : vector<64x96xf32>
    %53 = arith.mulf %36, %52 : vector<64x96xf32>
    %c0_29 = arith.constant 0 : index
    %c0_30 = arith.constant 0 : index
    %54 = vector.load %arg9[%c0_29, %c0_30] : memref<8x64xbf16, #tpu.memory_space<vmem>>, vector<8x64xbf16>
    %55 = arith.truncf %1 : vector<64x96xf32> to vector<64x96xbf16>
    %cst_31 = arith.constant dense<0.000000e+00> : vector<8x96xf32>
    %56 = tpu.matmul %54, %55, %cst_31 {dimension_numbers = #tpu.dot_dimension_numbers<[1], [0], [0], [1], [0, 0, 1, 1], [], []>} : vector<8x64xbf16>, vector<64x96xbf16>, vector<8x96xf32> -> vector<8x96xf32>
    %c0_32 = arith.constant 0 : index
    %c0_33 = arith.constant 0 : index
    %57 = vector.load %arg10[%c0_32, %c0_33] : memref<8x1xf32, #tpu.memory_space<vmem>>, vector<8x1xf32>
    %58 = vector.broadcast %57 : vector<8x1xf32> to vector<8x96xf32>
    %59 = arith.addf %56, %58 : vector<8x96xf32>
    %cst_34 = arith.constant 0.000000e+00 : f32
    %60 = vector.broadcast %cst_34 : f32 to vector<8x96xf32>
    %61 = arith.maximumf %59, %60 : vector<8x96xf32>
    %c0_35 = arith.constant 0 : index
    %c0_36 = arith.constant 0 : index
    %62 = vector.load %arg11[%c0_35, %c0_36] : memref<64x8xbf16, #tpu.memory_space<vmem>>, vector<64x8xbf16>
    %63 = arith.truncf %61 : vector<8x96xf32> to vector<8x96xbf16>
    %cst_37 = arith.constant dense<0.000000e+00> : vector<64x96xf32>
    %64 = tpu.matmul %62, %63, %cst_37 {dimension_numbers = #tpu.dot_dimension_numbers<[1], [0], [0], [1], [0, 0, 1, 1], [], []>} : vector<64x8xbf16>, vector<8x96xbf16>, vector<64x96xf32> -> vector<64x96xf32>
    %c0_38 = arith.constant 0 : index
    %c0_39 = arith.constant 0 : index
    %65 = vector.load %arg12[%c0_38, %c0_39] : memref<64x1xf32, #tpu.memory_space<vmem>>, vector<64x1xf32>
    %66 = vector.broadcast %65 : vector<64x1xf32> to vector<64x96xf32>
    %67 = arith.addf %64, %66 : vector<64x96xf32>
    %cst_40 = arith.constant 0.000000e+00 : f32
    %68 = vector.broadcast %cst_40 : f32 to vector<64x96xf32>
    %69 = arith.maximumf %67, %68 : vector<64x96xf32>
    %70 = arith.mulf %36, %69 : vector<64x96xf32>
    %c0_41 = arith.constant 0 : index
    %c0_42 = arith.constant 0 : index
    %71 = vector.load %arg13[%c0_41, %c0_42] : memref<16x64xbf16, #tpu.memory_space<vmem>>, vector<16x64xbf16>
    %72 = arith.truncf %53 : vector<64x96xf32> to vector<64x96xbf16>
    %cst_43 = arith.constant dense<0.000000e+00> : vector<16x96xf32>
    %73 = tpu.matmul %71, %72, %cst_43 {dimension_numbers = #tpu.dot_dimension_numbers<[1], [0], [0], [1], [0, 0, 1, 1], [], []>} : vector<16x64xbf16>, vector<64x96xbf16>, vector<16x96xf32> -> vector<16x96xf32>
    %c0_44 = arith.constant 0 : index
    %c0_45 = arith.constant 0 : index
    %74 = vector.load %arg14[%c0_44, %c0_45] : memref<16x64xbf16, #tpu.memory_space<vmem>>, vector<16x64xbf16>
    %75 = arith.truncf %70 : vector<64x96xf32> to vector<64x96xbf16>
    %cst_46 = arith.constant dense<0.000000e+00> : vector<16x96xf32>
    %76 = tpu.matmul %74, %75, %cst_46 {dimension_numbers = #tpu.dot_dimension_numbers<[1], [0], [0], [1], [0, 0, 1, 1], [], []>} : vector<16x64xbf16>, vector<64x96xbf16>, vector<16x96xf32> -> vector<16x96xf32>
    %77 = arith.addf %73, %76 : vector<16x96xf32>
    %c0_47 = arith.constant 0 : index
    %c0_48 = arith.constant 0 : index
    %78 = vector.load %arg15[%c0_47, %c0_48] : memref<16x1xf32, #tpu.memory_space<vmem>>, vector<16x1xf32>
    %79 = vector.broadcast %78 : vector<16x1xf32> to vector<16x96xf32>
    %80 = arith.addf %77, %79 : vector<16x96xf32>
    %cst_49 = arith.constant 0.000000e+00 : f32
    %81 = vector.broadcast %cst_49 : f32 to vector<16x96xf32>
    %82 = arith.maximumf %80, %81 : vector<16x96xf32>
    %c0_50 = arith.constant 0 : index
    %c0_51 = arith.constant 0 : index
    %83 = vector.load %arg16[%c0_50, %c0_51] : memref<128x16xbf16, #tpu.memory_space<vmem>>, vector<128x16xbf16>
    %84 = arith.truncf %82 : vector<16x96xf32> to vector<16x96xbf16>
    %cst_52 = arith.constant dense<0.000000e+00> : vector<128x96xf32>
    %85 = tpu.matmul %83, %84, %cst_52 {dimension_numbers = #tpu.dot_dimension_numbers<[1], [0], [0], [1], [0, 0, 1, 1], [], []>} : vector<128x16xbf16>, vector<16x96xbf16>, vector<128x96xf32> -> vector<128x96xf32>
    %c0_53 = arith.constant 0 : index
    %c0_54 = arith.constant 0 : index
    %86 = vector.load %arg17[%c0_53, %c0_54] : memref<128x1xf32, #tpu.memory_space<vmem>>, vector<128x1xf32>
    %87 = vector.broadcast %86 : vector<128x1xf32> to vector<128x96xf32>
    %88 = arith.addf %85, %87 : vector<128x96xf32>
    %cst_55 = arith.constant 0.000000e+00 : f32
    %89 = vector.broadcast %cst_55 : f32 to vector<128x96xf32>
    %90 = arith.maximumf %88, %89 : vector<128x96xf32>
    %c0_56 = arith.constant 0 : index
    %c0_57 = arith.constant 0 : index
    %91 = vector.load %arg18[%c0_56, %c0_57] : memref<128x96xf32, #tpu.memory_space<vmem>>, vector<128x96xf32>
    tpu.vector_store %arg18[%c0_56, %c0_57], %90 {strides = array<i32>} : memref<128x96xf32, #tpu.memory_space<vmem>>, vector<128x96xf32>,
    return
  }
}

module attributes {stable_mosaic.version = 11 : i64} {
  func.func @_msfm_kernel(%arg0: memref<128x96xf32, #tpu.memory_space<vmem>>, %arg1: memref<32x32xbf16, #tpu.memory_space<vmem>>, %arg2: memref<1x32xf32, #tpu.memory_space<vmem>>, %arg3: memref<32x32xbf16, #tpu.memory_space<vmem>>, %arg4: memref<1x32xf32, #tpu.memory_space<vmem>>, %arg5: memref<32x32xbf16, #tpu.memory_space<vmem>>, %arg6: memref<1x32xf32, #tpu.memory_space<vmem>>, %arg7: memref<32x32xbf16, #tpu.memory_space<vmem>>, %arg8: memref<1x32xf32, #tpu.memory_space<vmem>>, %arg9: memref<32x32xbf16, #tpu.memory_space<vmem>>, %arg10: memref<1x32xf32, #tpu.memory_space<vmem>>, %arg11: memref<32x32xbf16, #tpu.memory_space<vmem>>, %arg12: memref<1x32xf32, #tpu.memory_space<vmem>>, %arg13: memref<1x32xf32, #tpu.memory_space<vmem>>) attributes {dimension_semantics = [], scalar_prefetch = 0 : i64, scratch_operands = 0 : i64, tpu.core_type = #tpu.core_type<tc>} {
    %c0 = arith.constant 0 : index
    %c0_0 = arith.constant 0 : index
    %0 = vector.load %arg0[%c0, %c0_0] : memref<128x96xf32, #tpu.memory_space<vmem>>, vector<128x96xf32>
    %1 = vector.extract_strided_slice %0 {offsets = [0, 0], sizes = [128, 32], strides = [1, 1]} : vector<128x96xf32> to vector<128x32xf32>
    %2 = vector.extract_strided_slice %0 {offsets = [0, 32], sizes = [128, 32], strides = [1, 1]} : vector<128x96xf32> to vector<128x32xf32>
    %3 = vector.extract_strided_slice %0 {offsets = [0, 64], sizes = [128, 32], strides = [1, 1]} : vector<128x96xf32> to vector<128x32xf32>
    %4 = arith.truncf %2 : vector<128x32xf32> to vector<128x32xbf16>
    %c0_1 = arith.constant 0 : index
    %c0_2 = arith.constant 0 : index
    %5 = vector.load %arg1[%c0_1, %c0_2] : memref<32x32xbf16, #tpu.memory_space<vmem>>, vector<32x32xbf16>
    %cst = arith.constant dense<0.000000e+00> : vector<128x32xf32>
    %6 = tpu.matmul %4, %5, %cst {dimension_numbers = #tpu.dot_dimension_numbers<[1], [0], [0], [1], [0, 0, 1, 1], [], []>} : vector<128x32xbf16>, vector<32x32xbf16>, vector<128x32xf32> -> vector<128x32xf32>
    %c0_3 = arith.constant 0 : index
    %c0_4 = arith.constant 0 : index
    %7 = vector.load %arg2[%c0_3, %c0_4] : memref<1x32xf32, #tpu.memory_space<vmem>>, vector<1x32xf32>
    %8 = vector.broadcast %7 : vector<1x32xf32> to vector<128x32xf32>
    %9 = arith.addf %6, %8 : vector<128x32xf32>
    %10 = arith.truncf %1 : vector<128x32xf32> to vector<128x32xbf16>
    %c0_5 = arith.constant 0 : index
    %c0_6 = arith.constant 0 : index
    %11 = vector.load %arg3[%c0_5, %c0_6] : memref<32x32xbf16, #tpu.memory_space<vmem>>, vector<32x32xbf16>
    %cst_7 = arith.constant dense<0.000000e+00> : vector<128x32xf32>
    %12 = tpu.matmul %10, %11, %cst_7 {dimension_numbers = #tpu.dot_dimension_numbers<[1], [0], [0], [1], [0, 0, 1, 1], [], []>} : vector<128x32xbf16>, vector<32x32xbf16>, vector<128x32xf32> -> vector<128x32xf32>
    %c0_8 = arith.constant 0 : index
    %c0_9 = arith.constant 0 : index
    %13 = vector.load %arg4[%c0_8, %c0_9] : memref<1x32xf32, #tpu.memory_space<vmem>>, vector<1x32xf32>
    %14 = vector.broadcast %13 : vector<1x32xf32> to vector<128x32xf32>
    %15 = arith.addf %12, %14 : vector<128x32xf32>
    %16 = arith.truncf %1 : vector<128x32xf32> to vector<128x32xbf16>
    %c0_10 = arith.constant 0 : index
    %c0_11 = arith.constant 0 : index
    %17 = vector.load %arg5[%c0_10, %c0_11] : memref<32x32xbf16, #tpu.memory_space<vmem>>, vector<32x32xbf16>
    %cst_12 = arith.constant dense<0.000000e+00> : vector<128x32xf32>
    %18 = tpu.matmul %16, %17, %cst_12 {dimension_numbers = #tpu.dot_dimension_numbers<[1], [0], [0], [1], [0, 0, 1, 1], [], []>} : vector<128x32xbf16>, vector<32x32xbf16>, vector<128x32xf32> -> vector<128x32xf32>
    %c0_13 = arith.constant 0 : index
    %c0_14 = arith.constant 0 : index
    %19 = vector.load %arg6[%c0_13, %c0_14] : memref<1x32xf32, #tpu.memory_space<vmem>>, vector<1x32xf32>
    %20 = vector.broadcast %19 : vector<1x32xf32> to vector<128x32xf32>
    %21 = arith.addf %18, %20 : vector<128x32xf32>
    %22 = arith.truncf %9 : vector<128x32xf32> to vector<128x32xbf16>
    %23 = arith.truncf %15 : vector<128x32xf32> to vector<128x32xbf16>
    %cst_15 = arith.constant dense<0.000000e+00> : vector<128x128xf32>
    %24 = tpu.matmul %22, %23, %cst_15 {dimension_numbers = #tpu.dot_dimension_numbers<[1], [1], [0], [0], [0, 0, 1, 0], [], []>} : vector<128x32xbf16>, vector<128x32xbf16>, vector<128x128xf32> -> vector<128x128xf32>
    %cst_16 = arith.constant 0.176776692 : f32
    %25 = vector.broadcast %cst_16 : f32 to vector<128x128xf32>
    %26 = arith.mulf %24, %25 : vector<128x128xf32>
    %cst_17 = arith.constant dense<0xFF800000> : vector<128xf32>
    %27 = vector.multi_reduction <maximumf>, %26, %cst_17 [1] : vector<128x128xf32> to vector<128xf32>
    %28 = vector.shape_cast %27 : vector<128xf32> to vector<128x1xf32>
    %29 = vector.broadcast %28 : vector<128x1xf32> to vector<128x128xf32>
    %30 = arith.subf %26, %29 : vector<128x128xf32>
    %31 = math.exp %30 : vector<128x128xf32>
    %cst_18 = arith.constant dense<0.000000e+00> : vector<128xf32>
    %32 = vector.multi_reduction <add>, %31, %cst_18 [1] : vector<128x128xf32> to vector<128xf32>
    %33 = vector.shape_cast %32 : vector<128xf32> to vector<128x1xf32>
    %34 = tpu.reciprocal %33 {approx = true} : vector<128x1xf32> -> vector<128x1xf32>
    %35 = vector.broadcast %34 : vector<128x1xf32> to vector<128x128xf32>
    %36 = arith.mulf %31, %35 : vector<128x128xf32>
    %37 = arith.truncf %36 : vector<128x128xf32> to vector<128x128xbf16>
    %38 = arith.truncf %21 : vector<128x32xf32> to vector<128x32xbf16>
    %cst_19 = arith.constant dense<0.000000e+00> : vector<128x32xf32>
    %39 = tpu.matmul %37, %38, %cst_19 {dimension_numbers = #tpu.dot_dimension_numbers<[1], [0], [0], [1], [0, 0, 1, 1], [], []>} : vector<128x128xbf16>, vector<128x32xbf16>, vector<128x32xf32> -> vector<128x32xf32>
    %40 = arith.truncf %2 : vector<128x32xf32> to vector<128x32xbf16>
    %c0_20 = arith.constant 0 : index
    %c0_21 = arith.constant 0 : index
    %41 = vector.load %arg7[%c0_20, %c0_21] : memref<32x32xbf16, #tpu.memory_space<vmem>>, vector<32x32xbf16>
    %cst_22 = arith.constant dense<0.000000e+00> : vector<128x32xf32>
    %42 = tpu.matmul %40, %41, %cst_22 {dimension_numbers = #tpu.dot_dimension_numbers<[1], [0], [0], [1], [0, 0, 1, 1], [], []>} : vector<128x32xbf16>, vector<32x32xbf16>, vector<128x32xf32> -> vector<128x32xf32>
    %c0_23 = arith.constant 0 : index
    %c0_24 = arith.constant 0 : index
    %43 = vector.load %arg8[%c0_23, %c0_24] : memref<1x32xf32, #tpu.memory_space<vmem>>, vector<1x32xf32>
    %44 = vector.broadcast %43 : vector<1x32xf32> to vector<128x32xf32>
    %45 = arith.addf %42, %44 : vector<128x32xf32>
    %46 = arith.truncf %3 : vector<128x32xf32> to vector<128x32xbf16>
    %c0_25 = arith.constant 0 : index
    %c0_26 = arith.constant 0 : index
    %47 = vector.load %arg9[%c0_25, %c0_26] : memref<32x32xbf16, #tpu.memory_space<vmem>>, vector<32x32xbf16>
    %cst_27 = arith.constant dense<0.000000e+00> : vector<128x32xf32>
    %48 = tpu.matmul %46, %47, %cst_27 {dimension_numbers = #tpu.dot_dimension_numbers<[1], [0], [0], [1], [0, 0, 1, 1], [], []>} : vector<128x32xbf16>, vector<32x32xbf16>, vector<128x32xf32> -> vector<128x32xf32>
    %c0_28 = arith.constant 0 : index
    %c0_29 = arith.constant 0 : index
    %49 = vector.load %arg10[%c0_28, %c0_29] : memref<1x32xf32, #tpu.memory_space<vmem>>, vector<1x32xf32>
    %50 = vector.broadcast %49 : vector<1x32xf32> to vector<128x32xf32>
    %51 = arith.addf %48, %50 : vector<128x32xf32>
    %52 = arith.truncf %3 : vector<128x32xf32> to vector<128x32xbf16>
    %c0_30 = arith.constant 0 : index
    %c0_31 = arith.constant 0 : index
    %53 = vector.load %arg11[%c0_30, %c0_31] : memref<32x32xbf16, #tpu.memory_space<vmem>>, vector<32x32xbf16>
    %cst_32 = arith.constant dense<0.000000e+00> : vector<128x32xf32>
    %54 = tpu.matmul %52, %53, %cst_32 {dimension_numbers = #tpu.dot_dimension_numbers<[1], [0], [0], [1], [0, 0, 1, 1], [], []>} : vector<128x32xbf16>, vector<32x32xbf16>, vector<128x32xf32> -> vector<128x32xf32>
    %c0_33 = arith.constant 0 : index
    %c0_34 = arith.constant 0 : index
    %55 = vector.load %arg12[%c0_33, %c0_34] : memref<1x32xf32, #tpu.memory_space<vmem>>, vector<1x32xf32>
    %56 = vector.broadcast %55 : vector<1x32xf32> to vector<128x32xf32>
    %57 = arith.addf %54, %56 : vector<128x32xf32>
    %58 = arith.truncf %45 : vector<128x32xf32> to vector<128x32xbf16>
    %59 = arith.truncf %51 : vector<128x32xf32> to vector<128x32xbf16>
    %cst_35 = arith.constant dense<0.000000e+00> : vector<128x128xf32>
    %60 = tpu.matmul %58, %59, %cst_35 {dimension_numbers = #tpu.dot_dimension_numbers<[1], [1], [0], [0], [0, 0, 1, 0], [], []>} : vector<128x32xbf16>, vector<128x32xbf16>, vector<128x128xf32> -> vector<128x128xf32>
    %cst_36 = arith.constant 0.176776692 : f32
    %61 = vector.broadcast %cst_36 : f32 to vector<128x128xf32>
    %62 = arith.mulf %60, %61 : vector<128x128xf32>
    %cst_37 = arith.constant dense<0xFF800000> : vector<128xf32>
    %63 = vector.multi_reduction <maximumf>, %62, %cst_37 [1] : vector<128x128xf32> to vector<128xf32>
    %64 = vector.shape_cast %63 : vector<128xf32> to vector<128x1xf32>
    %65 = vector.broadcast %64 : vector<128x1xf32> to vector<128x128xf32>
    %66 = arith.subf %62, %65 : vector<128x128xf32>
    %67 = math.exp %66 : vector<128x128xf32>
    %cst_38 = arith.constant dense<0.000000e+00> : vector<128xf32>
    %68 = vector.multi_reduction <add>, %67, %cst_38 [1] : vector<128x128xf32> to vector<128xf32>
    %69 = vector.shape_cast %68 : vector<128xf32> to vector<128x1xf32>
    %70 = tpu.reciprocal %69 {approx = true} : vector<128x1xf32> -> vector<128x1xf32>
    %71 = vector.broadcast %70 : vector<128x1xf32> to vector<128x128xf32>
    %72 = arith.mulf %67, %71 : vector<128x128xf32>
    %73 = arith.truncf %72 : vector<128x128xf32> to vector<128x128xbf16>
    %74 = arith.truncf %57 : vector<128x32xf32> to vector<128x32xbf16>
    %cst_39 = arith.constant dense<0.000000e+00> : vector<128x32xf32>
    %75 = tpu.matmul %73, %74, %cst_39 {dimension_numbers = #tpu.dot_dimension_numbers<[1], [0], [0], [1], [0, 0, 1, 1], [], []>} : vector<128x128xbf16>, vector<128x32xbf16>, vector<128x32xf32> -> vector<128x32xf32>
    %76 = arith.addf %39, %2 : vector<128x32xf32>
    %77 = arith.addf %76, %75 : vector<128x32xf32>
    %cst_40 = arith.constant 0.000000e+00 : f32
    %78 = vector.broadcast %cst_40 : f32 to vector<128x32xf32>
    %79 = arith.maximumf %77, %78 : vector<128x32xf32>
    %cst_41 = arith.constant dense<0.000000e+00> : vector<32xf32>
    %80 = vector.multi_reduction <add>, %79, %cst_41 [0] : vector<128x32xf32> to vector<32xf32>
    %81 = vector.shape_cast %80 : vector<32xf32> to vector<1x32xf32>
    %cst_42 = arith.constant 0.00781249953 : f32
    %82 = vector.broadcast %cst_42 : f32 to vector<1x32xf32>
    %83 = arith.mulf %81, %82 : vector<1x32xf32>
    %c0_43 = arith.constant 0 : index
    %c0_44 = arith.constant 0 : index
    %84 = vector.load %arg13[%c0_43, %c0_44] : memref<1x32xf32, #tpu.memory_space<vmem>>, vector<1x32xf32>
    tpu.vector_store %arg13[%c0_43, %c0_44], %83 {strides = array<i32>} : memref<1x32xf32, #tpu.memory_space<vmem>>, vector<1x32xf32>,
    return
  }
}

</mosaic_0001>

<bundles_post_ra>
// kernel: _forward_core.3
= control target key start
LH: loop header
LB: loop body
LE: loop exit
PB: predicated region body
PF: predicated region fallthrough
CT: control target
= control target key end

     0   :  { %v114_v0 = vmov 0.0   ;;  %vm115_vm0 = vmmov 0   ;;  %v116_v7 = vmov 0   ;;  %vm31_vm1 = vcmask 523264   ;;  %s170_s1 = inlined_call_operand.vmem [shape: f32[1,64,32], index: 1, kind: input, shape index: {}]   ;;  %s171_s2 = inlined_call_operand.<no memory space> [shape: f32[1,1,1], index: 2, kind: input, shape index: {}]   ;;  %s172_s0 = inlined_call_operand.vmem [shape: f32[1,1,64], index: 0, kind: input, shape index: {}]   ;;  %s173_s3 = inlined_call_operand.vmem [shape: f32[1,1,32], index: 3, kind: output, shape index: {}]  }
   0x1   :  { %98 = vmatprep.subr.bf16.mxu0 %v114_v0  ;;  %v25_v1 = vld [vmem:[%s170_s1 + $0x30] sm:$0xff]  ;;  %v26_v2 = vld [vmem:[%s170_s1 + $0x38] sm:$0xff]  ;;  %v23_v3 = vld [vmem:[%s170_s1 + $0x20] sm:$0xff]  ;;  %106 = vmatprep.mubr.msk.bf16.mxu0 %vm115_vm0, %v114_v0  ;;  %v8_v4 = vstv %s171_s2  ;;  %v81_v18 = vlaneseq  ;;  %vm86_vm2 = vcmask 253952  }
   0x2   :  { %v30_v5 = vpack.c.bf16 %v26_v2, %v25_v1  ;;  %v24_v6 = vld [vmem:[%s170_s1 + $0x28] sm:$0xff]  ;;  %113 = vset.pattern.permute.xlu0 %v116_v7  ;;  %9 = vst [vmem:[#allocation2] sm:$0x1] %v8_v4  ;;  %v21_v9 = vld [vmem:[%s170_s1 + $0x10] sm:$0xff]  ;;  %v22_v10 = vld [vmem:[%s170_s1 + $0x18] sm:$0xff] }
   0x3   :  { %v29_v8 = vpack.c.bf16 %v24_v6, %v23_v3  ;;  %v28_v11 = vpack.c.bf16 %v22_v10, %v21_v9  ;;  %v19_v12 = vld [vmem:[%s170_s1] sm:$0xff]  ;;  %v20_v13 = vld [vmem:[%s170_s1 + $0x8] sm:$0xff]  ;;  %v82_v19 = vshrl.u32 %v81_v18, 7 }
   0x4   :  { %99 = vmatpush3.bf16.msra.mxu0 %v30_v5  ;;  %v27_v15 = vpack.c.bf16 %v20_v13, %v19_v12  ;;  %v17_v16 = vld [vmem:[%s172_s0] sm:$0x1] }
   0x5   :  { %100 = vmatprep.subr.bf16.mxu0 %v114_v0  ;;  %v18_v17 = vpack.c.bf16 %v17_v16, %v17_v16  ;;  %v83_v20 = vsub.s32 0, %v82_v19 }
   0x8   :  { %101 = vmatpush3.bf16.msra.mxu0 %v29_v8 }
   0x9   :  { %102 = vmatprep.subr.bf16.mxu0 %v114_v0  ;;  %v75_v14 = vld [vmem:[#allocation2] sm:$0x1] }
   0xa   :  { %78 = vperm.xlu0 %113, %v75_v14  }
   0xc   :  { %103 = vmatpush3.bf16.msra.mxu0 %v28_v11 }
   0xd   :  { %104 = vmatprep.subr.bf16.mxu0 %v114_v0 }
  0x10   :  { %105 = vmatpush3.bf16.msra.mxu0 %v27_v15 }
  0x13   :  { %107 = vmatmul.mubr.msk.bf16.vlgmr.msra.gmra.mxu0 %vm31_vm1, %v18_v17 }
  0x85   :  { %v79_v21 = vpop.permute.xlu0 %78 }
  0x86   :  { %v84_v22 = vrot.slane %v79_v21, %v83_v20 }
  0xd3   :  { %v69_v23 = vpop.f32.mrf.mxu0 }
  0xd4   :  { %v85_v24 = vmul.f32 %v84_v22, %v69_v23 }
  0xd5   :  { %v108_v25 = vpop.f32.mrf.mxu0 }
  0xd6   :  { %87 = vst.msk [vmem:[%s173_s3] sm:$0x1] %vm86_vm2, %v85_v24 }
  0xd7   :  { %v72_v26 = vpop.f32.mrf.mxu0 }
  0xd9   :  { %v109_v27 = vpop.f32.mrf.mxu0 }

// kernel: _forward_core.2
= control target key start
LH: loop header
LB: loop body
LE: loop exit
PB: predicated region body
PF: predicated region fallthrough
CT: control target
= control target key end

     0   :  { %vm62_vm0 = vcmask 1040384   ;;  %vm63_vm1 = vcmask 1041408   ;;  %vm55_vm2 = vcmask 23552   ;;  %v149_v1 = vmov 65535   ;;  %s206_s0 = inlined_call_operand.vmem [shape: f32[3,128], index: 0, kind: input, shape index: {}]   ;;  %s207_s1 = inlined_call_operand.vmem [shape: bf16[32,3], index: 1, kind: input, shape index: {}]   ;;  %s208_s2 = inlined_call_operand.vmem [shape: f32[32,1], index: 2, kind: input, shape index: {}]   ;;  %s209_s3 = inlined_call_operand.vmem [shape: f32[32,128], index: 3, kind: output, shape index: {}]  }
   0x1   :  { %v19_v0 = vld [vmem:[%s206_s0] sm:$0x7]  ;;  %v64_v2 = vsel %vm62_vm0, 4294967295, %v149_v1  ;;  %v23_v6 = vld [vmem:[%s208_s2 + $0x10] sm:$0xff]  ;;  %v150_v9 = vmov 0   ;;  %v148_v10 = vld [vmem:[%s207_s1 + $0x8] sm:$0xff]  }
   0x2   :  { %v147_v3 = vld [vmem:[%s207_s1] sm:$0xff]   ;;  %v20_v4 = vpack.c.bf16 %v19_v0, %v19_v0  ;;  %v65_v5 = vsel %vm63_vm1, %v64_v2, 0  ;;  %146 = vset.pattern.permute.xlu1 %v150_v9  ;;  %145 = vset.pattern.permute.xlu0 %v150_v9  ;;  %v24_v11 = vld [vmem:[%s208_s2 + $0x18] sm:$0xff]  ;;  %v22_v12 = vld [vmem:[%s208_s2 + $0x8] sm:$0xff] }
   0x3   :  { %139 = vmatprep.mubr.msk.bf16.mxu0 %vm55_vm2, %v147_v3  ;;  %v21_v7 = vld [vmem:[%s208_s2] sm:$0xff]  ;;  %37 = vperm.xlu1 %146, %v23_v6  }
   0x4   :  { %v67_v8 = vand.u32 %v65_v5, %v20_v4  ;;  %27 = vperm.xlu0 %145, %v21_v7  }
   0x6   :  { %137 = vmatprep.subr.bf16.mxu0 %v67_v8 }
   0x7   :  { %138 = vmatpush3.bf16.msra.mxu0 %v67_v8  ;;  %42 = vperm.xlu1 %146, %v24_v11  }
   0x8   :  { %32 = vperm.xlu0 %145, %v22_v12  }
   0xa   :  { %140 = vmatmul.mubr.msk.bf16.vlgmr.msra.gmra.mxu0 %vm55_vm2, %v148_v10 }
  0x7e   :  { %v38_v13 = vpop.permute.xlu1 %37 }
  0x7f   :  { %v28_v14 = vpop.permute.xlu0 %27 }
  0x82   :  { %v43_v20 = vpop.permute.xlu1 %42 }
  0x83   :  { %v33_v24 = vpop.permute.xlu0 %32 }
  0xca   :  { %v141_v15 = vpop.f32.mrf.mxu0 }
  0xcb   :  { %v112_v16 = vadd.f32 %v141_v15, %v38_v13 }
  0xcc   :  { %v103_v17 = vpop.f32.mrf.mxu0 }
  0xcd   :  { %v120_v18 = vmax.f32 %v112_v16, 0.0  ;;  %v104_v19 = vadd.f32 %v103_v17, %v28_v14 }
  0xce   :  { %v142_v21 = vpop.f32.mrf.mxu0 }
  0xcf   :  { %124 = vst [vmem:[%s209_s3 + $0x10] sm:$0xff] %v120_v18  ;;  %v118_v22 = vmax.f32 %v104_v19, 0.0  ;;  %v115_v23 = vadd.f32 %v142_v21, %v43_v20 }
  0xd0   :  { %v106_v25 = vpop.f32.mrf.mxu0 }
  0xd1   :  { %122 = vst [vmem:[%s209_s3] sm:$0xff] %v118_v22  ;;  %v121_v26 = vmax.f32 %v115_v23, 0.0  ;;  %v107_v27 = vadd.f32 %v106_v25, %v33_v24 }
  0xd3   :  { %125 = vst [vmem:[%s209_s3 + $0x18] sm:$0xff] %v121_v26  ;;  %v119_v28 = vmax.f32 %v107_v27, 0.0 }
  0xd5   :  { %123 = vst [vmem:[%s209_s3 + $0x8] sm:$0xff] %v119_v28 }

// kernel: branch_0_fun.1
= control target key start
LH: loop header
LB: loop body
LE: loop exit
PB: predicated region body
PF: predicated region fallthrough
CT: control target
= control target key end

     0   :  { %v121_v0 = vmov 0.0   ;;  %vm122_vm0 = vmmov 0   ;;  %vm23_vm1 = vcmask 261120   ;;  %s164_s2 = inlined_call_operand.vmem [shape: f32[1,32,128], index: 2, kind: input, shape index: {}]   ;;  %s165_s0 = inlined_call_operand.vmem [shape: f32[1,32], index: 0, kind: input, shape index: {}]   ;;  %s166_s1 = inlined_call_operand.vmem [shape: f32[1,128], index: 1, kind: input, shape index: {}]   ;;  %s167_s3 = inlined_call_operand.vmem [shape: f32[1,128], index: 3, kind: output, shape index: {}]  }
   0x1   :  { %105 = vmatprep.subr.bf16.mxu0 %v121_v0  ;;  %v17_v1 = vld [vmem:[%s164_s2 + $0x10] sm:$0xff]  ;;  %v18_v2 = vld [vmem:[%s164_s2 + $0x18] sm:$0xff]  ;;  %v15_v3 = vld [vmem:[%s164_s2] sm:$0xff]  ;;  %109 = vmatprep.mubr.msk.bf16.mxu0 %vm122_vm0, %v121_v0 }
   0x2   :  { %v22_v4 = vpack.c.bf16 %v18_v2, %v17_v1  ;;  %v16_v5 = vld [vmem:[%s164_s2 + $0x8] sm:$0xff]  ;;  %v67_v6 = vmul.f32 %v15_v3, %v15_v3  ;;  %v69_v7 = vmul.f32 %v17_v1, %v17_v1  ;;  %v19_v10 = vld [vmem:[%s165_s0] sm:$0x1]  ;;  %v70_v11 = vmul.f32 %v18_v2, %v18_v2 }
   0x3   :  { %v68_v8 = vmul.f32 %v16_v5, %v16_v5  ;;  %v21_v9 = vpack.c.bf16 %v16_v5, %v15_v3  ;;  %v20_v14 = vpack.c.bf16 %v19_v10, %v19_v10  ;;  %v85_v28 = vld [vmem:[%s166_s1] sm:$0x1] }
   0x4   :  { %106 = vmatpush3.bf16.msra.mxu0 %v22_v4 }
   0x5   :  { %107 = vmatprep.subr.bf16.mxu0 %v121_v0  ;;  %v71_v12 = vadd.f32 %v68_v8, %v67_v6 }
   0x7   :  { %v72_v13 = vadd.f32 %v71_v12, %v69_v7 }
   0x8   :  { %108 = vmatpush3.bf16.msra.mxu0 %v21_v9 }
   0x9   :  { %v73_v15 = vadd.f32 %v72_v13, %v70_v11 }
   0xb   :  { %110 = vmatmul.mubr.msk.bf16.vlgmr.msra.gmra.mxu0 %vm23_vm1, %v20_v14  ;;  %v74_v16 = vrot.slane %v73_v15, 4 }
   0xd   :  { %v75_v17 = vadd.f32 %v74_v16, %v73_v15 }
   0xf   :  { %v76_v18 = vrot.slane %v75_v17, 2 }
  0x11   :  { %v77_v19 = vadd.f32 %v76_v18, %v75_v17 }
  0x13   :  { %v78_v20 = vrot.slane %v77_v19, 1 }
  0x15   :  { %v79_v21 = vadd.f32 %v78_v20, %v77_v19 }
  0x17   :  { %v80_v22 = vmax.f32 %v79_v21, 1e-16 }
  0x19   :  { %115 = vrsqrt.f32 %v80_v22 }
  0x26   :  { %v116_v23 = vpop.eup %115 }
  0xcb   :  { %v61_v24 = vpop.f32.mrf.mxu0 }
  0xcc   :  { %v82_v25 = vmul.f32 %v116_v23, %v61_v24 }
  0xcd   :  { %v111_v26 = vpop.f32.mrf.mxu0 }
  0xce   :  { %v83_v27 = vsub.f32 0.0, %v82_v25 }
  0xcf   :  { %v64_v29 = vpop.f32.mrf.mxu0 }
  0xd0   :  { %v84_v30 = vmul.f32 20.0, %v83_v27 }
  0xd1   :  { %v112_v31 = vpop.f32.mrf.mxu0 }
  0xd2   :  { %v86_v32 = vsub.f32 %v84_v30, %v85_v28 }
  0xd4   :  { %v101_v33 = vmul.f32 -0.5, %v86_v32 }
  0xd6   :  { %v89_v34 = vmul.f32 1.442695, %v101_v33 }
  0xd8   :  { %117 = vpow2.f32 %v89_v34 }
  0xe5   :  { %v118_v35 = vpop.eup %117 }
  0xe6   :  { %v91_v36 = vadd.f32 1.0, %v118_v35 }
  0xe8   :  { %119 = vrcp.f32 %v91_v36 }
  0xf5   :  { %v120_v37 = vpop.eup %119 }
  0xf6   :  { %v94_v38 = vsub.f32 1.0, %v120_v37 }
  0xf8   :  { %95 = vst [vmem:[%s167_s3] sm:$0x1] %v94_v38 }

// kernel: branch_1_fun.6
= control target key start
LH: loop header
LB: loop body
LE: loop exit
PB: predicated region body
PF: predicated region fallthrough
CT: control target
= control target key end

     0   :  { %s1137_s21 = smov 0   ;;  %s1139_s22 = smov 0   ;;  %s1442_s0 = inlined_call_operand.vmem [shape: f32[2,64,1], index: 0, kind: input, shape index: {}]   ;;  %s1443_s1 = inlined_call_operand.vmem [shape: f32[2,64,1], index: 1, kind: input, shape index: {}]   ;;  %s1444_s2 = inlined_call_operand.vmem [shape: f32[2,64,1], index: 2, kind: input, shape index: {}]   ;;  %s1445_s3 = inlined_call_operand.vmem [shape: f32[2,1,256], index: 3, kind: input, shape index: {}]   ;;  %s1446_s4 = inlined_call_operand.vmem [shape: f32[2,1,256], index: 4, kind: input, shape index: {}]   ;;  %s1447_s5 = inlined_call_operand.vmem [shape: f32[2,256,32], index: 5, kind: input, shape index: {}]   ;;  %s1448_s6 = inlined_call_operand.vmem [shape: f32[2,64,32], index: 6, kind: output, shape index: {}]  }
   0x1   :  { %s1141_s23 = smov 0  }
   0x2 LB: > { %s28_s24 = sadd.s32 1, %s1094_s22  ;;  %p972_p0 = scmp.ge.s32.totalorder %s1098_s23, 1  ;;  %s1098_s23 = sphi %s1141_s23, %s16_s23   ;;  %s1094_s22 = sphi %s1139_s22, %s1480_s22   ;;  %s1090_s21 = sphi %s1137_s21, %s1479_s21  }
   0x3   : > { %p30_p1 = scmp.ge.s32.totalorder %s28_s24, 2  ;;  %p293_p2 = scmp.lt.s32.totalorder %s1098_s23, 3 }
   0x5   : > { %s1482_s24 = smov (%p30_p1, %s28_s24), 0  ;;  %p294_p3 = pnand %p972_p0, %p293_p2 }
   0x6   : > { %p358_p4 = scmp.lt.s32.totalorder (!%p294_p3), %s1090_s21, 1 }
   0x7   : > { %297 = sbr.rel (%p294_p3) target bundleno = 402 (0x192), region = 44 }
   0xc   : > { %v1100_v0 = vmov 0   ;;  %s1484_s21 = smov (!%p358_p4, %s1090_s21), 1 }
   0xd   : > { %1075 = vset.pattern.permute.xlu1 %v1100_v0  ;;  %1074 = vset.pattern.permute.xlu0 %v1100_v0  ;;  %s1158_s25 = sshll.u32 %s1484_s21, 6  ;;  %s990_s29 = sshll.u32 %s1484_s21, 8 }
   0xe   : > { %s1164_s28 = scalar_lea.vmem %s1442_s0, %s1158_s25  ;;  %s1175_s8 = scalar_lea.vmem %s1443_s1, %s1158_s25 }
   0xf   : > { %v426_v1 = vld [vmem:[%s1164_s28 + $0x20] sm:$0xff]  ;;  %v427_v3 = vld [vmem:[%s1164_s28 + $0x28] sm:$0xff]  ;;  %s1180_s11 = scalar_lea.vmem %s1447_s5, %s990_s29  ;;  %s1196_s14 = scalar_lea.vmem %s1444_s2, %s1158_s25  ;;  %v425_v38 = vld [vmem:[%s1164_s28 + $0x18] sm:$0xff] }
  0x10   : > { %v422_v2 = vld [vmem:[%s1164_s28] sm:$0xff]  ;;  %471 = vperm.xlu1 %1075, %v426_v1   ;;  %v423_v4 = vld [vmem:[%s1164_s28 + $0x8] sm:$0xff]  ;;  %v714_v8 = vld [vmem:[%s1180_s11 + $0xf0] sm:$0xff]  ;;  %s979_s15 = sshll.u32 %s1484_s21, 1 }
  0x11   : > { %451 = vperm.xlu0 %1074, %v422_v2   ;;  %v431_v5 = vld [vmem:[%s1175_s8 + $0x8] sm:$0xff]  ;;  %v430_v6 = vld [vmem:[%s1175_s8] sm:$0xff]  ;;  %v715_v9 = vld [vmem:[%s1180_s11 + $0xf8] sm:$0xff]  ;;  %s389_s18 = scalar_lea.vmem %s1446_s4, %s979_s15  ;;  %s380_s26 = scalar_lea.vmem %s1445_s3, %s979_s15 }
  0x12   : > { %v435_v7 = vld [vmem:[%s1175_s8 + $0x28] sm:$0xff]  ;;  %v698_v10 = vld [vmem:[%s1180_s11 + $0x70] sm:$0xff]  ;;  %v699_v11 = vld [vmem:[%s1180_s11 + $0x78] sm:$0xff]  ;;  %v731_v13 = vpack.c.bf16 %v715_v9, %v714_v8  ;;  %v439_v9 = vlaneseq }
  0x13   : > { %v434_v12 = vld [vmem:[%s1175_s8 + $0x20] sm:$0xff]  ;;  %v723_v14 = vpack.c.bf16 %v699_v11, %v698_v10  ;;  %v713_v16 = vld [vmem:[%s1180_s11 + $0xe8] sm:$0xff]  ;;  %v710_v20 = vld [vmem:[%s1180_s11 + $0xd0] sm:$0xff] }
  0x14   : > { %476 = vperm.xlu1 %1075, %v427_v3   ;;  %v712_v15 = vld [vmem:[%s1180_s11 + $0xe0] sm:$0xff]  ;;  %v697_v19 = vld [vmem:[%s1180_s11 + $0x68] sm:$0xff]  ;;  %992 = vmatprep.subr.bf16.mxu0 %v731_v13  ;;  %v711_v21 = vld [vmem:[%s1180_s11 + $0xd8] sm:$0xff]  ;;  %v440_v10 = vshrl.u32 %v439_v9, 7 }
  0x15   : > { %456 = vperm.xlu0 %1074, %v423_v4   ;;  %v730_v17 = vpack.c.bf16 %v713_v16, %v712_v15  ;;  %v696_v18 = vld [vmem:[%s1180_s11 + $0x60] sm:$0xff]  ;;  %1032 = vmatprep.subr.bf16.mxu1 %v731_v13  ;;  %v605_v22 = vld [vmem:[%s1196_s14 + $0x8] sm:$0xff]  ;;  %v729_v25 = vpack.c.bf16 %v711_v21, %v710_v20  ;;  %v694_v26 = vld [vmem:[%s1180_s11 + $0x50] sm:$0xff] }
  0x16   : > { %v604_v23 = vld [vmem:[%s1196_s14] sm:$0xff]  ;;  %993 = vmatpush3.bf16.msra.mxu0 %v723_v14  ;;  %1040 = vmatpush3.bf16.msra.mxu1 %v723_v14  ;;  %v722_v24 = vpack.c.bf16 %v697_v19, %v696_v18  ;;  %v695_v27 = vld [vmem:[%s1180_s11 + $0x58] sm:$0xff]  ;;  %v709_v29 = vld [vmem:[%s1180_s11 + $0xc8] sm:$0xff]  ;;  %v441_v13 = vsub.s32 0, %v440_v10  ;;  %v445_v14 = vsub.s32 1, %v440_v10 }
  0x17   : > { %994 = vmatprep.subr.bf16.mxu0 %v730_v17  ;;  %1033 = vmatprep.subr.bf16.mxu1 %v730_v17  ;;  %v708_v28 = vld [vmem:[%s1180_s11 + $0xc0] sm:$0xff]  ;;  %v609_v30 = vld [vmem:[%s1196_s14 + $0x28] sm:$0xff]  ;;  %v721_v32 = vpack.c.bf16 %v695_v27, %v694_v26  ;;  %v706_v36 = vld [vmem:[%s1180_s11 + $0xb0] sm:$0xff] }
  0x18   : > { %512 = vperm.xlu1 %1075, %v431_v5   ;;  %v608_v31 = vld [vmem:[%s1196_s14 + $0x20] sm:$0xff]  ;;  %v728_v33 = vpack.c.bf16 %v709_v29, %v708_v28  ;;  %v693_v35 = vld [vmem:[%s1180_s11 + $0x48] sm:$0xff]  ;;  %v707_v37 = vld [vmem:[%s1180_s11 + $0xb8] sm:$0xff] }
  0x19   : > { %507 = vperm.xlu0 %1074, %v430_v6   ;;  %v692_v34 = vld [vmem:[%s1180_s11 + $0x40] sm:$0xff]  ;;  %v424_v39 = vld [vmem:[%s1164_s28 + $0x10] sm:$0xff]  ;;  %v727_v41 = vpack.c.bf16 %v707_v37, %v706_v36  ;;  %v691_v43 = vld [vmem:[%s1180_s11 + $0x38] sm:$0xff] }
  0x1a   : > { %995 = vmatpush3.bf16.msra.mxu0 %v722_v24  ;;  %1041 = vmatpush3.bf16.msra.mxu1 %v722_v24  ;;  %v720_v40 = vpack.c.bf16 %v693_v35, %v692_v34  ;;  %v690_v42 = vld [vmem:[%s1180_s11 + $0x30] sm:$0xff]  ;;  %v704_v44 = vld [vmem:[%s1180_s11 + $0xa0] sm:$0xff]  ;;  %v705_v45 = vld [vmem:[%s1180_s11 + $0xa8] sm:$0xff] }
  0x1b   : > { %996 = vmatprep.subr.bf16.mxu0 %v729_v25  ;;  %1034 = vmatprep.subr.bf16.mxu1 %v729_v25  ;;  %v429_v46 = vld [vmem:[%s1164_s28 + $0x38] sm:$0xff]  ;;  %v428_v47 = vld [vmem:[%s1164_s28 + $0x30] sm:$0xff]  ;;  %v719_v48 = vpack.c.bf16 %v691_v43, %v690_v42  ;;  %v726_v49 = vpack.c.bf16 %v705_v45, %v704_v44  ;;  %v688_v50 = vld [vmem:[%s1180_s11 + $0x20] sm:$0xff]  ;;  %s1410_s28 = scalar_lea.vmem %s1448_s6, %s1158_s25 }
  0x1c   : > { %532 = vperm.xlu1 %1075, %v435_v7   ;;  %v689_v51 = vld [vmem:[%s1180_s11 + $0x28] sm:$0xff]  ;;  %v702_v52 = vld [vmem:[%s1180_s11 + $0x90] sm:$0xff]  ;;  %v703_v53 = vld [vmem:[%s1180_s11 + $0x98] sm:$0xff] }
  0x1d   : > { %527 = vperm.xlu0 %1074, %v434_v12   ;;  %v433_v54 = vld [vmem:[%s1175_s8 + $0x18] sm:$0xff]  ;;  %v432_v55 = vld [vmem:[%s1175_s8 + $0x10] sm:$0xff]  ;;  %v718_v56 = vpack.c.bf16 %v689_v51, %v688_v50  ;;  %v725_v57 = vpack.c.bf16 %v703_v53, %v702_v52  ;;  %v700_v60 = vld [vmem:[%s1180_s11 + $0x80] sm:$0xff] }
  0x1e   : > { %997 = vmatpush3.bf16.msra.mxu0 %v721_v32  ;;  %1042 = vmatpush3.bf16.msra.mxu1 %v721_v32  ;;  %v686_v58 = vld [vmem:[%s1180_s11 + $0x10] sm:$0xff]  ;;  %v687_v59 = vld [vmem:[%s1180_s11 + $0x18] sm:$0xff]  ;;  %v701_v61 = vld [vmem:[%s1180_s11 + $0x88] sm:$0xff] }
  0x1f   : > { %998 = vmatprep.subr.bf16.mxu0 %v728_v33  ;;  %1035 = vmatprep.subr.bf16.mxu1 %v728_v33  ;;  %v437_v62 = vld [vmem:[%s1175_s8 + $0x38] sm:$0xff]  ;;  %v436_v63 = vld [vmem:[%s1175_s8 + $0x30] sm:$0xff]  ;;  %v717_v0 = vpack.c.bf16 %v687_v59, %v686_v58  ;;  %v724_v1 = vpack.c.bf16 %v701_v61, %v700_v60  ;;  %v684_v2 = vld [vmem:[%s1180_s11] sm:$0xff] }
  0x20   : > { %619 = vperm.xlu1 %1075, %v605_v22   ;;  %v685_v3 = vld [vmem:[%s1180_s11 + $0x8] sm:$0xff]  ;;  %v607_v4 = vld [vmem:[%s1196_s14 + $0x18] sm:$0xff]  ;;  %v606_v5 = vld [vmem:[%s1196_s14 + $0x10] sm:$0xff] }
  0x21   : > { %614 = vperm.xlu0 %1074, %v604_v23   ;;  %v716_v6 = vpack.c.bf16 %v685_v3, %v684_v2  ;;  %v611_v7 = vld [vmem:[%s1196_s14 + $0x38] sm:$0xff]  ;;  %v610_v8 = vld [vmem:[%s1196_s14 + $0x30] sm:$0xff]  ;;  %v420_v15 = vld [vmem:[%s389_s18] sm:$0x3] }
  0x22   : > { %999 = vmatpush3.bf16.msra.mxu0 %v720_v40  ;;  %1043 = vmatpush3.bf16.msra.mxu1 %v720_v40  ;;  %v1247_v18 = vrot.slane %v420_v15, %v441_v13  ;;  %v1249_v19 = vrot.slane %v420_v15, %v445_v14  ;;  %v421_v22 = vld [vmem:[%s380_s26] sm:$0x3] }
  0x23   : > { %1000 = vmatprep.subr.bf16.mxu0 %v727_v41  ;;  %1036 = vmatprep.subr.bf16.mxu1 %v727_v41  ;;  %v1266_v25 = vrot.slane %v421_v22, %v441_v13  ;;  %v1268_v26 = vrot.slane %v421_v22, %v445_v14 }
  0x24   : > { %639 = vperm.xlu1 %1075, %v609_v30  }
  0x25   : > { %634 = vperm.xlu0 %1074, %v608_v31  }
  0x26   : > { %1001 = vmatpush3.bf16.msra.mxu0 %v719_v48  ;;  %1044 = vmatpush3.bf16.msra.mxu1 %v719_v48 }
  0x27   : > { %1002 = vmatprep.subr.bf16.mxu0 %v726_v49  ;;  %1037 = vmatprep.subr.bf16.mxu1 %v726_v49 }
  0x28   : > { %466 = vperm.xlu1 %1075, %v425_v38  }
  0x29   : > { %461 = vperm.xlu0 %1074, %v424_v39  }
  0x2a   : > { %1003 = vmatpush3.bf16.msra.mxu0 %v718_v56  ;;  %1045 = vmatpush3.bf16.msra.mxu1 %v718_v56 }
  0x2b   : > { %1004 = vmatprep.subr.bf16.mxu0 %v725_v57  ;;  %1038 = vmatprep.subr.bf16.mxu1 %v725_v57 }
  0x2c   : > { %486 = vperm.xlu1 %1075, %v429_v46  }
  0x2d   : > { %481 = vperm.xlu0 %1074, %v428_v47  }
  0x2e   : > { %1005 = vmatpush3.bf16.msra.mxu0 %v717_v0  ;;  %1046 = vmatpush3.bf16.msra.mxu1 %v717_v0 }
  0x2f   : > { %1006 = vmatprep.subr.bf16.mxu0 %v724_v1  ;;  %1039 = vmatprep.subr.bf16.mxu1 %v724_v1 }
  0x30   : > { %522 = vperm.xlu1 %1075, %v433_v54  }
  0x31   : > { %517 = vperm.xlu0 %1074, %v432_v55  }
  0x32   : > { %1007 = vmatpush3.bf16.msra.mxu0 %v716_v6  ;;  %1047 = vmatpush3.bf16.msra.mxu1 %v716_v6 }
  0x34   : > { %542 = vperm.xlu1 %1075, %v437_v62  }
  0x35   : > { %537 = vperm.xlu0 %1074, %v436_v63  }
  0x38   : > { %629 = vperm.xlu1 %1075, %v607_v4  }
  0x39   : > { %624 = vperm.xlu0 %1074, %v606_v5  }
  0x3c   : > { %649 = vperm.xlu1 %1075, %v611_v7  }
  0x3d   : > { %644 = vperm.xlu0 %1074, %v610_v8  }
  0x8b   : > { %v472_v11 = vpop.permute.xlu1 %471 }
  0x8c   : > { %v452_v12 = vpop.permute.xlu0 %451 }
  0x8d   : > { %vm489_vm7 = vcmp.ge.f32.partialorder %v1247_v18, %v452_v12  ;;  %vm490_vm9 = vcmp.ge.f32.partialorder %v1249_v19, %v452_v12 }
  0x8f   : > { %v477_v16 = vpop.permute.xlu1 %476 }
  0x90   : > { %v457_v17 = vpop.permute.xlu0 %456  ;;  %vm499_vm11 = vcmp.ge.f32.partialorder %v1247_v18, %v477_v16 }
  0x91   : > { %vm491_vm0 = vcmp.ge.f32.partialorder %v1247_v18, %v457_v17  ;;  %vm492_vm4 = vcmp.ge.f32.partialorder %v1249_v19, %v457_v17 }
  0x93   : > { %v513_v20 = vpop.permute.xlu1 %512 }
  0x94   : > { %v508_v21 = vpop.permute.xlu0 %507  ;;  %vm547_vm1 = vcmp.lt.f32.partialorder %v1247_v18, %v513_v20  ;;  %vm548_vm2 = vcmp.lt.f32.partialorder %v1249_v19, %v513_v20 }
  0x95   : > { %vm545_vm3 = vcmp.lt.f32.partialorder %v1247_v18, %v508_v21  ;;  %vm1256_vm5 = vmand %vm491_vm0, %vm547_vm1  ;;  %vm546_vm6 = vcmp.lt.f32.partialorder %v1249_v19, %v508_v21  ;;  %vm500_vm0 = vcmp.ge.f32.partialorder %v1249_v19, %v477_v16 }
  0x96   : > { %vm1262_vm8 = vmand %vm492_vm4, %vm548_vm2  ;;  %vm498_vm4 = vcmp.ge.f32.partialorder %v1249_v19, %v472_v11  ;;  %v590_v35 = vsel %vm1256_vm5, %v1266_v25, 0.0 }
  0x97   : > { %vm1271_vm10 = vmand %vm489_vm7, %vm545_vm3  ;;  %v533_v28 = vpop.permute.xlu1 %532  ;;  %vm497_vm3 = vcmp.ge.f32.partialorder %v1247_v18, %v472_v11  ;;  %v591_v36 = vsel %vm1262_vm8, %v1268_v26, 0.0 }
  0x98   : > { %v528_v29 = vpop.permute.xlu0 %527  ;;  %vm1276_vm12 = vmand %vm490_vm9, %vm546_vm6  ;;  %vm555_vm13 = vcmp.lt.f32.partialorder %v1247_v18, %v533_v28  ;;  %vm556_vm14 = vcmp.lt.f32.partialorder %v1249_v19, %v533_v28  ;;  %v588_v37 = vsel %vm1271_vm10, %v1266_v25, 0.0 }
  0x99   : > { %vm553_vm15 = vcmp.lt.f32.partialorder %v1247_v18, %v528_v29  ;;  %vm1284_vm1 = vmand %vm499_vm11, %vm555_vm13  ;;  %vm554_vm2 = vcmp.lt.f32.partialorder %v1249_v19, %v528_v29  ;;  %v589_v38 = vsel %vm1276_vm12, %v1268_v26, 0.0 }
  0x9a   : > { %vm1291_vm6 = vmand %vm500_vm0, %vm556_vm14  ;;  %v598_v47 = vsel %vm1284_vm1, %v1266_v25, 0.0 }
  0x9b   : > { %vm1295_vm7 = vmand %vm497_vm3, %vm553_vm15  ;;  %v620_v34 = vpop.permute.xlu1 %619  ;;  %v599_v48 = vsel %vm1291_vm6, %v1268_v26, 0.0 }
  0x9c   : > { %v615_v39 = vpop.permute.xlu0 %614  ;;  %vm1311_vm9 = vmand %vm498_vm4, %vm554_vm2  ;;  %v654_v41 = vmul.f32 %v620_v34, %v590_v35  ;;  %v655_v42 = vmul.f32 %v620_v34, %v591_v36  ;;  %v596_v50 = vsel %vm1295_vm7, %v1266_v25, 0.0  ;;  %v1101_v36 = vmov 0.0  }
  0x9d   : > { %v652_v43 = vmul.f32 %v615_v39, %v588_v37  ;;  %v653_v44 = vmul.f32 %v615_v39, %v589_v38  ;;  %v597_v51 = vsel %vm1311_vm9, %v1268_v26, 0.0 }
  0x9f   : > { %v676_v45 = vpack.c.bf16 %v654_v41, %v652_v43  ;;  %v677_v46 = vpack.c.bf16 %v655_v42, %v653_v44  ;;  %v640_v49 = vpop.permute.xlu1 %639 }
  0xa0   : > { %v635_v52 = vpop.permute.xlu0 %634  ;;  %v662_v53 = vmul.f32 %v640_v49, %v598_v47  ;;  %v663_v54 = vmul.f32 %v640_v49, %v599_v48 }
  0xa1   : > { %v660_v55 = vmul.f32 %v635_v52, %v596_v50  ;;  %v661_v56 = vmul.f32 %v635_v52, %v597_v51  ;;  %764 = vmatprep.mubr.bf16.mxu0 %v677_v46 }
  0xa2   : > { %765 = vmatmul.mubr.bf16.vlgmr.msra.gmra.mxu0 %v676_v45 }
  0xa3   : > { %v680_v57 = vpack.c.bf16 %v662_v53, %v660_v55  ;;  %v681_v58 = vpack.c.bf16 %v663_v54, %v661_v56  ;;  %v467_v59 = vpop.permute.xlu1 %466 }
  0xa4   : > { %v462_v60 = vpop.permute.xlu0 %461  ;;  %vm495_vm5 = vcmp.ge.f32.partialorder %v1247_v18, %v467_v59  ;;  %vm496_vm12 = vcmp.ge.f32.partialorder %v1249_v19, %v467_v59 }
  0xa5   : > { %780 = vmatprep.mubr.bf16.mxu1 %v681_v58  ;;  %vm493_vm15 = vcmp.ge.f32.partialorder %v1247_v18, %v462_v60  ;;  %vm494_vm1 = vcmp.ge.f32.partialorder %v1249_v19, %v462_v60 }
  0xa6   : > { %781 = vmatmul.mubr.bf16.vlgmr.msra.gmra.mxu1 %v680_v57 }
  0xa7   : > { %v487_v61 = vpop.permute.xlu1 %486 }
  0xa8   : > { %v482_v62 = vpop.permute.xlu0 %481  ;;  %vm503_vm3 = vcmp.ge.f32.partialorder %v1247_v18, %v487_v61 }
  0xab   : > { %v523_v63 = vpop.permute.xlu1 %522 }
  0xac   : > { %v518_v0 = vpop.permute.xlu0 %517  ;;  %vm551_vm8 = vcmp.lt.f32.partialorder %v1247_v18, %v523_v63  ;;  %vm552_vm10 = vcmp.lt.f32.partialorder %v1249_v19, %v523_v63 }
  0xad   : > { %vm549_vm11 = vcmp.lt.f32.partialorder %v1247_v18, %v518_v0  ;;  %vm1332_vm13 = vmand %vm495_vm5, %vm551_vm8  ;;  %vm550_vm14 = vcmp.lt.f32.partialorder %v1249_v19, %v518_v0  ;;  %vm504_vm5 = vcmp.ge.f32.partialorder %v1249_v19, %v487_v61 }
  0xae   : > { %vm1338_vm0 = vmand %vm496_vm12, %vm552_vm10  ;;  %vm502_vm12 = vcmp.ge.f32.partialorder %v1249_v19, %v482_v62  ;;  %v594_v9 = vsel %vm1332_vm13, %v1266_v25, 0.0 }
  0xaf   : > { %vm1343_vm2 = vmand %vm493_vm15, %vm549_vm11  ;;  %v543_v4 = vpop.permute.xlu1 %542  ;;  %vm501_vm11 = vcmp.ge.f32.partialorder %v1247_v18, %v482_v62  ;;  %v595_v10 = vsel %vm1338_vm0, %v1268_v26, 0.0  ;;  %vm411_vm0 = vcmask 261120  }
  0xb0   : > { %v538_v5 = vpop.permute.xlu0 %537  ;;  %vm1348_vm4 = vmand %vm494_vm1, %vm550_vm14  ;;  %vm559_vm6 = vcmp.lt.f32.partialorder %v1247_v18, %v543_v4  ;;  %vm560_vm7 = vcmp.lt.f32.partialorder %v1249_v19, %v543_v4  ;;  %v592_v12 = vsel %vm1343_vm2, %v1266_v25, 0.0  ;;  %412 = vst.msk [vmem:[#allocation2] sm:$0xff] %vm411_vm0, %v1101_v36 }
  0xb1   : > { %vm557_vm9 = vcmp.lt.f32.partialorder %v1247_v18, %v538_v5  ;;  %vm558_vm8 = vcmp.lt.f32.partialorder %v1249_v19, %v538_v5  ;;  %vm1357_vm10 = vmand %vm503_vm3, %vm559_vm6  ;;  %v593_v13 = vsel %vm1348_vm4, %v1268_v26, 0.0  ;;  %413 = vst.msk [vmem:[#allocation2 + $0x8] sm:$0xff] %vm411_vm0, %v1101_v36 }
  0xb2   : > { %vm1363_vm14 = vmand %vm504_vm5, %vm560_vm7  ;;  %v602_v23 = vsel %vm1357_vm10, %v1266_v25, 0.0  ;;  %414 = vst.msk [vmem:[#allocation2 + $0x10] sm:$0xff] %vm411_vm0, %v1101_v36 }
  0xb3   : > { %v630_v11 = vpop.permute.xlu1 %629  ;;  %vm1379_vm15 = vmand %vm501_vm11, %vm557_vm9  ;;  %v603_v24 = vsel %vm1363_vm14, %v1268_v26, 0.0  ;;  %415 = vst.msk [vmem:[#allocation2 + $0x18] sm:$0xff] %vm411_vm0, %v1101_v36 }
  0xb4   : > { %v625_v14 = vpop.permute.xlu0 %624  ;;  %v658_v16 = vmul.f32 %v630_v11, %v594_v9  ;;  %v659_v17 = vmul.f32 %v630_v11, %v595_v10  ;;  %vm574_vm13 = vmand %vm502_vm12, %vm558_vm8  ;;  %v600_v28 = vsel %vm1379_vm15, %v1266_v25, 0.0  ;;  %416 = vst.msk [vmem:[#allocation2 + $0x20] sm:$0xff] %vm411_vm0, %v1101_v36 }
  0xb5   : > { %v656_v18 = vmul.f32 %v625_v14, %v592_v12  ;;  %v657_v20 = vmul.f32 %v625_v14, %v593_v13  ;;  %v601_v29 = vsel %vm574_vm13, %v1268_v26, 0.0  ;;  %417 = vst.msk [vmem:[#allocation2 + $0x28] sm:$0xff] %vm411_vm0, %v1101_v36  ;;  %418 = vst.msk [vmem:[#allocation2 + $0x30] sm:$0xff] %vm411_vm0, %v1101_v36 }
  0xb6   : > { %419 = vst.msk [vmem:[#allocation2 + $0x38] sm:$0xff] %vm411_vm0, %v1101_v36 }
  0xb7   : > { %v678_v21 = vpack.c.bf16 %v658_v16, %v656_v18  ;;  %v679_v22 = vpack.c.bf16 %v659_v17, %v657_v20  ;;  %v650_v27 = vpop.permute.xlu1 %649  ;;  %v668_v26 = vld [vmem:[#allocation2] sm:$0xff] }
  0xb8   : > { %v645_v30 = vpop.permute.xlu0 %644  ;;  %v666_v19 = vmul.f32 %v650_v27, %v602_v23  ;;  %v667_v31 = vmul.f32 %v650_v27, %v603_v24  ;;  %v669_v42 = vld [vmem:[#allocation2 + $0x8] sm:$0xff] }
  0xb9   : > { %v664_v32 = vmul.f32 %v645_v30, %v600_v28  ;;  %v665_v33 = vmul.f32 %v645_v30, %v601_v29  ;;  %772 = vmatprep.mubr.bf16.mxu0 %v679_v22  ;;  %v670_v60 = vld [vmem:[#allocation2 + $0x10] sm:$0xff] }
  0xba   : > { %773 = vmatmul.mubr.bf16.gmra.mxu0 %v678_v21  ;;  %v671_v2 = vld [vmem:[#allocation2 + $0x18] sm:$0xff] }
  0xbb   : > { %v682_v34 = vpack.c.bf16 %v666_v19, %v664_v32  ;;  %v683_v35 = vpack.c.bf16 %v667_v31, %v665_v33  ;;  %v672_v44 = vld [vmem:[#allocation2 + $0x20] sm:$0xff] }
  0xbc   : > { %v673_v51 = vld [vmem:[#allocation2 + $0x28] sm:$0xff]  ;;  %v674_v4 = vld [vmem:[#allocation2 + $0x30] sm:$0xff] }
  0xbd   : > { %788 = vmatprep.mubr.bf16.mxu1 %v683_v35  ;;  %v675_v11 = vld [vmem:[#allocation2 + $0x38] sm:$0xff] }
  0xbe   : > { %789 = vmatmul.mubr.bf16.gmra.mxu1 %v682_v34 }
 0x162   : > { %v1008_v25 = vpop.f32.mrf.mxu0 }
 0x164   : > { %v1009_v37 = vpop.f32.mrf.mxu0 }
 0x165   : > { %v1010_v38 = vadd.f32 %v1009_v37, %v1008_v25 }
 0x166   : > { %v1011_v39 = vpop.f32.mrf.mxu0  ;;  %v1020_v40 = vpop.f32.mrf.mxu1 }
 0x167   : > { %v797_v41 = vadd.f32 %v1010_v38, %v668_v26 }
 0x168   : > { %v1012_v43 = vpop.f32.mrf.mxu0  ;;  %v1021_v45 = vpop.f32.mrf.mxu1 }
 0x169   : > { %806 = vst.msk [vmem:[#allocation2] sm:$0xff] %vm411_vm0, %v797_v41  ;;  %v1013_v46 = vadd.f32 %v1012_v43, %v1011_v39  ;;  %v1022_v47 = vadd.f32 %v1021_v45, %v1020_v40 }
 0x16a   : > { %v1023_v48 = vpop.f32.mrf.mxu1 }
 0x16b   : > { %v798_v49 = vadd.f32 %v1013_v46, %v669_v42  ;;  %v801_v50 = vadd.f32 %v1022_v47, %v672_v44 }
 0x16c   : > { %v1024_v52 = vpop.f32.mrf.mxu1 }
 0x16d   : > { %807 = vst.msk [vmem:[#allocation2 + $0x8] sm:$0xff] %vm411_vm0, %v798_v49  ;;  %810 = vst.msk [vmem:[#allocation2 + $0x20] sm:$0xff] %vm411_vm0, %v801_v50  ;;  %v1025_v53 = vadd.f32 %v1024_v52, %v1023_v48 }
 0x16f   : > { %v802_v54 = vadd.f32 %v1025_v53, %v673_v51 }
 0x170   : > { %v817_v55 = vld [vmem:[#allocation2] sm:$0xff] }
 0x171   : > { %825 = vst.msk [vmem:[%s1410_s28] sm:$0xff] %vm411_vm0, %v817_v55  ;;  %811 = vst.msk [vmem:[#allocation2 + $0x28] sm:$0xff] %vm411_vm0, %v802_v54 }
 0x174   : > { %v818_v56 = vld [vmem:[#allocation2 + $0x8] sm:$0xff]  ;;  %v821_v57 = vld [vmem:[#allocation2 + $0x20] sm:$0xff] }
 0x175   : > { %826 = vst.msk [vmem:[%s1410_s28 + $0x8] sm:$0xff] %vm411_vm0, %v818_v56  ;;  %829 = vst.msk [vmem:[%s1410_s28 + $0x20] sm:$0xff] %vm411_vm0, %v821_v57 }
 0x178   : > { %v822_v58 = vld [vmem:[#allocation2 + $0x28] sm:$0xff] }
 0x179   : > { %830 = vst.msk [vmem:[%s1410_s28 + $0x28] sm:$0xff] %vm411_vm0, %v822_v58 }
 0x17a   : > { %v1014_v59 = vpop.f32.mrf.mxu0 }
 0x17c   : > { %v1015_v61 = vpop.f32.mrf.mxu0 }
 0x17d   : > { %v1016_v62 = vadd.f32 %v1015_v61, %v1014_v59 }
 0x17e   : > { %v1017_v63 = vpop.f32.mrf.mxu0  ;;  %v1026_v0 = vpop.f32.mrf.mxu1 }
 0x17f   : > { %v799_v1 = vadd.f32 %v1016_v62, %v670_v60 }
 0x180   : > { %v1018_v3 = vpop.f32.mrf.mxu0  ;;  %v1027_v5 = vpop.f32.mrf.mxu1 }
 0x181   : > { %808 = vst.msk [vmem:[#allocation2 + $0x10] sm:$0xff] %vm411_vm0, %v799_v1  ;;  %v1019_v6 = vadd.f32 %v1018_v3, %v1017_v63  ;;  %v1028_v7 = vadd.f32 %v1027_v5, %v1026_v0 }
 0x182   : > { %v1029_v8 = vpop.f32.mrf.mxu1 }
 0x183   : > { %v800_v9 = vadd.f32 %v1019_v6, %v671_v2  ;;  %v803_v10 = vadd.f32 %v1028_v7, %v674_v4 }
 0x184   : > { %v1030_v12 = vpop.f32.mrf.mxu1 }
 0x185   : > { %809 = vst.msk [vmem:[#allocation2 + $0x18] sm:$0xff] %vm411_vm0, %v800_v9  ;;  %812 = vst.msk [vmem:[#allocation2 + $0x30] sm:$0xff] %vm411_vm0, %v803_v10  ;;  %v1031_v13 = vadd.f32 %v1030_v12, %v1029_v8 }
 0x187   : > { %v804_v14 = vadd.f32 %v1031_v13, %v675_v11 }
 0x188   : > { %v819_v15 = vld [vmem:[#allocation2 + $0x10] sm:$0xff] }
 0x189   : > { %827 = vst.msk [vmem:[%s1410_s28 + $0x10] sm:$0xff] %vm411_vm0, %v819_v15  ;;  %813 = vst.msk [vmem:[#allocation2 + $0x38] sm:$0xff] %vm411_vm0, %v804_v14 }
 0x18c   : > { %v820_v16 = vld [vmem:[#allocation2 + $0x18] sm:$0xff]  ;;  %v823_v17 = vld [vmem:[#allocation2 + $0x30] sm:$0xff] }
 0x18d   : > { %828 = vst.msk [vmem:[%s1410_s28 + $0x18] sm:$0xff] %vm411_vm0, %v820_v16  ;;  %831 = vst.msk [vmem:[%s1410_s28 + $0x30] sm:$0xff] %vm411_vm0, %v823_v17 }
 0x190   : > { %v824_v18 = vld [vmem:[#allocation2 + $0x38] sm:$0xff] }
 0x191   : > { %832 = vst.msk [vmem:[%s1410_s28 + $0x38] sm:$0xff] %vm411_vm0, %v824_v18 }
 0x192 PF: > { %s16_s23 = sadd.s32 1, %s1098_s23   ;;  %s1479_s21 = smov %s1094_s22 }
 0x193   : > { %p13_p5 = scmp.ge.s32.totalorder %s16_s23, 4   ;;  %s1480_s22 = smov %s1482_s24 }
 0x195   :  { %15 = sbr.rel (!%p13_p5) target bundleno = 2 (0x2), region = 97 }

// kernel: branch_1_fun.7
= control target key start
LH: loop header
LB: loop body
LE: loop exit
PB: predicated region body
PF: predicated region fallthrough
CT: control target
= control target key end

     0   :  { %v1971_v2 = vmov 0   ;;  %vm136_vm0 = vcmask 785408   ;;  %v1972_v58 = vmov 0.0   ;;  %vm1973_vm1 = vmmov 0   ;;  %s2647_s2 = inlined_call_operand.vmem [shape: bf16[96,3], index: 2, kind: input, shape index: {}]   ;;  %s2648_s0 = inlined_call_operand.vmem [shape: f32[64,96], index: 0, kind: input, shape index: {}]   ;;  %s2649_s1 = inlined_call_operand.vmem [shape: f32[64,96], index: 1, kind: input, shape index: {}]   ;;  %s2650_s6 = inlined_call_operand.vmem [shape: f32[8,1], index: 6, kind: input, shape index: {}]   ;;  %s2651_s5 = inlined_call_operand.vmem [shape: bf16[8,64], index: 5, kind: input, shape index: {}]   ;;  %s2652_s7 = inlined_call_operand.vmem [shape: bf16[64,8], index: 7, kind: input, shape index: {}]   ;;  %s2653_s3 = inlined_call_operand.vmem [shape: f32[3,96], index: 3, kind: input, shape index: {}]   ;;  %s2654_s10 = inlined_call_operand.vmem [shape: f32[8,1], index: 10, kind: input, shape index: {}]   ;;  %s2655_s12 = inlined_call_operand.vmem [shape: f32[64,1], index: 12, kind: input, shape index: {}]   ;;  %s2656_s8 = inlined_call_operand.vmem [shape: f32[64,1], index: 8, kind: input, shape index: {}]   ;;  %s2657_s15 = inlined_call_operand.vmem [shape: f32[16,1], index: 15, kind: input, shape index: {}]   ;;  %s2658_s17 = inlined_call_operand.vmem [shape: f32[128,1], index: 17, kind: input, shape index: {}]   ;;  %s2659_s4 = inlined_call_operand.vmem [shape: f32[1,3], index: 4, kind: input, shape index: {}]   ;;  %s2660_s9 = inlined_call_operand.vmem [shape: bf16[8,64], index: 9, kind: input, shape index: {}]   ;;  %s2661_s11 = inlined_call_operand.vmem [shape: bf16[64,8], index: 11, kind: input, shape index: {}]   ;;  %s2662_s13 = inlined_call_operand.vmem [shape: bf16[16,64], index: 13, kind: input, shape index: {}]   ;;  %s2663_s14 = inlined_call_operand.vmem [shape: bf16[16,64], index: 14, kind: input, shape index: {}]   ;;  %s2664_s16 = inlined_call_operand.vmem [shape: bf16[128,16], index: 16, kind: input, shape index: {}]   ;;  %s2665_s18 = inlined_call_operand.vmem [shape: f32[128,96], index: 18, kind: output, shape index: {}]  }
   0x1   :  { %2669 = sst [smem:[#allocation2_spill]] %s2647_s2  ;;  %1881 = vset.pattern.permute.xlu0 %v1971_v2  ;;  %1882 = vset.pattern.permute.xlu1 %v1971_v2  ;;  %v674_v15 = vld [vmem:[%s2650_s6] sm:$0xff]  ;;  %vm680_vm2 = vcmask 523264   ;;  %vm802_vm3 = vcmask 64512   ;;  %vm560_vm4 = vcmask 1042432   ;;  %vm815_vm5 = vcmask 1043456  }
   0x2   :  { %2670 = sst [smem:[#allocation3_spill]] %s2648_s0  ;;  %677 = vperm.xlu0 %1881, %v674_v15   ;;  %v1889_v2 = vld [vmem:[%s2652_s7] sm:$0xff]   ;;  %vm535_vm6 = vcmask 23552   ;;  %vm1407_vm7 = vcmask 130048  }
   0x3   :  { %2671 = sst [smem:[#allocation4_spill]] %s2649_s1  ;;  %v734_v15 = vld [vmem:[%s2656_s8] sm:$0xff] }
   0x4   :  { %s2672_s29 = sld [smem:[#allocation2_spill]] }
   0x5   :  { %s2673_s22 = sld [smem:[#allocation3_spill]] }
   0x6   :  { %s2674_s26 = sld [smem:[#allocation4_spill]] }
   0xa   :  { %v2072_v0 = vld [vmem:[%s2672_s29 + $0x28] sm:$0xff]   ;;  %v2077_v1 = vld [vmem:[%s2672_s29 + $0x20] sm:$0xff]   ;;  %v2087_v3 = vld [vmem:[%s2672_s29 + $0x18] sm:$0xff]  }
   0xb   :  { %1716 = vmatprep.subr.bf16.mxu0 %v2072_v0  ;;  %1736 = vmatprep.subr.bf16.mxu1 %v2072_v0  ;;  %v2093_v4 = vld [vmem:[%s2673_s22] sm:$0xff]  ;;  %v2098_v5 = vld [vmem:[%s2673_s22 + $0x8] sm:$0xff]  ;;  %v2120_v10 = vld [vmem:[%s2672_s29 + $0x10] sm:$0xff]  }
   0xc   :  { %1717 = vmatpush3.bf16.msra.mxu0 %v2072_v0  ;;  %1737 = vmatpush3.bf16.msra.mxu1 %v2072_v0  ;;  %v2103_v6 = vld [vmem:[%s2674_s26] sm:$0xff]  ;;  %v2109_v7 = vld [vmem:[%s2674_s26 + $0x8] sm:$0xff]  ;;  %v214_v9 = vmul.f32 %v2093_v4, %v2093_v4  ;;  %v215_v12 = vmul.f32 %v2098_v5, %v2098_v5  ;;  %v2149_v18 = vld [vmem:[%s2673_s22 + $0x10] sm:$0xff] }
   0xd   :  { %1718 = vmatprep.subr.bf16.mxu0 %v2077_v1  ;;  %1738 = vmatprep.subr.bf16.mxu1 %v2077_v1  ;;  %v88_v8 = vmul.f32 %v2103_v6, %v2093_v4  ;;  %v89_v11 = vmul.f32 %v2109_v7, %v2098_v5  ;;  %v2136_v16 = vld [vmem:[%s2672_s29 + $0x8] sm:$0xff]   ;;  %v2144_v17 = vld [vmem:[%s2672_s29] sm:$0xff]   ;;  %v2154_v19 = vld [vmem:[%s2673_s22 + $0x18] sm:$0xff]  ;;  %v216_v28 = vmul.f32 %v2149_v18, %v2149_v18 }
   0xe   :  { %v222_v14 = vpack.c.bf16 %v215_v12, %v214_v9  ;;  %v2160_v20 = vld [vmem:[%s2674_s26 + $0x10] sm:$0xff]  ;;  %v2165_v21 = vld [vmem:[%s2674_s26 + $0x18] sm:$0xff]  ;;  %v2171_v22 = vld [vmem:[%s2673_s22 + $0x20] sm:$0xff]  ;;  %v217_v29 = vmul.f32 %v2154_v19, %v2154_v19  ;;  %v303_v46 = vmul.f32 %v2103_v6, %v2103_v6  ;;  %v304_v47 = vmul.f32 %v2109_v7, %v2109_v7 }
   0xf   :  { %v96_v13 = vpack.c.bf16 %v89_v11, %v88_v8  ;;  %v2177_v23 = vld [vmem:[%s2673_s22 + $0x28] sm:$0xff]  ;;  %v2182_v24 = vld [vmem:[%s2674_s26 + $0x20] sm:$0xff]  ;;  %v90_v26 = vmul.f32 %v2160_v20, %v2149_v18  ;;  %v91_v27 = vmul.f32 %v2165_v21, %v2154_v19  ;;  %v218_v32 = vmul.f32 %v2171_v22, %v2171_v22  ;;  %v66_v35 = vld [vmem:[%s2673_s22 + $0x30] sm:$0xff] }
  0x10   :  { %1719 = vmatpush3.bf16.msra.mxu0 %v2077_v1  ;;  %1739 = vmatpush3.bf16.msra.mxu1 %v2077_v1  ;;  %v2187_v25 = vld [vmem:[%s2674_s26 + $0x28] sm:$0xff]  ;;  %v92_v30 = vmul.f32 %v2182_v24, %v2171_v22  ;;  %v219_v33 = vmul.f32 %v2177_v23, %v2177_v23  ;;  %v2216_v36 = vld [vmem:[%s2674_s26 + $0x30] sm:$0xff]  ;;  %v223_v37 = vpack.c.bf16 %v217_v29, %v216_v28  ;;  %v67_v39 = vld [vmem:[%s2673_s22 + $0x38] sm:$0xff] }
  0x11   :  { %1720 = vmatprep.subr.bf16.mxu0 %v2087_v3  ;;  %1740 = vmatprep.subr.bf16.mxu1 %v2087_v3  ;;  %v93_v31 = vmul.f32 %v2187_v25, %v2177_v23  ;;  %v97_v34 = vpack.c.bf16 %v91_v27, %v90_v26  ;;  %v2225_v40 = vld [vmem:[%s2674_s26 + $0x38] sm:$0xff]  ;;  %v94_v42 = vmul.f32 %v2216_v36, %v66_v35  ;;  %v738_v8 = vld [vmem:[%s2656_s8 + $0x20] sm:$0xff]  ;;  %v736_v11 = vld [vmem:[%s2656_s8 + $0x10] sm:$0xff] }
  0x12   :  { %1728 = vmatprep.mubr.msk.bf16.mxu0 %vm136_vm0, %v96_v13  ;;  %1748 = vmatprep.mubr.msk.bf16.mxu1 %vm136_vm0, %v222_v14  ;;  %v224_v41 = vpack.c.bf16 %v219_v33, %v218_v32  ;;  %v95_v43 = vmul.f32 %v2225_v40, %v67_v39  ;;  %v220_v44 = vmul.f32 %v66_v35, %v66_v35  ;;  %v968_v9 = vld [vmem:[%s2655_s12 + $0x20] sm:$0xff]  ;;  %v741_v12 = vld [vmem:[%s2656_s8 + $0x38] sm:$0xff]  ;;  %v966_v13 = vld [vmem:[%s2655_s12 + $0x10] sm:$0xff] }
  0x13   :  { %v98_v38 = vpack.c.bf16 %v93_v31, %v92_v30  ;;  %v221_v45 = vmul.f32 %v67_v39, %v67_v39  ;;  %v311_v50 = vpack.c.bf16 %v304_v47, %v303_v46  ;;  %v305_v51 = vmul.f32 %v2160_v20, %v2160_v20  ;;  %v971_v14 = vld [vmem:[%s2655_s12 + $0x38] sm:$0xff]  ;;  %v1273_v29 = vld [vmem:[%s2658_s17 + $0x10] sm:$0xff]  ;;  %v735_v31 = vld [vmem:[%s2656_s8 + $0x8] sm:$0xff] }
  0x14   :  { %1721 = vmatpush3.bf16.msra.mxu0 %v2087_v3  ;;  %1741 = vmatpush3.bf16.msra.mxu1 %v2087_v3  ;;  %v99_v48 = vpack.c.bf16 %v95_v43, %v94_v42  ;;  %v306_v52 = vmul.f32 %v2165_v21, %v2165_v21  ;;  %v307_v53 = vmul.f32 %v2182_v24, %v2182_v24  ;;  %v967_v27 = vld [vmem:[%s2655_s12 + $0x18] sm:$0xff]  ;;  %v1275_v33 = vld [vmem:[%s2658_s17 + $0x20] sm:$0xff] }
  0x15   :  { %1722 = vmatprep.subr.bf16.mxu0 %v2120_v10  ;;  %1742 = vmatprep.subr.bf16.mxu1 %v2120_v10  ;;  %v225_v49 = vpack.c.bf16 %v221_v45, %v220_v44  ;;  %v308_v54 = vmul.f32 %v2187_v25, %v2187_v25  ;;  %v673_v57 = vpack.c.bf16 %v67_v39, %v66_v35  ;;  %v1279_v42 = vld [vmem:[%s2658_s17 + $0x40] sm:$0xff]  ;;  %v1281_v45 = vld [vmem:[%s2658_s17 + $0x50] sm:$0xff] }
  0x16   :  { %v312_v55 = vpack.c.bf16 %v306_v52, %v305_v51  ;;  %v309_v59 = vmul.f32 %v2216_v36, %v2216_v36  ;;  %v310_v60 = vmul.f32 %v2225_v40, %v2225_v40  ;;  %v672_v61 = vpack.c.bf16 %v2177_v23, %v2171_v22  ;;  %v737_v22 = vld [vmem:[%s2656_s8 + $0x18] sm:$0xff]  ;;  %v1271_v23 = vld [vmem:[%s2658_s17] sm:$0xff] }
  0x17   :  { %v313_v56 = vpack.c.bf16 %v308_v54, %v307_v53  ;;  %v671_v63 = vpack.c.bf16 %v2154_v19, %v2149_v18  ;;  %v969_v18 = vld [vmem:[%s2655_s12 + $0x28] sm:$0xff]  ;;  %v1238_v19 = vld [vmem:[%s2657_s15] sm:$0xff] }
  0x18   :  { %1723 = vmatpush3.bf16.msra.mxu0 %v2120_v10  ;;  %1743 = vmatpush3.bf16.msra.mxu1 %v2120_v10  ;;  %v314_v62 = vpack.c.bf16 %v310_v60, %v309_v59  ;;  %v1285_v59 = vld [vmem:[%s2658_s17 + $0x70] sm:$0xff] }
  0x19   :  { %1724 = vmatprep.subr.bf16.mxu0 %v2136_v16  ;;  %1744 = vmatprep.subr.bf16.mxu1 %v2136_v16 }
  0x1c   :  { %1725 = vmatpush3.bf16.msra.mxu0 %v2136_v16  ;;  %1745 = vmatpush3.bf16.msra.mxu1 %v2136_v16 }
  0x1d   :  { %1726 = vmatprep.subr.bf16.mxu0 %v2144_v17  ;;  %1746 = vmatprep.subr.bf16.mxu1 %v2144_v17 }
  0x20   :  { %1727 = vmatpush3.bf16.msra.mxu0 %v2144_v17  ;;  %1747 = vmatpush3.bf16.msra.mxu1 %v2144_v17 }
  0x21   :  { %1756 = vmatprep.subr.bf16.mxu0 %v2072_v0 }
  0x23   :  { %1729 = vmatmul.mubr.msk.bf16.vlgmr.msra.gmra.mxu0 %vm136_vm0, %v97_v34  ;;  %1749 = vmatmul.mubr.msk.bf16.vlgmr.msra.gmra.mxu1 %vm136_vm0, %v223_v37 }
  0x24   :  { %1757 = vmatpush3.bf16.msra.mxu0 %v2072_v0  ;;  %1732 = vmatprep.mubr.msk.bf16.mxu0 %vm136_vm0, %v98_v38  ;;  %v670_v0 = vpack.c.bf16 %v2098_v5, %v2093_v4  ;;  %v905_v4 = vld [vmem:[%s2654_s10] sm:$0xff]  ;;  %v970_v5 = vld [vmem:[%s2655_s12 + $0x30] sm:$0xff] }
  0x25   :  { %1758 = vmatprep.subr.bf16.mxu0 %v2077_v1  ;;  %1752 = vmatprep.mubr.msk.bf16.mxu1 %vm136_vm0, %v224_v41  ;;  %v1277_v38 = vld [vmem:[%s2658_s17 + $0x30] sm:$0xff] }
  0x26   :  { %908 = vperm.xlu0 %1881, %v905_v4  }
  0x28   :  { %1759 = vmatpush3.bf16.msra.mxu0 %v2077_v1  ;;  %v669_v1 = vld [vmem:[%s2651_s5] sm:$0xf] }
  0x29   :  { %1760 = vmatprep.subr.bf16.mxu0 %v2087_v3 }
  0x2a   :  { %1004 = vperm.xlu0 %1881, %v970_v5  }
  0x2b   :  { %1733 = vmatmul.mubr.msk.bf16.gmra.mxu0 %vm136_vm0, %v99_v48  ;;  %1753 = vmatmul.mubr.msk.bf16.gmra.mxu1 %vm136_vm0, %v225_v49 }
  0x2c   :  { %1761 = vmatpush3.bf16.msra.mxu0 %v2087_v3  ;;  %1768 = vmatprep.mubr.msk.bf16.mxu0 %vm136_vm0, %v311_v50  ;;  %v534_v3 = vld [vmem:[%s2653_s3] sm:$0x7] }
  0x2d   :  { %1762 = vmatprep.subr.bf16.mxu0 %v2120_v10  ;;  %1776 = vmatprep.subr.msk.mxu1 %vm560_vm4, %v534_v3  ;;  %v1283_v50 = vld [vmem:[%s2658_s17 + $0x60] sm:$0xff] }
  0x2e   :  { %1777 = vmatpush3.msk.msra.mxu1 %vm560_vm4, %v534_v3  ;;  %764 = vperm.xlu0 %1881, %v738_v8  }
  0x2f   :  { %1812 = vmatprep.subr.bf16.mxu1 %v1972_v58 }
  0x30   :  { %1763 = vmatpush3.bf16.msra.mxu0 %v2120_v10  ;;  %v740_v10 = vld [vmem:[%s2656_s8 + $0x30] sm:$0xff] }
  0x31   :  { %1764 = vmatprep.subr.bf16.mxu0 %v2136_v16  ;;  %774 = vperm.xlu1 %1882, %v740_v10  }
  0x32   :  { %994 = vperm.xlu0 %1881, %v968_v9  }
  0x34   :  { %1765 = vmatpush3.bf16.msra.mxu0 %v2136_v16  ;;  %v739_v16 = vld [vmem:[%s2656_s8 + $0x28] sm:$0xff] }
  0x35   :  { %1766 = vmatprep.subr.bf16.mxu0 %v2144_v17  ;;  %779 = vperm.xlu1 %1882, %v741_v12  }
  0x36   :  { %754 = vperm.xlu0 %1881, %v736_v11  }
  0x38   :  { %1767 = vmatpush3.bf16.msra.mxu0 %v2144_v17  ;;  %v964_v17 = vld [vmem:[%s2655_s12] sm:$0xff] }
  0x39   :  { %1790 = vmatprep.subr.bf16.mxu0 %v1972_v58  ;;  %1009 = vperm.xlu1 %1882, %v971_v14  }
  0x3a   :  { %984 = vperm.xlu0 %1881, %v966_v13  }
  0x3b   :  { %1769 = vmatmul.mubr.msk.bf16.vlgmr.msra.gmra.mxu0 %vm136_vm0, %v312_v55 }
  0x3c   :  { %1772 = vmatprep.mubr.msk.bf16.mxu0 %vm136_vm0, %v313_v56  ;;  %1791 = vmatpush3.bf16.msra.mxu0 %v673_v57 }
  0x3d   :  { %1792 = vmatprep.subr.bf16.mxu0 %v1972_v58  ;;  %769 = vperm.xlu1 %1882, %v739_v16  }
  0x3e   :  { %744 = vperm.xlu0 %1881, %v734_v15  }
  0x40   :  { %1793 = vmatpush3.bf16.msra.mxu0 %v672_v61 }
  0x41   :  { %1794 = vmatprep.subr.bf16.mxu0 %v1972_v58  ;;  %999 = vperm.xlu1 %1882, %v969_v18  }
  0x42   :  { %974 = vperm.xlu0 %1881, %v964_v17  }
  0x43   :  { %1773 = vmatmul.mubr.msk.bf16.gmra.mxu0 %vm136_vm0, %v314_v62 }
  0x44   :  { %1795 = vmatpush3.bf16.msra.mxu0 %v671_v63  ;;  %1798 = vmatprep.mubr.msk.bf16.mxu0 %vm1973_vm1, %v1972_v58 }
  0x45   :  { %1796 = vmatprep.subr.bf16.mxu0 %v1972_v58  ;;  %759 = vperm.xlu1 %1882, %v737_v22  }
  0x46   :  { %1242 = vperm.xlu0 %1881, %v1238_v19  }
  0x48   :  { %1797 = vmatpush3.bf16.msra.mxu0 %v670_v0 }
  0x49   :  { %989 = vperm.xlu1 %1882, %v967_v27  }
  0x4a   :  { %1289 = vperm.xlu0 %1881, %v1271_v23  }
  0x4b   :  { %1799 = vmatmul.mubr.msk.bf16.vlgmr.msra.gmra.mxu0 %vm680_vm2, %v669_v1 }
  0x4c   :  { %1804 = vmatprep.mubr.msk.bf16.mxu0 %vm802_vm3, %v1889_v2 }
  0x4d   :  { %749 = vperm.xlu1 %1882, %v735_v31  }
  0x4e   :  { %1299 = vperm.xlu0 %1881, %v1273_v29  }
  0x52   :  { %1309 = vperm.xlu0 %1881, %v1275_v33  }
  0x56   :  { %1319 = vperm.xlu0 %1881, %v1277_v38  }
  0x5a   :  { %1329 = vperm.xlu0 %1881, %v1279_v42  }
  0x5e   :  { %1339 = vperm.xlu0 %1881, %v1281_v45  }
  0x62   :  { %1349 = vperm.xlu0 %1881, %v1283_v50  }
  0x66   :  { %1359 = vperm.xlu0 %1881, %v1285_v59  }
  0x7d   :  { %v678_v16 = vpop.permute.xlu0 %677 }
  0xe3   :  { %v2340_v26 = vpop.f32.mrf.mxu0  ;;  %v1750_v32 = vpop.f32.mrf.mxu1 }
  0xe4   :  { %v394_v46 = vmax.f32 %v1750_v32, 1e-24 }
  0xe5   :  { %v2345_v28 = vpop.f32.mrf.mxu0  ;;  %v272_v35 = vpop.f32.mrf.mxu1 }
  0xe6   :  { %v392_v49 = vmax.f32 %v272_v35, 1e-24  ;;  %1907 = vrsqrt.f32 %v394_v46 }
  0xe7   :  { %v2350_v30 = vpop.f32.mrf.mxu0  ;;  %v1751_v39 = vpop.f32.mrf.mxu1 }
  0xe8   :  { %v395_v51 = vmax.f32 %v1751_v39, 1e-24  ;;  %1909 = vrsqrt.f32 %v392_v49 }
  0xe9   :  { %v2358_v34 = vpop.f32.mrf.mxu0  ;;  %v275_v43 = vpop.f32.mrf.mxu1 }
  0xea   :  { %v393_v55 = vmax.f32 %v275_v43, 1e-24 }
  0xeb   :  { %v2360_v37 = vpop.f32.mrf.mxu0  ;;  %v1754_v47 = vpop.f32.mrf.mxu1 }
  0xec   :  { %v398_v60 = vmax.f32 %v1754_v47, 1e-24 }
  0xed   :  { %v2365_v41 = vpop.f32.mrf.mxu0  ;;  %v288_v54 = vpop.f32.mrf.mxu1 }
  0xee   :  { %v396_v2 = vmax.f32 %v288_v54, 1e-24 }
  0xef   :  { %v2370_v44 = vpop.f32.mrf.mxu0  ;;  %v1755_v63 = vpop.f32.mrf.mxu1 }
  0xf0   :  { %v399_v8 = vmax.f32 %v1755_v63, 1e-24 }
  0xf1   :  { %v2375_v48 = vpop.f32.mrf.mxu0  ;;  %v291_v4 = vpop.f32.mrf.mxu1 }
  0xf2   :  { %v397_v11 = vmax.f32 %v291_v4, 1e-24 }
  0xf3   :  { %v1908_v14 = vpop.eup %1907 }
  0xf5   :  { %v1910_v17 = vpop.eup %1909 }
  0xfb   :  { %v1770_v52 = vpop.f32.mrf.mxu0 }
  0xfc   :  { %v410_v53 = vmax.f32 %v1770_v52, 1e-24 }
  0xfd   :  { %v361_v56 = vpop.f32.mrf.mxu0 }
  0xfe   :  { %1911 = vrsqrt.f32 %v410_v53  ;;  %v408_v57 = vmax.f32 %v361_v56, 1e-24 }
  0xff   :  { %1913 = vrsqrt.f32 %v395_v51  ;;  %v1771_v61 = vpop.f32.mrf.mxu0 }
 0x100   :  { %1915 = vrsqrt.f32 %v408_v57  ;;  %v411_v62 = vmax.f32 %v1771_v61, 1e-24  ;;  %v1890_v57 = vld [vmem:[%s2652_s7 + $0x8] sm:$0xff]  }
 0x101   :  { %1917 = vrsqrt.f32 %v393_v55  ;;  %v364_v0 = vpop.f32.mrf.mxu0 }
 0x102   :  { %1919 = vrsqrt.f32 %v411_v62  ;;  %v409_v1 = vmax.f32 %v364_v0, 1e-24 }
 0x103   :  { %1921 = vrsqrt.f32 %v398_v60  ;;  %v1774_v3 = vpop.f32.mrf.mxu0 }
 0x104   :  { %1923 = vrsqrt.f32 %v409_v1  ;;  %v414_v5 = vmax.f32 %v1774_v3, 1e-24 }
 0x105   :  { %v377_v9 = vpop.f32.mrf.mxu0 }
 0x106   :  { %1925 = vrsqrt.f32 %v414_v5  ;;  %v412_v10 = vmax.f32 %v377_v9, 1e-24 }
 0x107   :  { %1927 = vrsqrt.f32 %v396_v2  ;;  %v1775_v12 = vpop.f32.mrf.mxu0 }
 0x108   :  { %1929 = vrsqrt.f32 %v412_v10  ;;  %v415_v13 = vmax.f32 %v1775_v12, 1e-24 }
 0x109   :  { %1931 = vrsqrt.f32 %v399_v8  ;;  %v380_v15 = vpop.f32.mrf.mxu0 }
 0x10a   :  { %1933 = vrsqrt.f32 %v415_v13  ;;  %v413_v18 = vmax.f32 %v380_v15, 1e-24 }
 0x10b   :  { %v1912_v19 = vpop.eup %1911  ;;  %1935 = vrsqrt.f32 %v397_v11  ;;  %v718_v22 = vpop.f32.mrf.mxu0 }
 0x10c   :  { %v1914_v23 = vpop.eup %1913  ;;  %v426_v27 = vmul.f32 %v1912_v19, %v1908_v14  ;;  %1937 = vrsqrt.f32 %v413_v18  ;;  %v719_v29 = vadd.f32 %v718_v22, %v678_v16 }
 0x10d   :  { %v1916_v31 = vpop.eup %1915  ;;  %v1800_v32 = vpop.f32.mrf.mxu0 }
 0x10e   :  { %v1918_v33 = vpop.eup %1917  ;;  %v434_v35 = vmul.f32 %v2340_v26, %v426_v27  ;;  %v424_v38 = vmul.f32 %v1916_v31, %v1910_v17  ;;  %v724_v39 = vmax.f32 %v719_v29, 0.0  ;;  %v490_v27 = vlaneseq }
 0x10f   :  { %v1920_v42 = vpop.eup %1919  ;;  %v721_v43 = vpop.f32.mrf.mxu0 }
 0x110   :  { %v1922_v45 = vpop.eup %1921  ;;  %v1585_v46 = vmul.f32 -1.442695, %v434_v35  ;;  %v432_v47 = vmul.f32 %v424_v38, %v2345_v28  ;;  %v427_v49 = vmul.f32 %v1920_v42, %v1914_v23  ;;  %v733_v50 = vpack.c.bf16 %v724_v39, %v724_v39  ;;  %v488_v38 = vld [vmem:[%s2659_s4] sm:$0x1] }
 0x111   :  { %v1924_v51 = vpop.eup %1923  ;;  %v1801_v52 = vpop.f32.mrf.mxu0 }
 0x112   :  { %1939 = vpow2.f32 %v1585_v46  ;;  %v1583_v53 = vmul.f32 -1.442695, %v432_v47  ;;  %v435_v54 = vmul.f32 %v2350_v30, %v427_v49  ;;  %v425_v55 = vmul.f32 %v1924_v51, %v1918_v33  ;;  %1876 = vmatprep.subr.msk.bf16.mxu0 %vm815_vm5, %v733_v50  ;;  %v1891_v30 = vld [vmem:[%s2652_s7 + $0x10] sm:$0xff]  }
 0x113   :  { %v1926_v26 = vpop.eup %1925  ;;  %v817_v56 = vsel %vm815_vm5, %v733_v50, 0  ;;  %v491_v33 = vshrl.u32 %v490_v27, 7  ;;  %v503_v46 = vsub.f32 1.0, %v488_v38  ;;  %v1272_v27 = vld [vmem:[%s2658_s17 + $0x8] sm:$0xff] }
 0x114   :  { %v1928_v59 = vpop.eup %1927  ;;  %1941 = vpow2.f32 %v1583_v53  ;;  %v1586_v28 = vmul.f32 -1.442695, %v435_v54  ;;  %v433_v60 = vmul.f32 %v425_v55, %v2358_v34  ;;  %v430_v61 = vmul.f32 %v1926_v26, %v1922_v45  ;;  %1803 = vmatpush3.bf16.msra.mxu0 %v817_v56 }
 0x115   :  { %v1930_v62 = vpop.eup %1929  ;;  %v492_v45 = vsub.s32 0, %v491_v33  ;;  %v1282_v33 = vld [vmem:[%s2658_s17 + $0x58] sm:$0xff] }
 0x116   :  { %v1932_v63 = vpop.eup %1931  ;;  %1943 = vpow2.f32 %v1586_v28  ;;  %v1584_v0 = vmul.f32 -1.442695, %v433_v60  ;;  %v438_v1 = vmul.f32 %v2360_v37, %v430_v61  ;;  %v428_v2 = vmul.f32 %v1930_v62, %v1928_v59  ;;  %v1892_v37 = vld [vmem:[%s2652_s7 + $0x18] sm:$0xff]  }
 0x117   :  { %v1934_v3 = vpop.eup %1933  ;;  %1805 = vmatmul.mubr.msk.bf16.vlgmr.msra.gmra.mxu0 %vm802_vm3, %v1890_v57  ;;  %v493_v50 = vrot.slane %v488_v38, %v492_v45  ;;  %v516_v52 = vrot.slane %v503_v46, %v492_v45  ;;  %v1286_v38 = vld [vmem:[%s2658_s17 + $0x78] sm:$0xff] }
 0x118   :  { %v1936_v4 = vpop.eup %1935  ;;  %1945 = vpow2.f32 %v1584_v0  ;;  %v1589_v5 = vmul.f32 -1.442695, %v438_v1  ;;  %v436_v34 = vmul.f32 %v428_v2, %v2365_v41  ;;  %v431_v8 = vmul.f32 %v1934_v3, %v1932_v63  ;;  %1808 = vmatprep.mubr.msk.bf16.mxu0 %vm802_vm3, %v1891_v30 }
 0x119   :  { %v1938_v9 = vpop.eup %1937  ;;  %v904_v1 = vpack.c.bf16 %v2225_v40, %v2216_v36 }
 0x11a   :  { %1947 = vpow2.f32 %v1589_v5  ;;  %v1587_v10 = vmul.f32 -1.442695, %v436_v34  ;;  %v439_v11 = vmul.f32 %v2370_v44, %v431_v8  ;;  %v429_v12 = vmul.f32 %v1938_v9, %v1936_v4 }
 0x11c   :  { %1949 = vpow2.f32 %v1587_v10  ;;  %v1590_v13 = vmul.f32 -1.442695, %v439_v11  ;;  %v437_v14 = vmul.f32 %v429_v12, %v2375_v48 }
 0x11e   :  { %1951 = vpow2.f32 %v1590_v13  ;;  %v1588_v15 = vmul.f32 -1.442695, %v437_v14 }
 0x11f   :  { %v1940_v41 = vpop.eup %1939  ;;  %1809 = vmatmul.mubr.msk.bf16.gmra.mxu0 %vm802_vm3, %v1892_v37  ;;  %v903_v37 = vpack.c.bf16 %v2187_v25, %v2182_v24 }
 0x120   :  { %v466_v16 = vadd.f32 1.0, %v1940_v41  ;;  %1953 = vpow2.f32 %v1588_v15 }
 0x121   :  { %v1942_v17 = vpop.eup %1941 }
 0x122   :  { %v464_v18 = vadd.f32 1.0, %v1942_v17  ;;  %1955 = vrcp.f32 %v466_v16 }
 0x123   :  { %v1944_v19 = vpop.eup %1943 }
 0x124   :  { %1957 = vrcp.f32 %v464_v18  ;;  %v467_v44 = vadd.f32 1.0, %v1944_v19  ;;  %v902_v18 = vpack.c.bf16 %v2165_v21, %v2160_v20  ;;  %v900_v20 = vld [vmem:[%s2660_s9] sm:$0xf]  ;;  %v1239_v21 = vld [vmem:[%s2657_s15 + $0x8] sm:$0xff] }
 0x125   :  { %v1946_v22 = vpop.eup %1945 }
 0x126   :  { %1959 = vrcp.f32 %v467_v44  ;;  %v465_v23 = vadd.f32 1.0, %v1946_v22  ;;  %v901_v22 = vpack.c.bf16 %v2109_v7, %v2103_v6  ;;  %v1893_v6 = vld [vmem:[%s2661_s11] sm:$0xff]   ;;  %v965_v7 = vld [vmem:[%s2655_s12 + $0x8] sm:$0xff] }
 0x127   :  { %v1948_v29 = vpop.eup %1947  ;;  %1826 = vmatprep.mubr.msk.bf16.mxu0 %vm802_vm3, %v1893_v6  ;;  %979 = vperm.xlu1 %1882, %v965_v7  }
 0x128   :  { %1961 = vrcp.f32 %v465_v23  ;;  %v470_v48 = vadd.f32 1.0, %v1948_v29  ;;  %v1274_v29 = vld [vmem:[%s2658_s17 + $0x18] sm:$0xff] }
 0x129   :  { %v1950_v31 = vpop.eup %1949 }
 0x12a   :  { %v468_v32 = vadd.f32 1.0, %v1950_v31  ;;  %1963 = vrcp.f32 %v470_v48  ;;  %v1276_v48 = vld [vmem:[%s2658_s17 + $0x28] sm:$0xff]  ;;  %v1278_v31 = vld [vmem:[%s2658_s17 + $0x38] sm:$0xff] }
 0x12b   :  { %v1952_v35 = vpop.eup %1951  ;;  %1247 = vperm.xlu1 %1882, %v1239_v21  }
 0x12c   :  { %1965 = vrcp.f32 %v468_v32  ;;  %v471_v39 = vadd.f32 1.0, %v1952_v35  ;;  %v1280_v32 = vld [vmem:[%s2658_s17 + $0x48] sm:$0xff] }
 0x12d   :  { %v1954_v42 = vpop.eup %1953  ;;  %v1284_v35 = vld [vmem:[%s2658_s17 + $0x68] sm:$0xff] }
 0x12e   :  { %1967 = vrcp.f32 %v471_v39  ;;  %v469_v43 = vadd.f32 1.0, %v1954_v42  ;;  %v775_v39 = vpop.permute.xlu1 %774  ;;  %v909_v42 = vpop.permute.xlu0 %908 }
 0x12f   :  { %v1956_v47 = vpop.eup %1955  ;;  %1294 = vperm.xlu1 %1882, %v1272_v27  }
 0x130   :  { %1969 = vrcp.f32 %v469_v43  ;;  %v506_v54 = vsub.f32 1.0, %v1956_v47  ;;  %v497_v0 = vmul.f32 %v1956_v47, %v493_v50 }
 0x131   :  { %v1958_v49 = vpop.eup %1957 }
 0x132   :  { %v504_v51 = vsub.f32 1.0, %v1958_v49  ;;  %v495_v55 = vmul.f32 %v1958_v49, %v493_v50  ;;  %v520_v60 = vmul.f32 %v516_v52, %v506_v54  ;;  %v780_v43 = vpop.permute.xlu1 %779  ;;  %v2470_v47 = vpop.permute.xlu0 %1004 }
 0x133   :  { %v1960_v53 = vpop.eup %1959  ;;  %1304 = vperm.xlu1 %1882, %v1274_v29  }
 0x134   :  { %v518_v26 = vmul.f32 %v516_v52, %v504_v51  ;;  %v507_v28 = vsub.f32 1.0, %v1960_v53  ;;  %v528_v34 = vadd.f32 %v520_v60, %v497_v0  ;;  %v498_v9 = vmul.f32 %v1960_v53, %v493_v50 }
 0x135   :  { %v1962_v56 = vpop.eup %1961 }
 0x136   :  { %v526_v57 = vadd.f32 %v518_v26, %v495_v55  ;;  %v505_v59 = vsub.f32 1.0, %v1962_v56  ;;  %v496_v30 = vmul.f32 %v1962_v56, %v493_v50  ;;  %v521_v3 = vmul.f32 %v516_v52, %v507_v28  ;;  %v2472_v49 = vpop.permute.xlu1 %1009  ;;  %v765_v51 = vpop.permute.xlu0 %764 }
 0x137   :  { %v1964_v61 = vpop.eup %1963  ;;  %1314 = vperm.xlu1 %1882, %v1276_v48  }
 0x138   :  { %1778 = vmatprep.mubr.msk.f32.mxu1 %vm535_vm6, %v526_v57  ;;  %v519_v62 = vmul.f32 %v516_v52, %v505_v59  ;;  %v510_v8 = vsub.f32 1.0, %v1964_v61  ;;  %v529_v13 = vadd.f32 %v521_v3, %v498_v9  ;;  %v501_v17 = vmul.f32 %v1964_v61, %v493_v50 }
 0x139   :  { %v1966_v63 = vpop.eup %1965 }
 0x13a   :  { %v527_v2 = vadd.f32 %v519_v62, %v496_v30  ;;  %v508_v4 = vsub.f32 1.0, %v1966_v63  ;;  %v499_v10 = vmul.f32 %v1966_v63, %v493_v50  ;;  %v524_v15 = vmul.f32 %v516_v52, %v510_v8  ;;  %v770_v53 = vpop.permute.xlu1 %769  ;;  %v2480_v57 = vpop.permute.xlu0 %994 }
 0x13b   :  { %v1968_v5 = vpop.eup %1967  ;;  %1324 = vperm.xlu1 %1882, %v1278_v31  }
 0x13c   :  { %1779 = vmatmul.mubr.msk.f32.vlgmr.msra.gmra.mxu1 %vm535_vm6, %v527_v2  ;;  %v522_v11 = vmul.f32 %v516_v52, %v508_v4  ;;  %v511_v14 = vsub.f32 1.0, %v1968_v5  ;;  %v532_v25 = vadd.f32 %v524_v15, %v501_v17  ;;  %v502_v44 = vmul.f32 %v1968_v5, %v493_v50 }
 0x13d   :  { %v1970_v12 = vpop.eup %1969  ;;  %1781 = vmatprep.mubr.msk.f32.mxu1 %vm535_vm6, %v528_v34  ;;  %1813 = vmatpush3.bf16.msra.mxu1 %v904_v1 }
 0x13e   :  { %1814 = vmatprep.subr.bf16.mxu1 %v1972_v58  ;;  %v530_v36 = vadd.f32 %v522_v11, %v499_v10  ;;  %v509_v40 = vsub.f32 1.0, %v1970_v12  ;;  %v500_v41 = vmul.f32 %v1970_v12, %v493_v50  ;;  %v525_v24 = vmul.f32 %v516_v52, %v511_v14  ;;  %v2484_v28 = vpop.permute.xlu1 %999  ;;  %v755_v62 = vpop.permute.xlu0 %754 }
 0x13f   :  { %1334 = vperm.xlu1 %1882, %v1280_v32  }
 0x140   :  { %1782 = vmatmul.mubr.msk.f32.gmra.mxu1 %vm535_vm6, %v529_v13  ;;  %v523_v16 = vmul.f32 %v516_v52, %v509_v40  ;;  %v533_v23 = vadd.f32 %v525_v24, %v502_v44 }
 0x141   :  { %1784 = vmatprep.mubr.msk.f32.mxu1 %vm535_vm6, %v530_v36  ;;  %1815 = vmatpush3.bf16.msra.mxu1 %v903_v37 }
 0x142   :  { %v531_v19 = vadd.f32 %v523_v16, %v500_v41  ;;  %1816 = vmatprep.subr.bf16.mxu1 %v1972_v58  ;;  %v760_v0 = vpop.permute.xlu1 %759  ;;  %v2494_v11 = vpop.permute.xlu0 %984 }
 0x143   :  { %1344 = vperm.xlu1 %1882, %v1282_v33  }
 0x144   :  { %1785 = vmatmul.mubr.msk.f32.gmra.mxu1 %vm535_vm6, %v531_v19  ;;  %v1894_v19 = vld [vmem:[%s2661_s11 + $0x8] sm:$0xff]  }
 0x145   :  { %1787 = vmatprep.mubr.msk.f32.mxu1 %vm535_vm6, %v532_v25  ;;  %1817 = vmatpush3.bf16.msra.mxu1 %v902_v18 }
 0x146   :  { %1818 = vmatprep.subr.bf16.mxu1 %v1972_v58  ;;  %v2496_v12 = vpop.permute.xlu1 %989 }
 0x147   :  { %1354 = vperm.xlu1 %1882, %v1284_v35  }
 0x148   :  { %1788 = vmatmul.mubr.msk.f32.gmra.mxu1 %vm535_vm6, %v533_v23  ;;  %v1895_v23 = vld [vmem:[%s2661_s11 + $0x10] sm:$0xff]  }
 0x149   :  { %1819 = vmatpush3.bf16.msra.mxu1 %v901_v22  ;;  %1820 = vmatprep.mubr.msk.bf16.mxu1 %vm1973_vm1, %v1972_v58 }
 0x14a   :  { %1834 = vmatprep.subr.bf16.mxu1 %v1972_v58  ;;  %v750_v6 = vpop.permute.xlu1 %749 }
 0x14b   :  { %1364 = vperm.xlu1 %1882, %v1286_v38  }
 0x14c   :  { %1821 = vmatmul.mubr.msk.bf16.vlgmr.msra.gmra.mxu1 %vm680_vm2, %v900_v20  ;;  %v745_v20 = vpop.permute.xlu0 %744 }
 0x14d   :  { %1842 = vmatprep.mubr.msk.bf16.mxu1 %vm1973_vm1, %v1972_v58 }
 0x1d7   :  { %v1806_v45 = vpop.f32.mrf.mxu0 }
 0x1d8   :  { %v862_v17 = vadd.f32 %v1806_v45, %v755_v62 }
 0x1d9   :  { %v853_v46 = vpop.f32.mrf.mxu0 }
 0x1da   :  { %v854_v7 = vadd.f32 %v853_v46, %v745_v20  ;;  %v886_v29 = vmax.f32 %v862_v17, 0.0 }
 0x1db   :  { %v1807_v50 = vpop.f32.mrf.mxu0 }
 0x1dc   :  { %v865_v24 = vadd.f32 %v1807_v50, %v760_v0  ;;  %v884_v33 = vmax.f32 %v854_v7, 0.0 }
 0x1dd   :  { %v856_v54 = vpop.f32.mrf.mxu0 }
 0x1de   :  { %v887_v48 = vmax.f32 %v865_v24, 0.0  ;;  %v857_v31 = vadd.f32 %v856_v54, %v750_v6 }
 0x1df   :  { %v1810_v56 = vpop.f32.mrf.mxu0 }
 0x1e0   :  { %v878_v2 = vadd.f32 %v1810_v56, %v775_v39  ;;  %v1896_v39 = vld [vmem:[%s2661_s11 + $0x18] sm:$0xff]  }
 0x1e1   :  { %v869_v61 = vpop.f32.mrf.mxu0 }
 0x1e2   :  { %v890_v9 = vmax.f32 %v878_v2, 0.0  ;;  %v870_v13 = vadd.f32 %v869_v61, %v765_v51 }
 0x1e3   :  { %v1811_v1 = vpop.f32.mrf.mxu0 }
 0x1e4   :  { %v881_v4 = vadd.f32 %v1811_v1, %v780_v43  ;;  %v888_v25 = vmax.f32 %v870_v13, 0.0 }
 0x1e5   :  { %v872_v34 = vpop.f32.mrf.mxu0 }
 0x1e6   :  { %v891_v36 = vmax.f32 %v881_v4, 0.0  ;;  %v873_v40 = vadd.f32 %v872_v34, %v770_v53  ;;  %v1898_v53 = vld [vmem:[%s2662_s13] sm:$0xff]  }
 0x1e8   :  { %v889_v44 = vmax.f32 %v873_v40, 0.0 }
 0x1fc   :  { %v2474_v52 = vpop.f32.mrf.mxu1 }
 0x1fe   :  { %v2476_v55 = vpop.f32.mrf.mxu1 }
 0x1ff   :  { %v892_v45 = vmul.f32 %v884_v33, %v2476_v55 }
 0x200   :  { %v2478_v26 = vpop.f32.mrf.mxu1 }
 0x201   :  { %v895_v43 = vmul.f32 %v2478_v26, %v887_v48 }
 0x202   :  { %v2482_v59 = vpop.f32.mrf.mxu1 }
 0x203   :  { %v894_v35 = vmul.f32 %v886_v29, %v2482_v59 }
 0x204   :  { %v2486_v60 = vpop.f32.mrf.mxu1 }
 0x205   :  { %v897_v32 = vmul.f32 %v2486_v60, %v889_v44  ;;  %v1131_v46 = vpack.c.bf16 %v895_v43, %v894_v35  ;;  %v1901_v43 = vld [vmem:[%s2664_s16 + $0x10] sm:$0xff]  }
 0x206   :  { %v2488_v30 = vpop.f32.mrf.mxu1 }
 0x207   :  { %v896_v21 = vmul.f32 %v888_v25, %v2488_v30 }
 0x208   :  { %v2490_v63 = vpop.f32.mrf.mxu1 }
 0x209   :  { %v899_v22 = vmul.f32 %v2490_v63, %v891_v36  ;;  %v1132_v38 = vpack.c.bf16 %v897_v32, %v896_v21 }
 0x20a   :  { %v2492_v3 = vpop.f32.mrf.mxu1 }
 0x20b   :  { %v898_v41 = vmul.f32 %v890_v9, %v2492_v3 }
 0x20c   :  { %v948_v5 = vpop.f32.mrf.mxu1 }
 0x20d   :  { %v949_v8 = vadd.f32 %v948_v5, %v909_v42  ;;  %v1133_v27 = vpack.c.bf16 %v899_v22, %v898_v41  ;;  %v885_v42 = vmax.f32 %v857_v31, 0.0  ;;  %v980_v41 = vpop.permute.xlu1 %979 }
 0x20e   :  { %v1822_v10 = vpop.f32.mrf.mxu1 }
 0x20f   :  { %v954_v37 = vmax.f32 %v949_v8, 0.0  ;;  %v893_v50 = vmul.f32 %v2474_v52, %v885_v42  ;;  %v1900_v42 = vld [vmem:[%s2664_s16 + $0x8] sm:$0xff]  }
 0x210   :  { %v951_v14 = vpop.f32.mrf.mxu1 }
 0x211   :  { %v963_v15 = vpack.c.bf16 %v954_v37, %v954_v37  ;;  %v1130_v51 = vpack.c.bf16 %v893_v50, %v892_v45  ;;  %v1248_v31 = vpop.permute.xlu1 %1247  ;;  %v1902_v45 = vld [vmem:[%s2664_s16 + $0x18] sm:$0xff]   ;;  %v1904_v50 = vld [vmem:[%s2664_s16 + $0x28] sm:$0xff]  }
 0x212   :  { %v1823_v16 = vpop.f32.mrf.mxu1 }
 0x213   :  { %1877 = vmatprep.subr.msk.bf16.mxu0 %vm815_vm5, %v963_v15  ;;  %v1045_v18 = vsel %vm815_vm5, %v963_v15, 0 }
 0x214   :  { %1825 = vmatpush3.bf16.msra.mxu0 %v1045_v18  ;;  %v975_v18 = vpop.permute.xlu0 %974 }
 0x215   :  { %1846 = vmatprep.subr.bf16.mxu0 %v1972_v58 }
 0x217   :  { %1827 = vmatmul.mubr.msk.bf16.vlgmr.msra.gmra.mxu0 %vm802_vm3, %v1894_v19 }
 0x218   :  { %1847 = vmatpush3.bf16.msra.mxu0 %v1133_v27  ;;  %1830 = vmatprep.mubr.msk.bf16.mxu0 %vm802_vm3, %v1895_v23  ;;  %v1243_v21 = vpop.permute.xlu0 %1242 }
 0x219   :  { %1848 = vmatprep.subr.bf16.mxu0 %v1972_v58 }
 0x21c   :  { %1849 = vmatpush3.bf16.msra.mxu0 %v1132_v38 }
 0x21d   :  { %1850 = vmatprep.subr.bf16.mxu0 %v1972_v58 }
 0x21f   :  { %1831 = vmatmul.mubr.msk.bf16.gmra.mxu0 %vm802_vm3, %v1896_v39 }
 0x220   :  { %1851 = vmatpush3.bf16.msra.mxu0 %v1131_v46  ;;  %1854 = vmatprep.mubr.msk.bf16.mxu0 %vm1973_vm1, %v1972_v58  ;;  %v1903_v46 = vld [vmem:[%s2664_s16 + $0x20] sm:$0xff]  }
 0x221   :  { %1852 = vmatprep.subr.bf16.mxu0 %v1972_v58 }
 0x224   :  { %1853 = vmatpush3.bf16.msra.mxu0 %v1130_v51  ;;  %v1905_v51 = vld [vmem:[%s2664_s16 + $0x30] sm:$0xff]  }
 0x227   :  { %1855 = vmatmul.mubr.msk.bf16.vlgmr.msra.gmra.mxu0 %vm680_vm2, %v1898_v53  ;;  %v1906_v53 = vld [vmem:[%s2664_s16 + $0x38] sm:$0xff]  }
 0x2d7   :  { %v1828_v54 = vpop.f32.mrf.mxu0 }
 0x2d8   :  { %v1090_v36 = vadd.f32 %v1828_v54, %v2494_v11  ;;  %v1290_v54 = vpop.permute.xlu0 %1289 }
 0x2d9   :  { %v1081_v56 = vpop.f32.mrf.mxu0 }
 0x2da   :  { %v1114_v19 = vmax.f32 %v1090_v36, 0.0 }
 0x2db   :  { %v1829_v61 = vpop.f32.mrf.mxu0 }
 0x2dc   :  { %v1093_v10 = vadd.f32 %v1829_v61, %v2496_v12  ;;  %v1082_v12 = vadd.f32 %v1081_v56, %v975_v18  ;;  %v1295_v56 = vpop.permute.xlu1 %1294  ;;  %v1300_v61 = vpop.permute.xlu0 %1299 }
 0x2dd   :  { %v1084_v62 = vpop.f32.mrf.mxu0 }
 0x2de   :  { %v1115_v16 = vmax.f32 %v1093_v10, 0.0  ;;  %v1085_v17 = vadd.f32 %v1084_v62, %v980_v41  ;;  %v1112_v25 = vmax.f32 %v1082_v12, 0.0 }
 0x2df   :  { %v1832_v0 = vpop.f32.mrf.mxu0 }
 0x2e0   :  { %v1106_v1 = vadd.f32 %v1832_v0, %v2470_v47  ;;  %v1120_v22 = vmul.f32 %v1112_v25, %v2476_v55  ;;  %v1305_v62 = vpop.permute.xlu1 %1304  ;;  %v1310_v0 = vpop.permute.xlu0 %1309 }
 0x2e1   :  { %v1097_v2 = vpop.f32.mrf.mxu0 }
 0x2e2   :  { %v1118_v5 = vmax.f32 %v1106_v1, 0.0  ;;  %v1098_v34 = vadd.f32 %v1097_v2, %v2480_v57 }
 0x2e3   :  { %v1833_v4 = vpop.f32.mrf.mxu0 }
 0x2e4   :  { %v1109_v8 = vadd.f32 %v1833_v4, %v2472_v49  ;;  %v1126_v40 = vmul.f32 %v1118_v5, %v2492_v3  ;;  %v1116_v14 = vmax.f32 %v1098_v34, 0.0  ;;  %v1113_v3 = vmax.f32 %v1085_v17, 0.0  ;;  %v1315_v1 = vpop.permute.xlu1 %1314  ;;  %v1320_v2 = vpop.permute.xlu0 %1319 }
 0x2e5   :  { %v1100_v9 = vpop.f32.mrf.mxu0 }
 0x2e6   :  { %v1119_v37 = vmax.f32 %v1109_v8, 0.0  ;;  %v1101_v13 = vadd.f32 %v1100_v9, %v2484_v28  ;;  %v1124_v24 = vmul.f32 %v1116_v14, %v2488_v30  ;;  %v1123_v28 = vmul.f32 %v2478_v26, %v1115_v16  ;;  %v1897_v26 = vld [vmem:[%s2663_s14] sm:$0xff]  }
 0x2e8   :  { %v1127_v47 = vmul.f32 %v2490_v63, %v1119_v37  ;;  %v1117_v15 = vmax.f32 %v1101_v13, 0.0  ;;  %v1122_v63 = vmul.f32 %v1114_v19, %v2482_v59  ;;  %v1231_v59 = vpop.f32.mrf.mxu0  ;;  %v1325_v10 = vpop.permute.xlu1 %1324 }
 0x2ea   :  { %v1139_v57 = vpack.c.bf16 %v1127_v47, %v1126_v40  ;;  %v1125_v49 = vmul.f32 %v2486_v60, %v1117_v15  ;;  %v1137_v44 = vpack.c.bf16 %v1123_v28, %v1122_v63  ;;  %v1121_v60 = vmul.f32 %v2474_v52, %v1113_v3  ;;  %v1856_v23 = vpop.f32.mrf.mxu0  ;;  %v1899_v52 = vld [vmem:[%s2664_s16] sm:$0xff]   ;;  %v1330_v40 = vpop.permute.xlu0 %1329 }
 0x2ec   :  { %1835 = vmatpush3.bf16.msra.mxu1 %v1139_v57  ;;  %v1138_v11 = vpack.c.bf16 %v1125_v49, %v1124_v24  ;;  %v1136_v30 = vpack.c.bf16 %v1121_v60, %v1120_v22  ;;  %v1234_v20 = vpop.f32.mrf.mxu0  ;;  %v1335_v57 = vpop.permute.xlu1 %1334 }
 0x2ed   :  { %1836 = vmatprep.subr.bf16.mxu1 %v1972_v58 }
 0x2ee   :  { %v1857_v6 = vpop.f32.mrf.mxu0  ;;  %v1340_v12 = vpop.permute.xlu0 %1339 }
 0x2f0   :  { %1837 = vmatpush3.bf16.msra.mxu1 %v1138_v11 }
 0x2f1   :  { %1838 = vmatprep.subr.bf16.mxu1 %v1972_v58 }
 0x2f4   :  { %1839 = vmatpush3.bf16.msra.mxu1 %v1137_v44  ;;  %v1345_v44 = vpop.permute.xlu1 %1344 }
 0x2f5   :  { %1840 = vmatprep.subr.bf16.mxu1 %v1972_v58 }
 0x2f8   :  { %1841 = vmatpush3.bf16.msra.mxu1 %v1136_v30 }
 0x2fb   :  { %1843 = vmatmul.mubr.msk.bf16.vlgmr.msra.gmra.mxu1 %vm680_vm2, %v1897_v26  ;;  %v1350_v26 = vpop.permute.xlu0 %1349 }
 0x2fc   :  { %1860 = vmatprep.mubr.msk.bf16.mxu1 %vm1407_vm7, %v1899_v52 }
 0x3bb   :  { %v1182_v58 = vpop.f32.mrf.mxu1 }
 0x3bc   :  { %v1232_v55 = vadd.f32 %v1231_v59, %v1182_v58 }
 0x3bd   :  { %v1844_v7 = vpop.f32.mrf.mxu1 }
 0x3be   :  { %v1250_v29 = vadd.f32 %v1243_v21, %v1232_v55  ;;  %v1355_v55 = vpop.permute.xlu1 %1354 }
 0x3bf   :  { %v1185_v27 = vpop.f32.mrf.mxu1 }
 0x3c0   :  { %v1235_v48 = vadd.f32 %v1234_v20, %v1185_v27  ;;  %v1252_v35 = vmax.f32 %v1250_v29, 0.0  ;;  %v1360_v29 = vpop.permute.xlu0 %1359 }
 0x3c1   :  { %v1845_v32 = vpop.f32.mrf.mxu1 }
 0x3c2   :  { %v1251_v33 = vadd.f32 %v1248_v31, %v1235_v48 }
 0x3c4   :  { %v1253_v38 = vmax.f32 %v1251_v33, 0.0 }
 0x3c6   :  { %v1270_v39 = vpack.c.bf16 %v1253_v38, %v1252_v35 }
 0x3c8   :  { %1858 = vmatprep.subr.bf16.mxu1 %v1270_v39 }
 0x3c9   :  { %1859 = vmatpush3.bf16.msra.mxu1 %v1270_v39  ;;  %v1365_v39 = vpop.permute.xlu1 %1364 }
 0x3cc   :  { %1861 = vmatmul.mubr.msk.bf16.vlgmr.msra.gmra.mxu1 %vm1407_vm7, %v1900_v42 }
 0x3cd   :  { %1864 = vmatprep.mubr.msk.bf16.mxu1 %vm1407_vm7, %v1901_v43 }
 0x3d4   :  { %1865 = vmatmul.mubr.msk.bf16.gmra.mxu1 %vm1407_vm7, %v1902_v45 }
 0x3d5   :  { %1868 = vmatprep.mubr.msk.bf16.mxu1 %vm1407_vm7, %v1903_v46 }
 0x3dc   :  { %1869 = vmatmul.mubr.msk.bf16.gmra.mxu1 %vm1407_vm7, %v1904_v50 }
 0x3dd   :  { %1872 = vmatprep.mubr.msk.bf16.mxu1 %vm1407_vm7, %v1905_v51 }
 0x3e4   :  { %1873 = vmatmul.mubr.msk.bf16.gmra.mxu1 %vm1407_vm7, %v1906_v53 }
 0x48c   :  { %v1862_v4 = vpop.f32.mrf.mxu1 }
 0x48d   :  { %v1475_v5 = vadd.f32 %v1862_v4, %v1300_v61 }
 0x48e   :  { %v1466_v34 = vpop.f32.mrf.mxu1 }
 0x48f   :  { %v1531_v8 = vmax.f32 %v1475_v5, 0.0  ;;  %v1467_v9 = vadd.f32 %v1466_v34, %v1290_v54 }
 0x490   :  { %v1863_v37 = vpop.f32.mrf.mxu1 }
 0x491   :  { %1547 = vst.msk [vmem:[%s2665_s18 + $0x10] sm:$0xff] %vm136_vm0, %v1531_v8  ;;  %v1529_v13 = vmax.f32 %v1467_v9, 0.0  ;;  %v1478_v36 = vadd.f32 %v1863_v37, %v1305_v62 }
 0x492   :  { %v1469_v14 = vpop.f32.mrf.mxu1 }
 0x493   :  { %1545 = vst.msk [vmem:[%s2665_s18] sm:$0xff] %vm136_vm0, %v1529_v13  ;;  %v1532_v47 = vmax.f32 %v1478_v36, 0.0  ;;  %v1470_v15 = vadd.f32 %v1469_v14, %v1295_v56 }
 0x494   :  { %v1866_v41 = vpop.f32.mrf.mxu1 }
 0x495   :  { %1548 = vst.msk [vmem:[%s2665_s18 + $0x18] sm:$0xff] %vm136_vm0, %v1532_v47  ;;  %v1530_v16 = vmax.f32 %v1470_v15, 0.0  ;;  %v1491_v17 = vadd.f32 %v1866_v41, %v1320_v2 }
 0x496   :  { %v1482_v49 = vpop.f32.mrf.mxu1 }
 0x497   :  { %1546 = vst.msk [vmem:[%s2665_s18 + $0x8] sm:$0xff] %vm136_vm0, %v1530_v16  ;;  %v1535_v18 = vmax.f32 %v1491_v17, 0.0  ;;  %v1483_v19 = vadd.f32 %v1482_v49, %v1310_v0 }
 0x498   :  { %v1867_v24 = vpop.f32.mrf.mxu1 }
 0x499   :  { %1551 = vst.msk [vmem:[%s2665_s18 + $0x30] sm:$0xff] %vm136_vm0, %v1535_v18  ;;  %v1533_v28 = vmax.f32 %v1483_v19, 0.0  ;;  %v1494_v3 = vadd.f32 %v1867_v24, %v1325_v10 }
 0x49a   :  { %v1485_v11 = vpop.f32.mrf.mxu1 }
 0x49b   :  { %1549 = vst.msk [vmem:[%s2665_s18 + $0x20] sm:$0xff] %vm136_vm0, %v1533_v28  ;;  %v1536_v63 = vmax.f32 %v1494_v3, 0.0  ;;  %v1486_v25 = vadd.f32 %v1485_v11, %v1315_v1 }
 0x49c   :  { %v1870_v60 = vpop.f32.mrf.mxu1 }
 0x49d   :  { %1552 = vst.msk [vmem:[%s2665_s18 + $0x38] sm:$0xff] %vm136_vm0, %v1536_v63  ;;  %v1534_v22 = vmax.f32 %v1486_v25, 0.0  ;;  %v1507_v30 = vadd.f32 %v1870_v60, %v1340_v12 }
 0x49e   :  { %v1498_v59 = vpop.f32.mrf.mxu1 }
 0x49f   :  { %1550 = vst.msk [vmem:[%s2665_s18 + $0x28] sm:$0xff] %vm136_vm0, %v1534_v22  ;;  %v1539_v23 = vmax.f32 %v1507_v30, 0.0  ;;  %v1499_v20 = vadd.f32 %v1498_v59, %v1330_v40 }
 0x4a0   :  { %v1871_v6 = vpop.f32.mrf.mxu1 }
 0x4a1   :  { %1555 = vst.msk [vmem:[%s2665_s18 + $0x50] sm:$0xff] %vm136_vm0, %v1539_v23  ;;  %v1537_v52 = vmax.f32 %v1499_v20, 0.0  ;;  %v1510_v58 = vadd.f32 %v1871_v6, %v1345_v44 }
 0x4a2   :  { %v1501_v7 = vpop.f32.mrf.mxu1 }
 0x4a3   :  { %1553 = vst.msk [vmem:[%s2665_s18 + $0x40] sm:$0xff] %vm136_vm0, %v1537_v52  ;;  %v1540_v21 = vmax.f32 %v1510_v58, 0.0  ;;  %v1502_v27 = vadd.f32 %v1501_v7, %v1335_v57 }
 0x4a4   :  { %v1874_v48 = vpop.f32.mrf.mxu1 }
 0x4a5   :  { %1556 = vst.msk [vmem:[%s2665_s18 + $0x58] sm:$0xff] %vm136_vm0, %v1540_v21  ;;  %v1538_v31 = vmax.f32 %v1502_v27, 0.0  ;;  %v1523_v32 = vadd.f32 %v1874_v48, %v1360_v29 }
 0x4a6   :  { %v1514_v33 = vpop.f32.mrf.mxu1 }
 0x4a7   :  { %1554 = vst.msk [vmem:[%s2665_s18 + $0x48] sm:$0xff] %vm136_vm0, %v1538_v31  ;;  %v1543_v35 = vmax.f32 %v1523_v32, 0.0  ;;  %v1515_v38 = vadd.f32 %v1514_v33, %v1350_v26 }
 0x4a8   :  { %v1875_v42 = vpop.f32.mrf.mxu1 }
 0x4a9   :  { %1559 = vst.msk [vmem:[%s2665_s18 + $0x70] sm:$0xff] %vm136_vm0, %v1543_v35  ;;  %v1541_v43 = vmax.f32 %v1515_v38, 0.0  ;;  %v1526_v45 = vadd.f32 %v1875_v42, %v1365_v39 }
 0x4aa   :  { %v1517_v46 = vpop.f32.mrf.mxu1 }
 0x4ab   :  { %1557 = vst.msk [vmem:[%s2665_s18 + $0x60] sm:$0xff] %vm136_vm0, %v1541_v43  ;;  %v1544_v50 = vmax.f32 %v1526_v45, 0.0  ;;  %v1518_v51 = vadd.f32 %v1517_v46, %v1355_v55 }
 0x4ad   :  { %1560 = vst.msk [vmem:[%s2665_s18 + $0x78] sm:$0xff] %vm136_vm0, %v1544_v50  ;;  %v1542_v53 = vmax.f32 %v1518_v51, 0.0 }
 0x4af   :  { %1558 = vst.msk [vmem:[%s2665_s18 + $0x68] sm:$0xff] %vm136_vm0, %v1542_v53 }

// kernel: branch_1_fun.8
= control target key start
LH: loop header
LB: loop body
LE: loop exit
PB: predicated region body
PF: predicated region fallthrough
CT: control target
= control target key end

     0   :  { %vm116_vm0 = vcmask 261120   ;;  %s2538_s24 = smov 96   ;;  %vm1904_vm1 = vcmask 253952   ;;  %s3422_s0 = inlined_call_operand.vmem [shape: f32[128,96], index: 0, kind: input, shape index: {}]   ;;  %s3423_s3 = inlined_call_operand.vmem [shape: bf16[32,32], index: 3, kind: input, shape index: {}]   ;;  %s3424_s1 = inlined_call_operand.vmem [shape: bf16[32,32], index: 1, kind: input, shape index: {}]   ;;  %s3425_s5 = inlined_call_operand.vmem [shape: bf16[32,32], index: 5, kind: input, shape index: {}]   ;;  %s3426_s7 = inlined_call_operand.vmem [shape: bf16[32,32], index: 7, kind: input, shape index: {}]   ;;  %s3427_s9 = inlined_call_operand.vmem [shape: bf16[32,32], index: 9, kind: input, shape index: {}]   ;;  %s3428_s4 = inlined_call_operand.vmem [shape: f32[1,32], index: 4, kind: input, shape index: {}]   ;;  %s3429_s11 = inlined_call_operand.vmem [shape: bf16[32,32], index: 11, kind: input, shape index: {}]   ;;  %s3430_s2 = inlined_call_operand.vmem [shape: f32[1,32], index: 2, kind: input, shape index: {}]   ;;  %s3431_s6 = inlined_call_operand.vmem [shape: f32[1,32], index: 6, kind: input, shape index: {}]   ;;  %s3432_s8 = inlined_call_operand.vmem [shape: f32[1,32], index: 8, kind: input, shape index: {}]   ;;  %s3433_s10 = inlined_call_operand.vmem [shape: f32[1,32], index: 10, kind: input, shape index: {}]   ;;  %s3434_s12 = inlined_call_operand.vmem [shape: f32[1,32], index: 12, kind: input, shape index: {}]   ;;  %s3435_s13 = inlined_call_operand.vmem [shape: f32[1,32], index: 13, kind: output, shape index: {}]  }
   0x1   :  { %v45_v0 = vld [vmem:[%s3422_s0] sm:$0xff]  ;;  %v46_v1 = vld [vmem:[%s3422_s0 + $0x8] sm:$0xff]  ;;  %v47_v2 = vld [vmem:[%s3422_s0 + $0x10] sm:$0xff] }
   0x2   :  { %v2619_v3 = vpack.c.bf16 %v46_v1, %v45_v0  ;;  %v48_v4 = vld [vmem:[%s3422_s0 + $0x18] sm:$0xff]  ;;  %v49_v5 = vld [vmem:[%s3422_s0 + $0x20] sm:$0xff]  ;;  %v50_v6 = vld [vmem:[%s3422_s0 + $0x28] sm:$0xff] }
   0x3   :  { %v2630_v7 = vpack.c.bf16 %v50_v6, %v49_v5  ;;  %v51_v8 = vld [vmem:[%s3422_s0 + $0x30] sm:$0xff]  ;;  %v52_v9 = vld [vmem:[%s3422_s0 + $0x38] sm:$0xff]  ;;  %v2640_v10 = vpack.c.bf16 %v48_v4, %v47_v2  ;;  %v53_v11 = vld [vmem:[%s3422_s0 + $0x40] sm:$0xff] }
   0x4   :  { %88 = vrot.lane.b32.xlu0 %v2619_v3, %s2538_s24  ;;  %v54_v12 = vld [vmem:[%s3422_s0 + $0x48] sm:$0xff]  ;;  %2140 = vmatprep.mubr.msk.bf16.mxu1 %vm116_vm0, %v2619_v3  ;;  %v2652_v13 = vpack.c.bf16 %v52_v9, %v51_v8  ;;  %v55_v15 = vld [vmem:[%s3422_s0 + $0x50] sm:$0xff]  ;;  %v56_v16 = vld [vmem:[%s3422_s0 + $0x58] sm:$0xff] }
   0x5   :  { %92 = vrot.lane.b32.xlu1 %v2630_v7, %s2538_s24  ;;  %v2382_v14 = vld [vmem:[%s3423_s3 + $0x8] sm:$0xff]   ;;  %v57_v17 = vld [vmem:[%s3422_s0 + $0x60] sm:$0xff]  ;;  %v2671_v19 = vpack.c.bf16 %v54_v12, %v53_v11  ;;  %v59_v20 = vld [vmem:[%s3422_s0 + $0x70] sm:$0xff]  ;;  %v2684_v23 = vpack.c.bf16 %v56_v16, %v55_v15 }
   0x6   :  { %2136 = vmatprep.subr.bf16.mxu1 %v2382_v14  ;;  %v58_v18 = vld [vmem:[%s3422_s0 + $0x68] sm:$0xff]  ;;  %v60_v21 = vld [vmem:[%s3422_s0 + $0x78] sm:$0xff]  ;;  %v2383_v22 = vld [vmem:[%s3423_s3] sm:$0xff]  }
   0x7   :  { %2137 = vmatpush3.bf16.msra.mxu1 %v2382_v14  ;;  %v2384_v24 = vld [vmem:[%s3424_s1 + $0x8] sm:$0xff]   ;;  %v2385_v25 = vld [vmem:[%s3424_s1] sm:$0xff]   ;;  %v2694_v26 = vpack.c.bf16 %v58_v18, %v57_v17  ;;  %v68_v27 = vpack.c.bf16 %v60_v21, %v59_v20  ;;  %s2539_s1 = smov 64  }
   0x8   :  { %90 = vrot.lane.b32.xlu0 %v2640_v10, %s2538_s24  ;;  %2138 = vmatprep.subr.bf16.mxu1 %v2383_v22  ;;  %v2386_v28 = vld [vmem:[%s3425_s5 + $0x8] sm:$0xff]   ;;  %v2387_v31 = vld [vmem:[%s3425_s5] sm:$0xff]  }
   0x9   :  { %94 = vrot.lane.b32.xlu1 %v2652_v13, %s2538_s24  ;;  %2116 = vmatprep.subr.bf16.mxu0 %v2384_v24  ;;  %v2388_v33 = vld [vmem:[%s3426_s7 + $0x8] sm:$0xff]   ;;  %v2389_v39 = vld [vmem:[%s3426_s7] sm:$0xff]  }
   0xa   :  { %2117 = vmatpush3.bf16.msra.mxu0 %v2384_v24  ;;  %v2390_v40 = vld [vmem:[%s3427_s9 + $0x8] sm:$0xff]   ;;  %v2391_v41 = vld [vmem:[%s3427_s9] sm:$0xff]  }
   0xb   :  { %2139 = vmatpush3.bf16.msra.mxu1 %v2383_v22  ;;  %2118 = vmatprep.subr.bf16.mxu0 %v2385_v25  ;;  %v2774_v44 = vld [vmem:[%s3428_s4] ss:$0 sm:$0xff] }
   0xc   :  { %96 = vrot.lane.b32.xlu0 %v2671_v19, %s2538_s24 }
   0xd   :  { %98 = vrot.lane.b32.xlu1 %v2684_v23, %s2538_s24 }
   0xe   :  { %2141 = vmatmul.mubr.msk.bf16.vlgmr.msra.gmra.mxu1 %vm116_vm0, %v2640_v10  ;;  %2119 = vmatpush3.bf16.msra.mxu0 %v2385_v25 }
   0xf   :  { %2144 = vmatprep.mubr.msk.bf16.mxu1 %vm116_vm0, %v2630_v7  ;;  %2156 = vmatprep.subr.bf16.mxu0 %v2386_v28 }
  0x10   :  { %100 = vrot.lane.b32.xlu0 %v2694_v26, %s2538_s24 }
  0x11   :  { %102 = vrot.lane.b32.xlu1 %v68_v27, %s2538_s24 }
  0x14   :  { %970 = vrot.lane.b32.xlu0 %v2619_v3, %s2539_s1 }
  0x15   :  { %972 = vrot.lane.b32.xlu1 %v2640_v10, %s2539_s1 }
  0x16   :  { %2145 = vmatmul.mubr.msk.bf16.gmra.mxu1 %vm116_vm0, %v2652_v13 }
  0x17   :  { %2148 = vmatprep.mubr.msk.bf16.mxu1 %vm116_vm0, %v2671_v19 }
  0x18   :  { %974 = vrot.lane.b32.xlu0 %v2630_v7, %s2539_s1 }
  0x19   :  { %976 = vrot.lane.b32.xlu1 %v2652_v13, %s2539_s1 }
  0x1c   :  { %978 = vrot.lane.b32.xlu0 %v2671_v19, %s2539_s1 }
  0x1d   :  { %980 = vrot.lane.b32.xlu1 %v2684_v23, %s2539_s1 }
  0x1e   :  { %2149 = vmatmul.mubr.msk.bf16.gmra.mxu1 %vm116_vm0, %v2684_v23 }
  0x1f   :  { %2152 = vmatprep.mubr.msk.bf16.mxu1 %vm116_vm0, %v2694_v26 }
  0x20   :  { %982 = vrot.lane.b32.xlu0 %v2694_v26, %s2539_s1 }
  0x21   :  { %984 = vrot.lane.b32.xlu1 %v68_v27, %s2539_s1 }
  0x26   :  { %2153 = vmatmul.mubr.msk.bf16.gmra.mxu1 %vm116_vm0, %v68_v27 }
  0x76   :  { %v89_v29 = vpop.permute.xlu0 %88 }
  0x77   :  { %2120 = vmatprep.mubr.msk.bf16.mxu0 %vm116_vm0, %v89_v29  ;;  %v93_v30 = vpop.permute.xlu1 %92 }
  0x7a   :  { %v91_v32 = vpop.permute.xlu0 %90 }
  0x7b   :  { %2121 = vmatmul.mubr.msk.bf16.vlgmr.msra.gmra.mxu0 %vm116_vm0, %v91_v32  ;;  %v95_v34 = vpop.permute.xlu1 %94 }
  0x7c   :  { %2157 = vmatpush3.bf16.msra.mxu0 %v2386_v28  ;;  %2124 = vmatprep.mubr.msk.bf16.mxu0 %vm116_vm0, %v93_v30 }
  0x7d   :  { %2158 = vmatprep.subr.bf16.mxu0 %v2387_v31 }
  0x7e   :  { %v97_v35 = vpop.permute.xlu0 %96 }
  0x7f   :  { %v99_v36 = vpop.permute.xlu1 %98 }
  0x80   :  { %2159 = vmatpush3.bf16.msra.mxu0 %v2387_v31 }
  0x81   :  { %2208 = vmatprep.subr.bf16.mxu0 %v2388_v33 }
  0x82   :  { %v101_v37 = vpop.permute.xlu0 %100 }
  0x83   :  { %2125 = vmatmul.mubr.msk.bf16.gmra.mxu0 %vm116_vm0, %v95_v34  ;;  %v103_v38 = vpop.permute.xlu1 %102 }
  0x84   :  { %2128 = vmatprep.mubr.msk.bf16.mxu0 %vm116_vm0, %v97_v35 }
  0x86   :  { %v2769_v43 = vpop.permute.xlu0 %970 }
  0x87   :  { %v2785_v54 = vpop.permute.xlu1 %972 }
  0x8a   :  { %v2789_v56 = vpop.permute.xlu0 %974 }
  0x8b   :  { %2129 = vmatmul.mubr.msk.bf16.gmra.mxu0 %vm116_vm0, %v99_v36  ;;  %v2795_v61 = vpop.permute.xlu1 %976 }
  0x8c   :  { %2132 = vmatprep.mubr.msk.bf16.mxu0 %vm116_vm0, %v101_v37 }
  0x8e   :  { %v2797_v62 = vpop.permute.xlu0 %978 }
  0x92   :  { %v2805_v4 = vpop.permute.xlu0 %982 }
  0x93   :  { %2133 = vmatmul.mubr.msk.bf16.gmra.mxu0 %vm116_vm0, %v103_v38 }
  0x94   :  { %2160 = vmatprep.mubr.msk.bf16.mxu0 %vm116_vm0, %v2619_v3  ;;  %v2803_v3 = vpop.permute.xlu1 %980 }
  0x9b   :  { %2161 = vmatmul.mubr.msk.bf16.vlgmr.msra.gmra.mxu0 %vm116_vm0, %v2640_v10 }
  0x9c   :  { %2209 = vmatpush3.bf16.msra.mxu0 %v2388_v33  ;;  %2164 = vmatprep.mubr.msk.bf16.mxu0 %vm116_vm0, %v2630_v7 }
  0x9d   :  { %2210 = vmatprep.subr.bf16.mxu0 %v2389_v39 }
  0xa0   :  { %2211 = vmatpush3.bf16.msra.mxu0 %v2389_v39  ;;  %v1910_v39 = vld [vmem:[%s3430_s2] ss:$0 sm:$0xff] }
  0xa1   :  { %2228 = vmatprep.subr.bf16.mxu0 %v2390_v40 }
  0xa3   :  { %2165 = vmatmul.mubr.msk.bf16.gmra.mxu0 %vm116_vm0, %v2652_v13  ;;  %v2815_v13 = vpop.permute.xlu1 %984 }
  0xa4   :  { %2168 = vmatprep.mubr.msk.bf16.mxu0 %vm116_vm0, %v2671_v19 }
  0xab   :  { %2169 = vmatmul.mubr.msk.bf16.gmra.mxu0 %vm116_vm0, %v2684_v23 }
  0xac   :  { %2172 = vmatprep.mubr.msk.bf16.mxu0 %vm116_vm0, %v2694_v26 }
  0xb3   :  { %2173 = vmatmul.mubr.msk.bf16.gmra.mxu0 %vm116_vm0, %v68_v27 }
  0xb4   :  { %2212 = vmatprep.mubr.msk.bf16.mxu0 %vm116_vm0, %v89_v29 }
  0xbb   :  { %2213 = vmatmul.mubr.msk.bf16.vlgmr.msra.gmra.mxu0 %vm116_vm0, %v91_v32 }
  0xbc   :  { %2229 = vmatpush3.bf16.msra.mxu0 %v2390_v40  ;;  %2216 = vmatprep.mubr.msk.bf16.mxu0 %vm116_vm0, %v93_v30 }
  0xbd   :  { %2230 = vmatprep.subr.bf16.mxu0 %v2391_v41 }
  0xc0   :  { %2231 = vmatpush3.bf16.msra.mxu0 %v2391_v41 }
  0xc3   :  { %2217 = vmatmul.mubr.msk.bf16.gmra.mxu0 %vm116_vm0, %v95_v34 }
  0xc4   :  { %2220 = vmatprep.mubr.msk.bf16.mxu0 %vm116_vm0, %v97_v35  ;;  %v2392_v35 = vld [vmem:[%s3429_s11 + $0x8] sm:$0xff]  }
  0xcb   :  { %2221 = vmatmul.mubr.msk.bf16.gmra.mxu0 %vm116_vm0, %v99_v36 }
  0xcc   :  { %2224 = vmatprep.mubr.msk.bf16.mxu0 %vm116_vm0, %v101_v37 }
  0xce   :  { %v2142_v42 = vpop.f32.mrf.mxu1 }
  0xcf   :  { %v328_v46 = vadd.f32 %v2142_v42, %v2774_v44 }
  0xd0   :  { %v319_v45 = vpop.f32.mrf.mxu1 }
  0xd1   :  { %v320_v48 = vadd.f32 %v2774_v44, %v319_v45 }
  0xd2   :  { %v2143_v47 = vpop.f32.mrf.mxu1 }
  0xd3   :  { %2225 = vmatmul.mubr.msk.bf16.gmra.mxu0 %vm116_vm0, %v103_v38  ;;  %v331_v49 = vadd.f32 %v2143_v47, %v2774_v44 }
  0xd4   :  { %2232 = vmatprep.mubr.msk.bf16.mxu0 %vm116_vm0, %v2769_v43  ;;  %v322_v50 = vpop.f32.mrf.mxu1 }
  0xd5   :  { %v2782_v51 = vpack.c.bf16 %v331_v49, %v328_v46  ;;  %v323_v52 = vadd.f32 %v2774_v44, %v322_v50  ;;  %v2393_v50 = vld [vmem:[%s3429_s11] sm:$0xff]  }
  0xd6   :  { %v2146_v53 = vpop.f32.mrf.mxu1 }
  0xd7   :  { %v2787_v55 = vpack.c.bf16 %v323_v52, %v320_v48  ;;  %v344_v24 = vadd.f32 %v2146_v53, %v2774_v44  ;;  %v546_v33 = vsel %vm116_vm0, %v2782_v51, 0 }
  0xd8   :  { %v335_v57 = vpop.f32.mrf.mxu1 }
  0xd9   :  { %v336_v28 = vadd.f32 %v2774_v44, %v335_v57  ;;  %v543_v34 = vsel %vm116_vm0, %v2787_v55, 0 }
  0xda   :  { %v2147_v58 = vpop.f32.mrf.mxu1 }
  0xdb   :  { %2233 = vmatmul.mubr.msk.bf16.vlgmr.msra.gmra.mxu0 %vm116_vm0, %v2785_v54  ;;  %v347_v25 = vadd.f32 %v2147_v58, %v2774_v44 }
  0xdc   :  { %2236 = vmatprep.mubr.msk.bf16.mxu0 %vm116_vm0, %v2789_v56  ;;  %v338_v59 = vpop.f32.mrf.mxu1 }
  0xdd   :  { %v513_v26 = vpack.c.bf16 %v347_v25, %v344_v24  ;;  %v339_v29 = vadd.f32 %v2774_v44, %v338_v59 }
  0xde   :  { %v2150_v60 = vpop.f32.mrf.mxu1 }
  0xdf   :  { %v360_v16 = vadd.f32 %v2150_v60, %v2774_v44  ;;  %v512_v30 = vpack.c.bf16 %v339_v29, %v336_v28  ;;  %v552_v31 = vsel %vm116_vm0, %v513_v26, 0 }
  0xe0   :  { %v351_v63 = vpop.f32.mrf.mxu1 }
  0xe1   :  { %v352_v20 = vadd.f32 %v2774_v44, %v351_v63  ;;  %v549_v32 = vsel %vm116_vm0, %v512_v30, 0 }
  0xe2   :  { %v2151_v0 = vpop.f32.mrf.mxu1 }
  0xe3   :  { %2237 = vmatmul.mubr.msk.bf16.gmra.mxu0 %vm116_vm0, %v2795_v61  ;;  %v363_v17 = vadd.f32 %v2151_v0, %v2774_v44 }
  0xe4   :  { %2240 = vmatprep.mubr.msk.bf16.mxu0 %vm116_vm0, %v2797_v62  ;;  %v354_v1 = vpop.f32.mrf.mxu1 }
  0xe5   :  { %v515_v18 = vpack.c.bf16 %v363_v17, %v360_v16  ;;  %v355_v21 = vadd.f32 %v2774_v44, %v354_v1  ;;  %v1932_v17 = vld [vmem:[%s3431_s6] ss:$0 sm:$0xff] }
  0xe6   :  { %v2154_v2 = vpop.f32.mrf.mxu1 }
  0xe7   :  { %v376_v6 = vadd.f32 %v2154_v2, %v2774_v44  ;;  %v514_v22 = vpack.c.bf16 %v355_v21, %v352_v20  ;;  %v558_v23 = vsel %vm116_vm0, %v515_v18, 0 }
  0xe8   :  { %v367_v5 = vpop.f32.mrf.mxu1 }
  0xe9   :  { %v368_v8 = vadd.f32 %v2774_v44, %v367_v5  ;;  %v555_v27 = vsel %vm116_vm0, %v514_v22, 0 }
  0xea   :  { %v2155_v7 = vpop.f32.mrf.mxu1 }
  0xeb   :  { %2241 = vmatmul.mubr.msk.bf16.gmra.mxu0 %vm116_vm0, %v2803_v3  ;;  %v379_v9 = vadd.f32 %v2155_v7, %v2774_v44 }
  0xec   :  { %2244 = vmatprep.mubr.msk.bf16.mxu0 %vm116_vm0, %v2805_v4  ;;  %v370_v10 = vpop.f32.mrf.mxu1 }
  0xed   :  { %v517_v11 = vpack.c.bf16 %v379_v9, %v376_v6  ;;  %v371_v12 = vadd.f32 %v2774_v44, %v370_v10 }
  0xef   :  { %2364 = vmatprep.subr.msk.bf16.mxu1 %vm116_vm0, %v517_v11  ;;  %v564_v14 = vsel %vm116_vm0, %v517_v11, 0  ;;  %v516_v15 = vpack.c.bf16 %v371_v12, %v368_v8 }
  0xf0   :  { %2177 = vmatpush3.bf16.xpose.msra.mxu1 %v564_v14 }
  0xf1   :  { %2365 = vmatprep.subr.msk.bf16.mxu1 %vm116_vm0, %v516_v15  ;;  %v561_v19 = vsel %vm116_vm0, %v516_v15, 0 }
  0xf3   :  { %2245 = vmatmul.mubr.msk.bf16.gmra.mxu0 %vm116_vm0, %v2815_v13 }
  0xf8   :  { %2179 = vmatpush3.bf16.xpose.msra.mxu1 %v561_v19 }
  0xf9   :  { %2366 = vmatprep.subr.msk.bf16.mxu1 %vm116_vm0, %v515_v18 }
 0x100   :  { %2181 = vmatpush3.bf16.xpose.msra.mxu1 %v558_v23 }
 0x101   :  { %2367 = vmatprep.subr.msk.bf16.mxu1 %vm116_vm0, %v514_v22 }
 0x108   :  { %2183 = vmatpush3.bf16.xpose.msra.mxu1 %v555_v27 }
 0x109   :  { %2368 = vmatprep.subr.msk.bf16.mxu1 %vm116_vm0, %v513_v26 }
 0x110   :  { %2185 = vmatpush3.bf16.xpose.msra.mxu1 %v552_v31 }
 0x111   :  { %2369 = vmatprep.subr.msk.bf16.mxu1 %vm116_vm0, %v512_v30 }
 0x118   :  { %2187 = vmatpush3.bf16.xpose.msra.mxu1 %v549_v32 }
 0x119   :  { %2370 = vmatprep.subr.msk.bf16.mxu1 %vm116_vm0, %v2782_v51 }
 0x120   :  { %2189 = vmatpush3.bf16.xpose.msra.mxu1 %v546_v33 }
 0x121   :  { %2371 = vmatprep.subr.msk.bf16.mxu1 %vm116_vm0, %v2787_v55 }
 0x128   :  { %2191 = vmatpush3.bf16.xpose.msra.mxu1 %v543_v34 }
 0x129   :  { %2248 = vmatprep.subr.bf16.mxu1 %v2392_v35 }
 0x13b   :  { %v2122_v36 = vpop.f32.mrf.mxu0 }
 0x13c   :  { %v184_v45 = vadd.f32 %v2122_v36, %v1910_v39 }
 0x13d   :  { %v175_v37 = vpop.f32.mrf.mxu0 }
 0x13e   :  { %v176_v42 = vadd.f32 %v1910_v39, %v175_v37 }
 0x13f   :  { %v2123_v38 = vpop.f32.mrf.mxu0 }
 0x140   :  { %v187_v40 = vadd.f32 %v2123_v38, %v1910_v39 }
 0x141   :  { %v178_v41 = vpop.f32.mrf.mxu0 }
 0x142   :  { %v179_v44 = vadd.f32 %v1910_v39, %v178_v41  ;;  %v503_v48 = vpack.c.bf16 %v187_v40, %v184_v45 }
 0x143   :  { %v2126_v46 = vpop.f32.mrf.mxu0 }
 0x144   :  { %v502_v47 = vpack.c.bf16 %v179_v44, %v176_v42  ;;  %v200_v58 = vadd.f32 %v2126_v46, %v1910_v39 }
 0x145   :  { %v191_v49 = vpop.f32.mrf.mxu0 }
 0x146   :  { %2192 = vmatprep.mubr.msk.bf16.mxu1 %vm116_vm0, %v502_v47  ;;  %v192_v55 = vadd.f32 %v1910_v39, %v191_v49 }
 0x147   :  { %v2127_v51 = vpop.f32.mrf.mxu0  ;;  %2193 = vmatmul.mubr.msk.bf16.vlgmr.msra.gmra.mxu1 %vm116_vm0, %v503_v48 }
 0x148   :  { %2249 = vmatpush3.bf16.msra.mxu1 %v2392_v35  ;;  %v203_v52 = vadd.f32 %v2127_v51, %v1910_v39 }
 0x149   :  { %v194_v53 = vpop.f32.mrf.mxu0  ;;  %2250 = vmatprep.subr.bf16.mxu1 %v2393_v50 }
 0x14a   :  { %v195_v57 = vadd.f32 %v1910_v39, %v194_v53  ;;  %v505_v63 = vpack.c.bf16 %v203_v52, %v200_v58 }
 0x14b   :  { %v2130_v59 = vpop.f32.mrf.mxu0 }
 0x14c   :  { %v504_v60 = vpack.c.bf16 %v195_v57, %v192_v55  ;;  %2251 = vmatpush3.bf16.msra.mxu1 %v2393_v50  ;;  %v216_v8 = vadd.f32 %v2130_v59, %v1910_v39 }
 0x14d   :  { %v207_v0 = vpop.f32.mrf.mxu0 }
 0x14e   :  { %2196 = vmatprep.mubr.msk.bf16.mxu1 %vm116_vm0, %v504_v60  ;;  %v208_v6 = vadd.f32 %v1910_v39, %v207_v0 }
 0x14f   :  { %v2131_v1 = vpop.f32.mrf.mxu0  ;;  %2197 = vmatmul.mubr.msk.bf16.gmra.mxu1 %vm116_vm0, %v505_v63 }
 0x150   :  { %v219_v2 = vadd.f32 %v2131_v1, %v1910_v39 }
 0x151   :  { %v210_v5 = vpop.f32.mrf.mxu0 }
 0x152   :  { %v211_v7 = vadd.f32 %v1910_v39, %v210_v5  ;;  %v507_v11 = vpack.c.bf16 %v219_v2, %v216_v8 }
 0x153   :  { %v2134_v9 = vpop.f32.mrf.mxu0 }
 0x154   :  { %v506_v10 = vpack.c.bf16 %v211_v7, %v208_v6  ;;  %v232_v20 = vadd.f32 %v2134_v9, %v1910_v39 }
 0x155   :  { %v223_v12 = vpop.f32.mrf.mxu0 }
 0x156   :  { %2200 = vmatprep.mubr.msk.bf16.mxu1 %vm116_vm0, %v506_v10  ;;  %v224_v18 = vadd.f32 %v1910_v39, %v223_v12 }
 0x157   :  { %v2135_v14 = vpop.f32.mrf.mxu0  ;;  %2201 = vmatmul.mubr.msk.bf16.gmra.mxu1 %vm116_vm0, %v507_v11 }
 0x158   :  { %v235_v15 = vadd.f32 %v2135_v14, %v1910_v39 }
 0x159   :  { %v226_v16 = vpop.f32.mrf.mxu0 }
 0x15a   :  { %v227_v19 = vadd.f32 %v1910_v39, %v226_v16  ;;  %v509_v24 = vpack.c.bf16 %v235_v15, %v232_v20 }
 0x15b   :  { %v2162_v21 = vpop.f32.mrf.mxu0 }
 0x15c   :  { %v508_v22 = vpack.c.bf16 %v227_v19, %v224_v18  ;;  %v448_v23 = vadd.f32 %v2162_v21, %v1932_v17 }
 0x15d   :  { %v439_v25 = vpop.f32.mrf.mxu0 }
 0x15e   :  { %v440_v26 = vadd.f32 %v1932_v17, %v439_v25  ;;  %2204 = vmatprep.mubr.msk.bf16.mxu1 %vm116_vm0, %v508_v22 }
 0x15f   :  { %v2163_v27 = vpop.f32.mrf.mxu0  ;;  %2205 = vmatmul.mubr.msk.bf16.gmra.mxu1 %vm116_vm0, %v509_v24 }
 0x160   :  { %v451_v28 = vadd.f32 %v2163_v27, %v1932_v17  ;;  %2252 = vmatprep.mubr.msk.bf16.mxu1 %vm116_vm0, %v2769_v43 }
 0x161   :  { %v442_v29 = vpop.f32.mrf.mxu0 }
 0x162   :  { %v2869_v30 = vpack.c.bf16 %v451_v28, %v448_v23  ;;  %v443_v31 = vadd.f32 %v1932_v17, %v442_v29 }
 0x163   :  { %v2166_v32 = vpop.f32.mrf.mxu0 }
 0x164   :  { %v2871_v33 = vpack.c.bf16 %v443_v31, %v440_v26  ;;  %v464_v34 = vadd.f32 %v2166_v32, %v1932_v17 }
 0x165   :  { %v455_v35 = vpop.f32.mrf.mxu0 }
 0x166   :  { %v456_v36 = vadd.f32 %v1932_v17, %v455_v35 }
 0x167   :  { %v2167_v37 = vpop.f32.mrf.mxu0  ;;  %2253 = vmatmul.mubr.msk.bf16.vlgmr.msra.gmra.mxu1 %vm116_vm0, %v2785_v54 }
 0x168   :  { %v467_v38 = vadd.f32 %v2167_v37, %v1932_v17  ;;  %2256 = vmatprep.mubr.msk.bf16.mxu1 %vm116_vm0, %v2789_v56 }
 0x169   :  { %v458_v39 = vpop.f32.mrf.mxu0 }
 0x16a   :  { %v2877_v43 = vpack.c.bf16 %v467_v38, %v464_v34  ;;  %v459_v40 = vadd.f32 %v1932_v17, %v458_v39 }
 0x16b   :  { %v2170_v41 = vpop.f32.mrf.mxu0 }
 0x16c   :  { %v2879_v42 = vpack.c.bf16 %v459_v40, %v456_v36  ;;  %v480_v44 = vadd.f32 %v2170_v41, %v1932_v17 }
 0x16d   :  { %v471_v45 = vpop.f32.mrf.mxu0 }
 0x16e   :  { %v472_v46 = vadd.f32 %v1932_v17, %v471_v45  ;;  %v1962_v45 = vld [vmem:[%s3433_s10] ss:$0 sm:$0xff] }
 0x16f   :  { %v2171_v47 = vpop.f32.mrf.mxu0  ;;  %2257 = vmatmul.mubr.msk.bf16.gmra.mxu1 %vm116_vm0, %v2795_v61 }
 0x170   :  { %v483_v48 = vadd.f32 %v2171_v47, %v1932_v17  ;;  %2260 = vmatprep.mubr.msk.bf16.mxu1 %vm116_vm0, %v2797_v62  ;;  %v1951_v62 = vld [vmem:[%s3432_s8] ss:$0 sm:$0xff] }
 0x171   :  { %v474_v54 = vpop.f32.mrf.mxu0 }
 0x172   :  { %v2885_v56 = vpack.c.bf16 %v483_v48, %v480_v44  ;;  %v475_v49 = vadd.f32 %v1932_v17, %v474_v54 }
 0x173   :  { %v2174_v50 = vpop.f32.mrf.mxu0 }
 0x174   :  { %v2887_v51 = vpack.c.bf16 %v475_v49, %v472_v46  ;;  %v496_v57 = vadd.f32 %v2174_v50, %v1932_v17 }
 0x175   :  { %v487_v52 = vpop.f32.mrf.mxu0 }
 0x176   :  { %v488_v53 = vadd.f32 %v1932_v17, %v487_v52 }
 0x177   :  { %v2175_v55 = vpop.f32.mrf.mxu0  ;;  %2261 = vmatmul.mubr.msk.bf16.gmra.mxu1 %vm116_vm0, %v2803_v3 }
 0x178   :  { %v499_v58 = vadd.f32 %v2175_v55, %v1932_v17  ;;  %2264 = vmatprep.mubr.msk.bf16.mxu1 %vm116_vm0, %v2805_v4 }
 0x179   :  { %v490_v61 = vpop.f32.mrf.mxu0 }
 0x17a   :  { %v2896_v59 = vpack.c.bf16 %v499_v58, %v496_v57  ;;  %v491_v60 = vadd.f32 %v1932_v17, %v490_v61 }
 0x17b   :  { %v2214_v63 = vpop.f32.mrf.mxu0 }
 0x17c   :  { %v2898_v0 = vpack.c.bf16 %v491_v60, %v488_v53  ;;  %v2900_v1 = vadd.f32 %v2214_v63, %v1951_v62 }
 0x17d   :  { %v896_v2 = vpop.f32.mrf.mxu0 }
 0x17e   :  { %v897_v6 = vadd.f32 %v1951_v62, %v896_v2 }
 0x17f   :  { %v2215_v3 = vpop.f32.mrf.mxu0  ;;  %2265 = vmatmul.mubr.msk.bf16.gmra.mxu1 %vm116_vm0, %v2815_v13 }
 0x180   :  { %v2904_v5 = vadd.f32 %v2215_v3, %v1951_v62 }
 0x181   :  { %v899_v4 = vpop.f32.mrf.mxu0 }
 0x182   :  { %v1240_v7 = vpack.c.bf16 %v2904_v5, %v2900_v1  ;;  %v900_v8 = vadd.f32 %v1951_v62, %v899_v4 }
 0x183   :  { %v2218_v9 = vpop.f32.mrf.mxu0 }
 0x184   :  { %v1239_v10 = vpack.c.bf16 %v900_v8, %v897_v6  ;;  %v2908_v11 = vadd.f32 %v2218_v9, %v1951_v62 }
 0x185   :  { %v912_v12 = vpop.f32.mrf.mxu0 }
 0x186   :  { %v2910_v14 = vadd.f32 %v1951_v62, %v912_v12  ;;  %2284 = vmatprep.mubr.msk.bf16.mxu0 %vm116_vm0, %v1239_v10 }
 0x187   :  { %v2219_v15 = vpop.f32.mrf.mxu0 }
 0x188   :  { %v2913_v16 = vadd.f32 %v2219_v15, %v1951_v62 }
 0x189   :  { %v915_v13 = vpop.f32.mrf.mxu0 }
 0x18a   :  { %v1242_v17 = vpack.c.bf16 %v2913_v16, %v2908_v11  ;;  %v2917_v18 = vadd.f32 %v1951_v62, %v915_v13 }
 0x18b   :  { %v2222_v19 = vpop.f32.mrf.mxu0 }
 0x18c   :  { %v1241_v20 = vpack.c.bf16 %v2917_v18, %v2910_v14  ;;  %v2921_v21 = vadd.f32 %v2222_v19, %v1951_v62 }
 0x18d   :  { %v928_v22 = vpop.f32.mrf.mxu0 }
 0x18e   :  { %v2923_v23 = vadd.f32 %v1951_v62, %v928_v22 }
 0x18f   :  { %v2223_v24 = vpop.f32.mrf.mxu0 }
 0x190   :  { %v2925_v25 = vadd.f32 %v2223_v24, %v1951_v62 }
 0x191   :  { %v931_v26 = vpop.f32.mrf.mxu0 }
 0x192   :  { %v1244_v27 = vpack.c.bf16 %v2925_v25, %v2921_v21  ;;  %v2929_v28 = vadd.f32 %v1951_v62, %v931_v26 }
 0x193   :  { %v2226_v29 = vpop.f32.mrf.mxu0 }
 0x194   :  { %v1243_v31 = vpack.c.bf16 %v2929_v28, %v2923_v23  ;;  %v2933_v32 = vadd.f32 %v2226_v29, %v1951_v62 }
 0x195   :  { %v944_v34 = vpop.f32.mrf.mxu0 }
 0x196   :  { %v2935_v35 = vadd.f32 %v1951_v62, %v944_v34 }
 0x197   :  { %v2227_v36 = vpop.f32.mrf.mxu0 }
 0x198   :  { %v2937_v37 = vadd.f32 %v2227_v36, %v1951_v62 }
 0x199   :  { %v947_v38 = vpop.f32.mrf.mxu0 }
 0x19a   :  { %v1246_v39 = vpack.c.bf16 %v2937_v37, %v2933_v32  ;;  %v2941_v40 = vadd.f32 %v1951_v62, %v947_v38 }
 0x19b   :  { %v2234_v41 = vpop.f32.mrf.mxu0 }
 0x19c   :  { %v1245_v44 = vpack.c.bf16 %v2941_v40, %v2935_v35  ;;  %v1065_v48 = vadd.f32 %v2234_v41, %v1962_v45 }
 0x19d   :  { %v1056_v46 = vpop.f32.mrf.mxu0 }
 0x19e   :  { %v1057_v50 = vadd.f32 %v1962_v45, %v1056_v46 }
 0x19f   :  { %v2235_v47 = vpop.f32.mrf.mxu0 }
 0x1a0   :  { %v1068_v54 = vadd.f32 %v2235_v47, %v1962_v45 }
 0x1a1   :  { %v1059_v49 = vpop.f32.mrf.mxu0 }
 0x1a2   :  { %v1248_v52 = vpack.c.bf16 %v1068_v54, %v1065_v48  ;;  %v1060_v53 = vadd.f32 %v1962_v45, %v1059_v49 }
 0x1a3   :  { %v2238_v55 = vpop.f32.mrf.mxu0 }
 0x1a4   :  { %v1247_v57 = vpack.c.bf16 %v1060_v53, %v1057_v50  ;;  %v1081_v54 = vadd.f32 %v2238_v55, %v1962_v45  ;;  %v1283_v55 = vsel %vm116_vm0, %v1248_v52, 0 }
 0x1a5   :  { %v1072_v58 = vpop.f32.mrf.mxu0 }
 0x1a7   :  { %v2239_v61 = vpop.f32.mrf.mxu0 }
 0x1a8   :  { %v1084_v48 = vadd.f32 %v2239_v61, %v1962_v45  ;;  %v1280_v61 = vsel %vm116_vm0, %v1247_v57, 0 }
 0x1a9   :  { %v1075_v62 = vpop.f32.mrf.mxu0 }
 0x1aa   :  { %v1250_v49 = vpack.c.bf16 %v1084_v48, %v1081_v54  ;;  %v1076_v53 = vadd.f32 %v1962_v45, %v1075_v62 }
 0x1ab   :  { %v2242_v60 = vpop.f32.mrf.mxu0 }
 0x1ac   :  { %v1097_v29 = vadd.f32 %v2242_v60, %v1962_v45  ;;  %v1073_v60 = vadd.f32 %v1962_v45, %v1072_v58 }
 0x1ad   :  { %v1088_v63 = vpop.f32.mrf.mxu0 }
 0x1ae   :  { %v1089_v41 = vadd.f32 %v1962_v45, %v1088_v63 }
 0x1af   :  { %v2243_v2 = vpop.f32.mrf.mxu0 }
 0x1b0   :  { %v1100_v26 = vadd.f32 %v2243_v2, %v1962_v45  ;;  %v1249_v2 = vpack.c.bf16 %v1076_v53, %v1073_v60 }
 0x1b1   :  { %v1091_v3 = vpop.f32.mrf.mxu0 }
 0x1b2   :  { %v1252_v34 = vpack.c.bf16 %v1100_v26, %v1097_v29  ;;  %v1092_v38 = vadd.f32 %v1962_v45, %v1091_v3  ;;  %v1289_v3 = vsel %vm116_vm0, %v1250_v49, 0  ;;  %v1286_v63 = vsel %vm116_vm0, %v1249_v2, 0 }
 0x1b3   :  { %v2246_v4 = vpop.f32.mrf.mxu0 }
 0x1b4   :  { %v1113_v9 = vadd.f32 %v2246_v4, %v1962_v45  ;;  %v1251_v46 = vpack.c.bf16 %v1092_v38, %v1089_v41  ;;  %v1295_v47 = vsel %vm116_vm0, %v1252_v34, 0 }
 0x1b5   :  { %v1104_v6 = vpop.f32.mrf.mxu0 }
 0x1b6   :  { %v1105_v15 = vadd.f32 %v1962_v45, %v1104_v6  ;;  %v1292_v50 = vsel %vm116_vm0, %v1251_v46, 0 }
 0x1b7   :  { %v2247_v8 = vpop.f32.mrf.mxu0 }
 0x1b8   :  { %v1116_v10 = vadd.f32 %v2247_v8, %v1962_v45 }
 0x1b9   :  { %v1107_v12 = vpop.f32.mrf.mxu0 }
 0x1ba   :  { %v1254_v13 = vpack.c.bf16 %v1116_v10, %v1113_v9  ;;  %v1108_v19 = vadd.f32 %v1962_v45, %v1107_v12  ;;  %v1973_v10 = vld [vmem:[%s3434_s12] ss:$0 sm:$0xff] }
 0x1bc   :  { %v1253_v22 = vpack.c.bf16 %v1108_v19, %v1105_v15  ;;  %2372 = vmatprep.subr.msk.bf16.mxu0 %vm116_vm0, %v1254_v13  ;;  %v1301_v24 = vsel %vm116_vm0, %v1254_v13, 0 }
 0x1bd   :  { %2269 = vmatpush3.bf16.xpose.msra.mxu0 %v1301_v24 }
 0x1be   :  { %2373 = vmatprep.subr.msk.bf16.mxu0 %vm116_vm0, %v1253_v22  ;;  %v1298_v36 = vsel %vm116_vm0, %v1253_v22, 0 }
 0x1c5   :  { %2271 = vmatpush3.bf16.xpose.msra.mxu0 %v1298_v36 }
 0x1c6   :  { %2374 = vmatprep.subr.msk.bf16.mxu0 %vm116_vm0, %v1252_v34 }
 0x1cd   :  { %2273 = vmatpush3.bf16.xpose.msra.mxu0 %v1295_v47 }
 0x1ce   :  { %2375 = vmatprep.subr.msk.bf16.mxu0 %vm116_vm0, %v1251_v46 }
 0x1d5   :  { %2275 = vmatpush3.bf16.xpose.msra.mxu0 %v1292_v50 }
 0x1d6   :  { %2376 = vmatprep.subr.msk.bf16.mxu0 %vm116_vm0, %v1250_v49 }
 0x1dd   :  { %2277 = vmatpush3.bf16.xpose.msra.mxu0 %v1289_v3 }
 0x1de   :  { %2377 = vmatprep.subr.msk.bf16.mxu0 %vm116_vm0, %v1249_v2 }
 0x1e5   :  { %2279 = vmatpush3.bf16.xpose.msra.mxu0 %v1286_v63 }
 0x1e6   :  { %2378 = vmatprep.subr.msk.bf16.mxu0 %vm116_vm0, %v1248_v52 }
 0x1ed   :  { %2281 = vmatpush3.bf16.xpose.msra.mxu0 %v1283_v55 }
 0x1ee   :  { %2379 = vmatprep.subr.msk.bf16.mxu0 %vm116_vm0, %v1247_v57 }
 0x1f5   :  { %2283 = vmatpush3.bf16.xpose.msra.mxu0 %v1280_v61 }
 0x1fc   :  { %2285 = vmatmul.mubr.msk.bf16.vlgmr.msra.gmra.mxu0 %vm116_vm0, %v1240_v7 }
 0x1fd   :  { %2288 = vmatprep.mubr.msk.bf16.mxu0 %vm116_vm0, %v1241_v20 }
 0x204   :  { %2289 = vmatmul.mubr.msk.bf16.gmra.mxu0 %vm116_vm0, %v1242_v17 }
 0x205   :  { %2292 = vmatprep.mubr.msk.bf16.mxu0 %vm116_vm0, %v1243_v31 }
 0x207   :  { %v2980_v45 = vpop.f32.mrf.mxu1 }
 0x209   :  { %v2982_v1 = vpop.f32.mrf.mxu1 }
 0x20b   :  { %v2984_v5 = vpop.f32.mrf.mxu1 }
 0x20c   :  { %2293 = vmatmul.mubr.msk.bf16.gmra.mxu0 %vm116_vm0, %v1244_v27 }
 0x20d   :  { %v2990_v7 = vpop.f32.mrf.mxu1  ;;  %2296 = vmatprep.mubr.msk.bf16.mxu0 %vm116_vm0, %v1245_v44 }
 0x20f   :  { %v2996_v11 = vpop.f32.mrf.mxu1 }
 0x211   :  { %v2998_v14 = vpop.f32.mrf.mxu1 }
 0x213   :  { %v3000_v16 = vpop.f32.mrf.mxu1 }
 0x214   :  { %2297 = vmatmul.mubr.msk.bf16.gmra.mxu0 %vm116_vm0, %v1246_v39 }
 0x215   :  { %v3006_v17 = vpop.f32.mrf.mxu1 }
 0x217   :  { %v3008_v18 = vpop.f32.mrf.mxu1 }
 0x219   :  { %v3010_v20 = vpop.f32.mrf.mxu1 }
 0x21b   :  { %v3012_v21 = vpop.f32.mrf.mxu1 }
 0x21d   :  { %v3014_v23 = vpop.f32.mrf.mxu1 }
 0x21f   :  { %v3016_v25 = vpop.f32.mrf.mxu1 }
 0x221   :  { %v3018_v27 = vpop.f32.mrf.mxu1 }
 0x223   :  { %v3020_v28 = vpop.f32.mrf.mxu1 }
 0x225   :  { %v3022_v31 = vpop.f32.mrf.mxu1 }
 0x227   :  { %v2254_v32 = vpop.f32.mrf.mxu1 }
 0x228   :  { %v1185_v3 = vadd.f32 %v2254_v32, %v1973_v10 }
 0x229   :  { %v1176_v35 = vpop.f32.mrf.mxu1 }
 0x22a   :  { %v1177_v61 = vadd.f32 %v1973_v10, %v1176_v35 }
 0x22b   :  { %v2255_v37 = vpop.f32.mrf.mxu1 }
 0x22c   :  { %v1188_v60 = vadd.f32 %v2255_v37, %v1973_v10 }
 0x22d   :  { %v1179_v39 = vpop.f32.mrf.mxu1 }
 0x22e   :  { %v1569_v63 = vpack.c.bf16 %v1188_v60, %v1185_v3  ;;  %v1180_v55 = vadd.f32 %v1973_v10, %v1179_v39  ;;  %v3081_v60 = vmul.f32 0.17677669, %v2980_v45  ;;  %v3089_v3 = vmul.f32 0.17677669, %v2984_v5 }
 0x22f   :  { %v2258_v40 = vpop.f32.mrf.mxu1  ;;  %v3097_v45 = vmul.f32 0.17677669, %v2996_v11  ;;  %v3105_v5 = vmul.f32 0.17677669, %v3000_v16  ;;  %v3113_v11 = vmul.f32 0.17677669, %v3008_v18 }
 0x230   :  { %v1201_v54 = vadd.f32 %v2258_v40, %v1973_v10  ;;  %v3121_v16 = vmul.f32 0.17677669, %v3012_v21  ;;  %v3129_v18 = vmul.f32 0.17677669, %v3016_v25  ;;  %v3137_v21 = vmul.f32 0.17677669, %v3020_v28 }
 0x231   :  { %v1192_v44 = vpop.f32.mrf.mxu1 }
 0x232   :  { %v1193_v53 = vadd.f32 %v1973_v10, %v1192_v44 }
 0x233   :  { %v2259_v52 = vpop.f32.mrf.mxu1 }
 0x234   :  { %v1204_v47 = vadd.f32 %v2259_v52, %v1973_v10  ;;  %v1568_v52 = vpack.c.bf16 %v1180_v55, %v1177_v61 }
 0x235   :  { %v1195_v57 = vpop.f32.mrf.mxu1 }
 0x236   :  { %v1571_v49 = vpack.c.bf16 %v1204_v47, %v1201_v54  ;;  %v1196_v50 = vadd.f32 %v1973_v10, %v1195_v57 }
 0x237   :  { %v2262_v58 = vpop.f32.mrf.mxu1 }
 0x238   :  { %v1217_v36 = vadd.f32 %v2262_v58, %v1973_v10  ;;  %v1570_v2 = vpack.c.bf16 %v1196_v50, %v1193_v53  ;;  %v3074_v50 = vmul.f32 0.17677669, %v2982_v1  ;;  %v3092_v1 = vmul.f32 0.17677669, %v2998_v14 }
 0x239   :  { %v1208_v62 = vpop.f32.mrf.mxu1  ;;  %v3108_v14 = vmul.f32 0.17677669, %v3010_v20  ;;  %v3124_v20 = vmul.f32 0.17677669, %v3018_v27 }
 0x23a   :  { %v1209_v46 = vadd.f32 %v1973_v10, %v1208_v62 }
 0x23b   :  { %v2263_v4 = vpop.f32.mrf.mxu1 }
 0x23c   :  { %v1220_v29 = vadd.f32 %v2263_v4, %v1973_v10 }
 0x23d   :  { %v1211_v6 = vpop.f32.mrf.mxu1 }
 0x23e   :  { %v1573_v38 = vpack.c.bf16 %v1220_v29, %v1217_v36  ;;  %v1212_v41 = vadd.f32 %v1973_v10, %v1211_v6 }
 0x23f   :  { %v2266_v8 = vpop.f32.mrf.mxu1 }
 0x240   :  { %v1233_v15 = vadd.f32 %v2266_v8, %v1973_v10  ;;  %v1572_v48 = vpack.c.bf16 %v1212_v41, %v1209_v46 }
 0x241   :  { %v1224_v9 = vpop.f32.mrf.mxu1 }
 0x242   :  { %v1225_v22 = vadd.f32 %v1973_v10, %v1224_v9 }
 0x243   :  { %v2267_v12 = vpop.f32.mrf.mxu1 }
 0x244   :  { %v1236_v13 = vadd.f32 %v2267_v12, %v1973_v10 }
 0x245   :  { %v1227_v19 = vpop.f32.mrf.mxu1 }
 0x246   :  { %v1575_v24 = vpack.c.bf16 %v1236_v13, %v1233_v15  ;;  %v1228_v26 = vadd.f32 %v1973_v10, %v1227_v19 }
 0x248   :  { %v1574_v34 = vpack.c.bf16 %v1228_v26, %v1225_v22  ;;  %2300 = vmatprep.subr.bf16.mxu1 %v1575_v24 }
 0x249   :  { %2301 = vmatpush3.bf16.msra.mxu1 %v1575_v24 }
 0x24a   :  { %2302 = vmatprep.subr.bf16.mxu1 %v1574_v34 }
 0x24d   :  { %2303 = vmatpush3.bf16.msra.mxu1 %v1574_v34 }
 0x24e   :  { %2304 = vmatprep.subr.bf16.mxu1 %v1573_v38 }
 0x251   :  { %2305 = vmatpush3.bf16.msra.mxu1 %v1573_v38 }
 0x252   :  { %2306 = vmatprep.subr.bf16.mxu1 %v1572_v48 }
 0x255   :  { %2307 = vmatpush3.bf16.msra.mxu1 %v1572_v48 }
 0x256   :  { %2308 = vmatprep.subr.bf16.mxu1 %v1571_v49 }
 0x259   :  { %2309 = vmatpush3.bf16.msra.mxu1 %v1571_v49 }
 0x25a   :  { %2310 = vmatprep.subr.bf16.mxu1 %v1570_v2 }
 0x25d   :  { %2311 = vmatpush3.bf16.msra.mxu1 %v1570_v2  ;;  %v3084_v2 = vmul.f32 0.17677669, %v2990_v7  ;;  %v3100_v7 = vmul.f32 0.17677669, %v3006_v17  ;;  %v3116_v17 = vmul.f32 0.17677669, %v3014_v23 }
 0x25e   :  { %2312 = vmatprep.subr.bf16.mxu1 %v1569_v63  ;;  %v3132_v23 = vmul.f32 0.17677669, %v3022_v31 }
 0x261   :  { %2313 = vmatpush3.bf16.msra.mxu1 %v1569_v63 }
 0x262   :  { %2314 = vmatprep.subr.bf16.mxu1 %v1568_v52 }
 0x265   :  { %2315 = vmatpush3.bf16.msra.mxu1 %v1568_v52 }
 0x266   :  { %2332 = vmatprep.subr.bf16.mxu1 %v2896_v59 }
 0x2bc   :  { %v2286_v40 = vpop.f32.mrf.mxu0 }
 0x2bd   :  { %v3031_v58 = vmul.f32 0.17677669, %v2286_v40 }
 0x2be   :  { %v1337_v57 = vpop.f32.mrf.mxu0 }
 0x2bf   :  { %v3028_v44 = vmul.f32 0.17677669, %v1337_v57 }
 0x2c0   :  { %v2287_v37 = vpop.f32.mrf.mxu0 }
 0x2c1   :  { %1416 = vmax.xlane.f32.xlu0 %v3028_v44  ;;  %v3037_v4 = vmul.f32 0.17677669, %v2287_v37 }
 0x2c2   :  { %v1340_v32 = vpop.f32.mrf.mxu0 }
 0x2c3   :  { %v3033_v39 = vmul.f32 0.17677669, %v1340_v32 }
 0x2c4   :  { %v2290_v35 = vpop.f32.mrf.mxu0 }
 0x2c5   :  { %1420 = vmax.xlane.f32.xlu0 %v3031_v58  ;;  %1418 = vmax.xlane.f32.xlu1 %v3033_v39  ;;  %v3043_v10 = vmul.f32 0.17677669, %v2290_v35 }
 0x2c6   :  { %v1353_v62 = vpop.f32.mrf.mxu0 }
 0x2c7   :  { %v3039_v6 = vmul.f32 0.17677669, %v1353_v62 }
 0x2c8   :  { %v2291_v8 = vpop.f32.mrf.mxu0 }
 0x2c9   :  { %1422 = vmax.xlane.f32.xlu0 %v3037_v4  ;;  %1424 = vmax.xlane.f32.xlu1 %v3039_v6  ;;  %v3049_v19 = vmul.f32 0.17677669, %v2291_v8 }
 0x2ca   :  { %v1356_v9 = vpop.f32.mrf.mxu0 }
 0x2cb   :  { %v3045_v12 = vmul.f32 0.17677669, %v1356_v9 }
 0x2cc   :  { %v2294_v15 = vpop.f32.mrf.mxu0 }
 0x2cd   :  { %1428 = vmax.xlane.f32.xlu1 %v3043_v10  ;;  %1426 = vmax.xlane.f32.xlu0 %v3045_v12  ;;  %v3055_v29 = vmul.f32 0.17677669, %v2294_v15 }
 0x2ce   :  { %v1369_v13 = vpop.f32.mrf.mxu0 }
 0x2cf   :  { %v3051_v22 = vmul.f32 0.17677669, %v1369_v13 }
 0x2d0   :  { %v2295_v24 = vpop.f32.mrf.mxu0 }
 0x2d1   :  { %1430 = vmax.xlane.f32.xlu0 %v3049_v19  ;;  %1432 = vmax.xlane.f32.xlu1 %v3051_v22  ;;  %v3061_v41 = vmul.f32 0.17677669, %v2295_v24 }
 0x2d2   :  { %v1372_v26 = vpop.f32.mrf.mxu0 }
 0x2d3   :  { %v3057_v34 = vmul.f32 0.17677669, %v1372_v26 }
 0x2d4   :  { %v2298_v36 = vpop.f32.mrf.mxu0 }
 0x2d5   :  { %1436 = vmax.xlane.f32.xlu1 %v3055_v29  ;;  %1434 = vmax.xlane.f32.xlu0 %v3057_v34  ;;  %v3067_v54 = vmul.f32 0.17677669, %v2298_v36 }
 0x2d6   :  { %v1385_v38 = vpop.f32.mrf.mxu0 }
 0x2d7   :  { %v3063_v46 = vmul.f32 0.17677669, %v1385_v38 }
 0x2d8   :  { %v2299_v47 = vpop.f32.mrf.mxu0 }
 0x2d9   :  { %1438 = vmax.xlane.f32.xlu0 %v3061_v41  ;;  %1440 = vmax.xlane.f32.xlu1 %v3063_v46  ;;  %v3076_v53 = vmul.f32 0.17677669, %v2299_v47 }
 0x2da   :  { %v1388_v48 = vpop.f32.mrf.mxu0 }
 0x2db   :  { %v3069_v49 = vmul.f32 0.17677669, %v1388_v48 }
 0x2dd   :  { %1444 = vmax.xlane.f32.xlu1 %v3067_v54  ;;  %1442 = vmax.xlane.f32.xlu0 %v3069_v49 }
 0x2e1   :  { %1446 = vmax.xlane.f32.xlu0 %v3076_v53  ;;  %679 = vmax.xlane.f32.xlu1 %v3074_v50 }
 0x2e5   :  { %683 = vmax.xlane.f32.xlu1 %v3081_v60  ;;  %681 = vmax.xlane.f32.xlu0 %v3084_v2 }
 0x2e9   :  { %685 = vmax.xlane.f32.xlu0 %v3089_v3  ;;  %687 = vmax.xlane.f32.xlu1 %v3092_v1 }
 0x2ed   :  { %691 = vmax.xlane.f32.xlu1 %v3097_v45  ;;  %689 = vmax.xlane.f32.xlu0 %v3100_v7 }
 0x2f1   :  { %693 = vmax.xlane.f32.xlu0 %v3105_v5  ;;  %695 = vmax.xlane.f32.xlu1 %v3108_v14 }
 0x2f5   :  { %699 = vmax.xlane.f32.xlu1 %v3113_v11  ;;  %697 = vmax.xlane.f32.xlu0 %v3116_v17 }
 0x2f9   :  { %701 = vmax.xlane.f32.xlu0 %v3121_v16  ;;  %703 = vmax.xlane.f32.xlu1 %v3124_v20 }
 0x2fd   :  { %707 = vmax.xlane.f32.xlu1 %v3129_v18  ;;  %705 = vmax.xlane.f32.xlu0 %v3132_v23 }
 0x301   :  { %709 = vmax.xlane.f32.xlu0 %v3137_v21 }
 0x34a   :  { %v1417_v27 = vpop.xlane.xlu0 %1416 }
 0x34b   :  { %v1448_v63 = vsub.f32 %v3028_v44, %v1417_v27 }
 0x34d   :  { %v1464_v55 = vmul.f32 1.442695, %v1448_v63 }
 0x34e   :  { %v1421_v61 = vpop.xlane.xlu0 %1420  ;;  %v1419_v52 = vpop.xlane.xlu1 %1418 }
 0x34f   :  { %2394 = vpow2.f32 %v1464_v55  ;;  %v1450_v25 = vsub.f32 %v3031_v58, %v1421_v61  ;;  %v1449_v31 = vsub.f32 %v3033_v39, %v1419_v52 }
 0x351   :  { %v1468_v40 = vmul.f32 1.442695, %v1450_v25  ;;  %v1466_v57 = vmul.f32 1.442695, %v1449_v31 }
 0x352   :  { %v1423_v37 = vpop.xlane.xlu0 %1422  ;;  %v1425_v32 = vpop.xlane.xlu1 %1424 }
 0x353   :  { %2396 = vpow2.f32 %v1468_v40  ;;  %v1451_v28 = vsub.f32 %v3037_v4, %v1423_v37  ;;  %v1452_v35 = vsub.f32 %v3039_v6, %v1425_v32 }
 0x354   :  { %2398 = vpow2.f32 %v1466_v57 }
 0x355   :  { %v1470_v62 = vmul.f32 1.442695, %v1451_v28  ;;  %v1472_v44 = vmul.f32 1.442695, %v1452_v35 }
 0x356   :  { %v1429_v8 = vpop.xlane.xlu1 %1428  ;;  %v1427_v9 = vpop.xlane.xlu0 %1426 }
 0x357   :  { %2400 = vpow2.f32 %v1470_v62  ;;  %v1454_v15 = vsub.f32 %v3043_v10, %v1429_v8  ;;  %v1453_v58 = vsub.f32 %v3045_v12, %v1427_v9 }
 0x358   :  { %2402 = vpow2.f32 %v1472_v44 }
 0x359   :  { %v1476_v39 = vmul.f32 1.442695, %v1454_v15  ;;  %v1474_v13 = vmul.f32 1.442695, %v1453_v58 }
 0x35a   :  { %v1431_v24 = vpop.xlane.xlu0 %1430  ;;  %v1433_v26 = vpop.xlane.xlu1 %1432 }
 0x35b   :  { %2404 = vpow2.f32 %v1476_v39  ;;  %v1455_v4 = vsub.f32 %v3049_v19, %v1431_v24  ;;  %v1456_v6 = vsub.f32 %v3051_v22, %v1433_v26 }
 0x35c   :  { %v3149_v36 = vpop.eup %2394  ;;  %2406 = vpow2.f32 %v1474_v13 }
 0x35d   :  { %v1478_v38 = vmul.f32 1.442695, %v1455_v4  ;;  %v1480_v47 = vmul.f32 1.442695, %v1456_v6  ;;  %1496 = vadd.xlane.f32.xlu1 %v3149_v36 }
 0x35e   :  { %v1437_v10 = vpop.xlane.xlu1 %1436  ;;  %v1435_v48 = vpop.xlane.xlu0 %1434 }
 0x35f   :  { %2408 = vpow2.f32 %v1478_v38  ;;  %v1458_v12 = vsub.f32 %v3055_v29, %v1437_v10  ;;  %v1457_v27 = vsub.f32 %v3057_v34, %v1435_v48 }
 0x360   :  { %v3154_v63 = vpop.eup %2396  ;;  %2410 = vpow2.f32 %v1480_v47 }
 0x361   :  { %v3156_v19 = vpop.eup %2398  ;;  %v1484_v22 = vmul.f32 1.442695, %v1458_v12  ;;  %v1482_v55 = vmul.f32 1.442695, %v1457_v27  ;;  %1500 = vadd.xlane.f32.xlu1 %v3154_v63 }
 0x362   :  { %1498 = vadd.xlane.f32.xlu0 %v3156_v19  ;;  %v1439_v61 = vpop.xlane.xlu0 %1438  ;;  %v1441_v52 = vpop.xlane.xlu1 %1440 }
 0x363   :  { %2412 = vpow2.f32 %v1484_v22  ;;  %v1459_v25 = vsub.f32 %v3061_v41, %v1439_v61  ;;  %v1460_v29 = vsub.f32 %v3063_v46, %v1441_v52 }
 0x364   :  { %v3162_v31 = vpop.eup %2400  ;;  %2414 = vpow2.f32 %v1482_v55 }
 0x365   :  { %v3164_v34 = vpop.eup %2402  ;;  %v1486_v40 = vmul.f32 1.442695, %v1459_v25  ;;  %v1488_v57 = vmul.f32 1.442695, %v1460_v29 }
 0x366   :  { %1504 = vadd.xlane.f32.xlu1 %v3164_v34  ;;  %1502 = vadd.xlane.f32.xlu0 %v3162_v31  ;;  %v1445_v37 = vpop.xlane.xlu1 %1444  ;;  %v1443_v32 = vpop.xlane.xlu0 %1442 }
 0x367   :  { %2416 = vpow2.f32 %v1486_v40  ;;  %v1462_v28 = vsub.f32 %v3067_v54, %v1445_v37  ;;  %v1461_v41 = vsub.f32 %v3069_v49, %v1443_v32 }
 0x368   :  { %v3170_v35 = vpop.eup %2404  ;;  %2418 = vpow2.f32 %v1488_v57 }
 0x369   :  { %v3172_v46 = vpop.eup %2406  ;;  %v1492_v62 = vmul.f32 1.442695, %v1462_v28  ;;  %v1490_v44 = vmul.f32 1.442695, %v1461_v41 }
 0x36a   :  { %1508 = vadd.xlane.f32.xlu1 %v3170_v35  ;;  %1506 = vadd.xlane.f32.xlu0 %v3172_v46  ;;  %v1447_v8 = vpop.xlane.xlu0 %1446  ;;  %v680_v9 = vpop.xlane.xlu1 %679 }
 0x36b   :  { %2420 = vpow2.f32 %v1492_v62  ;;  %v1463_v15 = vsub.f32 %v3076_v53, %v1447_v8  ;;  %v711_v54 = vsub.f32 %v3074_v50, %v680_v9 }
 0x36c   :  { %v3178_v58 = vpop.eup %2408  ;;  %2422 = vpow2.f32 %v1490_v44 }
 0x36d   :  { %v3180_v49 = vpop.eup %2410  ;;  %v1494_v39 = vmul.f32 1.442695, %v1463_v15  ;;  %v727_v13 = vmul.f32 1.442695, %v711_v54 }
 0x36e   :  { %1512 = vadd.xlane.f32.xlu1 %v3180_v49  ;;  %1510 = vadd.xlane.f32.xlu0 %v3178_v58  ;;  %v684_v24 = vpop.xlane.xlu1 %683  ;;  %v682_v26 = vpop.xlane.xlu0 %681 }
 0x36f   :  { %2424 = vpow2.f32 %v1494_v39  ;;  %v713_v4 = vsub.f32 %v3081_v60, %v684_v24  ;;  %v712_v53 = vsub.f32 %v3084_v2, %v682_v26 }
 0x370   :  { %v3186_v6 = vpop.eup %2412  ;;  %2426 = vpow2.f32 %v727_v13 }
 0x371   :  { %v3188_v50 = vpop.eup %2414  ;;  %v731_v38 = vmul.f32 1.442695, %v713_v4  ;;  %v729_v47 = vmul.f32 1.442695, %v712_v53 }
 0x372   :  { %1516 = vadd.xlane.f32.xlu1 %v3186_v6  ;;  %1514 = vadd.xlane.f32.xlu0 %v3188_v50  ;;  %v686_v10 = vpop.xlane.xlu0 %685  ;;  %v688_v48 = vpop.xlane.xlu1 %687 }
 0x373   :  { %2428 = vpow2.f32 %v731_v38  ;;  %v714_v12 = vsub.f32 %v3089_v3, %v686_v10  ;;  %v715_v60 = vsub.f32 %v3092_v1, %v688_v48 }
 0x374   :  { %v3194_v27 = vpop.eup %2416  ;;  %2430 = vpow2.f32 %v729_v47 }
 0x375   :  { %v3196_v2 = vpop.eup %2418  ;;  %v733_v22 = vmul.f32 1.442695, %v714_v12  ;;  %v735_v55 = vmul.f32 1.442695, %v715_v60 }
 0x376   :  { %1520 = vadd.xlane.f32.xlu1 %v3196_v2  ;;  %1518 = vadd.xlane.f32.xlu0 %v3194_v27  ;;  %v692_v61 = vpop.xlane.xlu1 %691  ;;  %v690_v52 = vpop.xlane.xlu0 %689 }
 0x377   :  { %2432 = vpow2.f32 %v733_v22  ;;  %v717_v25 = vsub.f32 %v3097_v45, %v692_v61  ;;  %v716_v3 = vsub.f32 %v3100_v7, %v690_v52 }
 0x378   :  { %v3202_v29 = vpop.eup %2420  ;;  %2434 = vpow2.f32 %v735_v55 }
 0x379   :  { %v3204_v1 = vpop.eup %2422  ;;  %v739_v40 = vmul.f32 1.442695, %v717_v25  ;;  %v737_v57 = vmul.f32 1.442695, %v716_v3 }
 0x37a   :  { %1524 = vadd.xlane.f32.xlu1 %v3202_v29  ;;  %1522 = vadd.xlane.f32.xlu0 %v3204_v1  ;;  %v694_v37 = vpop.xlane.xlu0 %693  ;;  %v696_v32 = vpop.xlane.xlu1 %695 }
 0x37b   :  { %2436 = vpow2.f32 %v739_v40  ;;  %v718_v28 = vsub.f32 %v3105_v5, %v694_v37  ;;  %v719_v45 = vsub.f32 %v3108_v14, %v696_v32 }
 0x37c   :  { %v3210_v41 = vpop.eup %2424  ;;  %2438 = vpow2.f32 %v737_v57 }
 0x37d   :  { %v3212_v7 = vpop.eup %2426  ;;  %v741_v62 = vmul.f32 1.442695, %v718_v28  ;;  %v743_v44 = vmul.f32 1.442695, %v719_v45  ;;  %v2522_v45 = vld [vmem:[%s3422_s0] sm:$0xff] }
 0x37e   :  { %759 = vadd.xlane.f32.xlu1 %v3212_v7  ;;  %1526 = vadd.xlane.f32.xlu0 %v3210_v41  ;;  %v700_v8 = vpop.xlane.xlu1 %699  ;;  %v698_v9 = vpop.xlane.xlu0 %697 }
 0x37f   :  { %2440 = vpow2.f32 %v741_v62  ;;  %v721_v15 = vsub.f32 %v3113_v11, %v700_v8  ;;  %v720_v5 = vsub.f32 %v3116_v17, %v698_v9  ;;  %v2523_v62 = vld [vmem:[%s3422_s0 + $0x10] sm:$0xff]  ;;  %v2525_v8 = vld [vmem:[%s3422_s0 + $0x8] sm:$0xff] }
 0x380   :  { %v3218_v54 = vpop.eup %2428  ;;  %2442 = vpow2.f32 %v743_v44  ;;  %v2524_v44 = vld [vmem:[%s3422_s0 + $0x18] sm:$0xff]  ;;  %v2526_v9 = vld [vmem:[%s3422_s0 + $0x28] sm:$0xff] }
 0x381   :  { %v3220_v14 = vpop.eup %2430  ;;  %v747_v39 = vmul.f32 1.442695, %v721_v15  ;;  %v745_v13 = vmul.f32 1.442695, %v720_v5  ;;  %v2527_v15 = vld [vmem:[%s3422_s0 + $0x20] sm:$0xff]  ;;  %v2528_v5 = vld [vmem:[%s3422_s0 + $0x38] sm:$0xff] }
 0x382   :  { %763 = vadd.xlane.f32.xlu1 %v3218_v54  ;;  %761 = vadd.xlane.f32.xlu0 %v3220_v14  ;;  %v702_v24 = vpop.xlane.xlu0 %701  ;;  %v704_v26 = vpop.xlane.xlu1 %703 }
 0x383   :  { %2444 = vpow2.f32 %v747_v39  ;;  %v722_v4 = vsub.f32 %v3121_v16, %v702_v24  ;;  %v723_v11 = vsub.f32 %v3124_v20, %v704_v26  ;;  %v2529_v39 = vld [vmem:[%s3422_s0 + $0x30] sm:$0xff]  ;;  %v2531_v24 = vld [vmem:[%s3422_s0 + $0x40] sm:$0xff]  ;;  %v2532_v26 = vld [vmem:[%s3422_s0 + $0x58] sm:$0xff] }
 0x384   :  { %v3226_v53 = vpop.eup %2432  ;;  %2446 = vpow2.f32 %v745_v13  ;;  %v2530_v13 = vld [vmem:[%s3422_s0 + $0x48] sm:$0xff] }
 0x385   :  { %v3228_v17 = vpop.eup %2434  ;;  %v749_v38 = vmul.f32 1.442695, %v722_v4  ;;  %v751_v47 = vmul.f32 1.442695, %v723_v11  ;;  %v2533_v4 = vld [vmem:[%s3422_s0 + $0x50] sm:$0xff]  ;;  %v2534_v11 = vld [vmem:[%s3422_s0 + $0x68] sm:$0xff] }
 0x386   :  { %767 = vadd.xlane.f32.xlu1 %v3228_v17  ;;  %765 = vadd.xlane.f32.xlu0 %v3226_v53  ;;  %v708_v10 = vpop.xlane.xlu1 %707  ;;  %v706_v48 = vpop.xlane.xlu0 %705 }
 0x387   :  { %2448 = vpow2.f32 %v749_v38  ;;  %v725_v12 = vsub.f32 %v3129_v18, %v708_v10  ;;  %v724_v16 = vsub.f32 %v3132_v23, %v706_v48  ;;  %v2535_v38 = vld [vmem:[%s3422_s0 + $0x60] sm:$0xff]  ;;  %v2537_v10 = vld [vmem:[%s3422_s0 + $0x70] sm:$0xff] }
 0x388   :  { %v3234_v60 = vpop.eup %2436  ;;  %2450 = vpow2.f32 %v751_v47  ;;  %v2536_v47 = vld [vmem:[%s3422_s0 + $0x78] sm:$0xff] }
 0x389   :  { %v3236_v20 = vpop.eup %2438  ;;  %v755_v22 = vmul.f32 1.442695, %v725_v12  ;;  %v753_v55 = vmul.f32 1.442695, %v724_v16 }
 0x38a   :  { %771 = vadd.xlane.f32.xlu1 %v3234_v60  ;;  %769 = vadd.xlane.f32.xlu0 %v3236_v20  ;;  %v710_v61 = vpop.xlane.xlu0 %709 }
 0x38b   :  { %2452 = vpow2.f32 %v755_v22  ;;  %v726_v52 = vsub.f32 %v3137_v21, %v710_v61 }
 0x38c   :  { %v3241_v25 = vpop.eup %2440  ;;  %2454 = vpow2.f32 %v753_v55 }
 0x38d   :  { %v3243_v18 = vpop.eup %2442  ;;  %v757_v23 = vmul.f32 1.442695, %v726_v52 }
 0x38e   :  { %775 = vadd.xlane.f32.xlu1 %v3243_v18  ;;  %773 = vadd.xlane.f32.xlu0 %v3241_v25 }
 0x38f   :  { %2456 = vpow2.f32 %v757_v23 }
 0x390   :  { %v3247_v3 = vpop.eup %2444 }
 0x391   :  { %v3249_v40 = vpop.eup %2446 }
 0x392   :  { %779 = vadd.xlane.f32.xlu1 %v3247_v3  ;;  %777 = vadd.xlane.f32.xlu0 %v3249_v40 }
 0x394   :  { %v3253_v21 = vpop.eup %2448 }
 0x395   :  { %v3255_v57 = vpop.eup %2450 }
 0x396   :  { %783 = vadd.xlane.f32.xlu1 %v3255_v57  ;;  %781 = vadd.xlane.f32.xlu0 %v3253_v21 }
 0x398   :  { %v3259_v37 = vpop.eup %2452 }
 0x399   :  { %v3261_v32 = vpop.eup %2454 }
 0x39a   :  { %787 = vadd.xlane.f32.xlu1 %v3259_v37  ;;  %785 = vadd.xlane.f32.xlu0 %v3261_v32 }
 0x39c   :  { %v3265_v28 = vpop.eup %2456 }
 0x39e   :  { %789 = vadd.xlane.f32.xlu0 %v3265_v28 }
 0x3ab   :  { %1689 = vrot.lane.b32.xlu1 %v2522_v45, %s2538_s24 }
 0x3af   :  { %1693 = vrot.lane.b32.xlu1 %v2523_v62, %s2538_s24 }
 0x3b3   :  { %1695 = vrot.lane.b32.xlu1 %v2524_v44, %s2538_s24 }
 0x3b4   :  { %1691 = vrot.lane.b32.xlu0 %v2525_v8, %s2538_s24 }
 0x3b7   :  { %1699 = vrot.lane.b32.xlu1 %v2526_v9, %s2538_s24 }
 0x3b8   :  { %1697 = vrot.lane.b32.xlu0 %v2527_v15, %s2538_s24 }
 0x3bb   :  { %1703 = vrot.lane.b32.xlu1 %v2528_v5, %s2538_s24 }
 0x3bc   :  { %1701 = vrot.lane.b32.xlu0 %v2529_v39, %s2538_s24 }
 0x3bf   :  { %1707 = vrot.lane.b32.xlu1 %v2530_v13, %s2538_s24 }
 0x3c0   :  { %1705 = vrot.lane.b32.xlu0 %v2531_v24, %s2538_s24 }
 0x3c3   :  { %1711 = vrot.lane.b32.xlu1 %v2532_v26, %s2538_s24 }
 0x3c4   :  { %1709 = vrot.lane.b32.xlu0 %v2533_v4, %s2538_s24 }
 0x3c7   :  { %1715 = vrot.lane.b32.xlu1 %v2534_v11, %s2538_s24 }
 0x3c8   :  { %1713 = vrot.lane.b32.xlu0 %v2535_v38, %s2538_s24 }
 0x3cb   :  { %1719 = vrot.lane.b32.xlu1 %v2536_v47, %s2538_s24 }
 0x3cc   :  { %1717 = vrot.lane.b32.xlu0 %v2537_v10, %s2538_s24 }
 0x3e6   :  { %v1497_v48 = vpop.xlane.xlu1 %1496 }
 0x3e7   :  { %2458 = vrcp.f32 %v1497_v48 }
 0x3ea   :  { %v1501_v12 = vpop.xlane.xlu1 %1500 }
 0x3eb   :  { %v1499_v16 = vpop.xlane.xlu0 %1498 }
 0x3ec   :  { %2460 = vrcp.f32 %v1499_v16 }
 0x3ed   :  { %2462 = vrcp.f32 %v1501_v12 }
 0x3ef   :  { %v1505_v22 = vpop.xlane.xlu1 %1504  ;;  %v1503_v55 = vpop.xlane.xlu0 %1502 }
 0x3f0   :  { %2464 = vrcp.f32 %v1503_v55 }
 0x3f1   :  { %2466 = vrcp.f32 %v1505_v22 }
 0x3f3   :  { %v1509_v61 = vpop.xlane.xlu1 %1508  ;;  %v1507_v52 = vpop.xlane.xlu0 %1506 }
 0x3f4   :  { %2468 = vrcp.f32 %v1507_v52  ;;  %v2459_v23 = vpop.eup %2458 }
 0x3f5   :  { %2470 = vrcp.f32 %v1509_v61  ;;  %v1544_v8 = vmul.f32 %v2459_v23, %v3149_v36 }
 0x3f7   :  { %v1513_v45 = vpop.xlane.xlu1 %1512  ;;  %v1511_v62 = vpop.xlane.xlu0 %1510 }
 0x3f8   :  { %2472 = vrcp.f32 %v1511_v62 }
 0x3f9   :  { %v2461_v44 = vpop.eup %2460  ;;  %2474 = vrcp.f32 %v1513_v45 }
 0x3fa   :  { %v1545_v9 = vmul.f32 %v2461_v44, %v3156_v19  ;;  %v2463_v39 = vpop.eup %2462 }
 0x3fb   :  { %v1517_v15 = vpop.xlane.xlu1 %1516  ;;  %v1515_v5 = vpop.xlane.xlu0 %1514  ;;  %v1546_v11 = vmul.f32 %v2463_v39, %v3154_v63 }
 0x3fc   :  { %v1560_v13 = vpack.c.bf16 %v1545_v9, %v1544_v8  ;;  %2476 = vrcp.f32 %v1515_v5 }
 0x3fd   :  { %v2465_v24 = vpop.eup %2464  ;;  %2478 = vrcp.f32 %v1517_v15 }
 0x3fe   :  { %2316 = vmatprep.mubr.bf16.mxu1 %v1560_v13  ;;  %v1547_v38 = vmul.f32 %v2465_v24, %v3162_v31  ;;  %v2467_v47 = vpop.eup %2466 }
 0x3ff   :  { %v1521_v26 = vpop.xlane.xlu1 %1520  ;;  %v1519_v4 = vpop.xlane.xlu0 %1518  ;;  %v1548_v12 = vmul.f32 %v2467_v47, %v3164_v34 }
 0x400   :  { %2480 = vrcp.f32 %v1519_v4  ;;  %v1561_v36 = vpack.c.bf16 %v1547_v38, %v1546_v11 }
 0x401   :  { %v2469_v10 = vpop.eup %2468  ;;  %2482 = vrcp.f32 %v1521_v26 }
 0x402   :  { %2317 = vmatmul.mubr.bf16.vlgmr.msra.gmra.mxu1 %v1561_v36  ;;  %v1549_v16 = vmul.f32 %v2469_v10, %v3172_v46  ;;  %v2471_v22 = vpop.eup %2470 }
 0x403   :  { %v1525_v19 = vpop.xlane.xlu1 %1524  ;;  %v1523_v48 = vpop.xlane.xlu0 %1522  ;;  %2333 = vmatpush3.bf16.msra.mxu1 %v2896_v59  ;;  %v1550_v52 = vmul.f32 %v2471_v22, %v3170_v35 }
 0x404   :  { %2334 = vmatprep.subr.bf16.mxu1 %v2898_v0  ;;  %2484 = vrcp.f32 %v1523_v48  ;;  %v1562_v63 = vpack.c.bf16 %v1549_v16, %v1548_v12 }
 0x405   :  { %v2473_v31 = vpop.eup %2472  ;;  %2486 = vrcp.f32 %v1525_v19 }
 0x406   :  { %2320 = vmatprep.mubr.bf16.mxu1 %v1562_v63  ;;  %v1551_v23 = vmul.f32 %v2473_v31, %v3178_v58  ;;  %v2475_v45 = vpop.eup %2474 }
 0x407   :  { %v760_v55 = vpop.xlane.xlu1 %759  ;;  %v1527_v61 = vpop.xlane.xlu0 %1526  ;;  %2335 = vmatpush3.bf16.msra.mxu1 %v2898_v0  ;;  %v1552_v44 = vmul.f32 %v2475_v45, %v3180_v49 }
 0x408   :  { %2336 = vmatprep.subr.bf16.mxu1 %v2885_v56  ;;  %2488 = vrcp.f32 %v1527_v61  ;;  %v1563_v59 = vpack.c.bf16 %v1551_v23, %v1550_v52 }
 0x409   :  { %v2477_v34 = vpop.eup %2476  ;;  %2490 = vrcp.f32 %v760_v55 }
 0x40a   :  { %2321 = vmatmul.mubr.bf16.gmra.mxu1 %v1563_v59  ;;  %v1553_v8 = vmul.f32 %v2477_v34, %v3188_v50  ;;  %v2479_v9 = vpop.eup %2478 }
 0x40b   :  { %v764_v46 = vpop.xlane.xlu1 %763  ;;  %v762_v62 = vpop.xlane.xlu0 %761  ;;  %2337 = vmatpush3.bf16.msra.mxu1 %v2885_v56  ;;  %v1554_v5 = vmul.f32 %v2479_v9, %v3186_v6 }
 0x40c   :  { %2338 = vmatprep.subr.bf16.mxu1 %v2887_v51  ;;  %2492 = vrcp.f32 %v762_v62  ;;  %v1564_v0 = vpack.c.bf16 %v1553_v8, %v1552_v44 }
 0x40d   :  { %v2481_v35 = vpop.eup %2480  ;;  %2494 = vrcp.f32 %v764_v46 }
 0x40e   :  { %2324 = vmatprep.mubr.bf16.mxu1 %v1564_v0  ;;  %v1555_v39 = vmul.f32 %v2481_v35, %v3194_v27  ;;  %v2483_v13 = vpop.eup %2482 }
 0x40f   :  { %v768_v58 = vpop.xlane.xlu1 %767  ;;  %v766_v15 = vpop.xlane.xlu0 %765  ;;  %2339 = vmatpush3.bf16.msra.mxu1 %v2887_v51  ;;  %v1556_v26 = vmul.f32 %v2483_v13, %v3196_v2 }
 0x410   :  { %2340 = vmatprep.subr.bf16.mxu1 %v2877_v43  ;;  %2496 = vrcp.f32 %v766_v15  ;;  %v1565_v56 = vpack.c.bf16 %v1555_v39, %v1554_v5 }
 0x411   :  { %v2485_v49 = vpop.eup %2484  ;;  %2498 = vrcp.f32 %v768_v58 }
 0x412   :  { %2325 = vmatmul.mubr.bf16.gmra.mxu1 %v1565_v56  ;;  %v1557_v4 = vmul.f32 %v2485_v49, %v3204_v1  ;;  %v2487_v11 = vpop.eup %2486 }
 0x413   :  { %v772_v50 = vpop.xlane.xlu1 %771  ;;  %v770_v24 = vpop.xlane.xlu0 %769  ;;  %2341 = vmatpush3.bf16.msra.mxu1 %v2877_v43  ;;  %v1558_v47 = vmul.f32 %v2487_v11, %v3202_v29 }
 0x414   :  { %2342 = vmatprep.subr.bf16.mxu1 %v2879_v42  ;;  %2500 = vrcp.f32 %v770_v24  ;;  %v1566_v51 = vpack.c.bf16 %v1557_v4, %v1556_v26 }
 0x415   :  { %v2489_v6 = vpop.eup %2488  ;;  %2502 = vrcp.f32 %v772_v50 }
 0x416   :  { %2328 = vmatprep.mubr.bf16.mxu1 %v1566_v51  ;;  %v1559_v36 = vmul.f32 %v2489_v6, %v3210_v41  ;;  %v2491_v10 = vpop.eup %2490 }
 0x417   :  { %v776_v27 = vpop.xlane.xlu1 %775  ;;  %v774_v38 = vpop.xlane.xlu0 %773  ;;  %2343 = vmatpush3.bf16.msra.mxu1 %v2879_v42  ;;  %v807_v48 = vmul.f32 %v2491_v10, %v3212_v7 }
 0x418   :  { %2344 = vmatprep.subr.bf16.mxu1 %v2869_v30  ;;  %2504 = vrcp.f32 %v774_v38  ;;  %v1567_v43 = vpack.c.bf16 %v1559_v36, %v1558_v47 }
 0x419   :  { %v2493_v2 = vpop.eup %2492  ;;  %2506 = vrcp.f32 %v776_v27 }
 0x41a   :  { %2329 = vmatmul.mubr.bf16.gmra.mxu1 %v1567_v43  ;;  %v808_v12 = vmul.f32 %v2493_v2, %v3220_v14  ;;  %v2495_v16 = vpop.eup %2494 }
 0x41b   :  { %v780_v1 = vpop.xlane.xlu1 %779  ;;  %v778_v19 = vpop.xlane.xlu0 %777  ;;  %2345 = vmatpush3.bf16.msra.mxu1 %v2869_v30  ;;  %v809_v63 = vmul.f32 %v2495_v16, %v3218_v54 }
 0x41c   :  { %2346 = vmatprep.subr.bf16.mxu1 %v2871_v33  ;;  %2508 = vrcp.f32 %v778_v19  ;;  %v823_v42 = vpack.c.bf16 %v808_v12, %v807_v48 }
 0x41d   :  { %v2497_v29 = vpop.eup %2496  ;;  %2510 = vrcp.f32 %v780_v1 }
 0x41e   :  { %2348 = vmatprep.mubr.bf16.mxu1 %v823_v42  ;;  %v810_v31 = vmul.f32 %v2497_v29, %v3226_v53  ;;  %v2499_v55 = vpop.eup %2498 }
 0x41f   :  { %v784_v41 = vpop.xlane.xlu1 %783  ;;  %v782_v22 = vpop.xlane.xlu0 %781  ;;  %2347 = vmatpush3.bf16.msra.mxu1 %v2871_v33  ;;  %v811_v52 = vmul.f32 %v2499_v55, %v3228_v17 }
 0x420   :  { %2512 = vrcp.f32 %v782_v22  ;;  %v824_v7 = vpack.c.bf16 %v810_v31, %v809_v63 }
 0x421   :  { %v2501_v14 = vpop.eup %2500  ;;  %2514 = vrcp.f32 %v784_v41 }
 0x422   :  { %2349 = vmatmul.mubr.bf16.vlgmr.msra.gmra.mxu1 %v824_v7  ;;  %v812_v23 = vmul.f32 %v2501_v14, %v3236_v20  ;;  %v2503_v45 = vpop.eup %2502 }
 0x423   :  { %v788_v30 = vpop.xlane.xlu1 %787  ;;  %v786_v61 = vpop.xlane.xlu0 %785  ;;  %v813_v33 = vmul.f32 %v2503_v45, %v3234_v60 }
 0x424   :  { %2516 = vrcp.f32 %v786_v61  ;;  %v825_v59 = vpack.c.bf16 %v812_v23, %v811_v52 }
 0x425   :  { %v2505_v54 = vpop.eup %2504  ;;  %2518 = vrcp.f32 %v788_v30 }
 0x426   :  { %2352 = vmatprep.mubr.bf16.mxu1 %v825_v59  ;;  %v814_v34 = vmul.f32 %v2505_v54, %v3241_v25  ;;  %v2507_v46 = vpop.eup %2506 }
 0x427   :  { %v790_v53 = vpop.xlane.xlu0 %789  ;;  %v815_v17 = vmul.f32 %v2507_v46, %v3243_v18  ;;  %v1690_v51 = vpop.permute.xlu1 %1689 }
 0x428   :  { %2520 = vrcp.f32 %v790_v53  ;;  %v826_v62 = vpack.c.bf16 %v814_v34, %v813_v33 }
 0x429   :  { %v2509_v44 = vpop.eup %2508 }
 0x42a   :  { %2353 = vmatmul.mubr.bf16.gmra.mxu1 %v826_v62  ;;  %v816_v20 = vmul.f32 %v2509_v44, %v3249_v40  ;;  %v2511_v8 = vpop.eup %2510 }
 0x42b   :  { %v817_v35 = vmul.f32 %v2511_v8, %v3247_v3 }
 0x42c   :  { %v827_v9 = vpack.c.bf16 %v816_v20, %v815_v17 }
 0x42d   :  { %v2513_v0 = vpop.eup %2512 }
 0x42e   :  { %2356 = vmatprep.mubr.bf16.mxu1 %v827_v9  ;;  %v818_v58 = vmul.f32 %v2513_v0, %v3253_v21  ;;  %v2515_v60 = vpop.eup %2514 }
 0x42f   :  { %v819_v39 = vmul.f32 %v2515_v60, %v3255_v57 }
 0x430   :  { %v828_v15 = vpack.c.bf16 %v818_v58, %v817_v35 }
 0x431   :  { %v2517_v25 = vpop.eup %2516 }
 0x432   :  { %v2519_v5 = vpop.eup %2518  ;;  %2357 = vmatmul.mubr.bf16.gmra.mxu1 %v828_v15  ;;  %v820_v13 = vmul.f32 %v2517_v25, %v3261_v32  ;;  %v1694_v32 = vpop.permute.xlu1 %1693 }
 0x433   :  { %v821_v40 = vmul.f32 %v2519_v5, %v3259_v37 }
 0x434   :  { %v829_v56 = vpack.c.bf16 %v820_v13, %v819_v39 }
 0x435   :  { %v2521_v18 = vpop.eup %2520 }
 0x436   :  { %v822_v49 = vmul.f32 %v2521_v18, %v3265_v28  ;;  %2360 = vmatprep.mubr.bf16.mxu1 %v829_v56  ;;  %v1692_v28 = vpop.permute.xlu0 %1691  ;;  %v1696_v36 = vpop.permute.xlu1 %1695 }
 0x438   :  { %v830_v50 = vpack.c.bf16 %v822_v49, %v821_v40 }
 0x43a   :  { %2361 = vmatmul.mubr.bf16.gmra.mxu1 %v830_v50  ;;  %v1698_v2 = vpop.permute.xlu0 %1697  ;;  %v1700_v19 = vpop.permute.xlu1 %1699 }
 0x43e   :  { %v1702_v16 = vpop.permute.xlu0 %1701  ;;  %v1704_v29 = vpop.permute.xlu1 %1703 }
 0x442   :  { %v1706_v14 = vpop.permute.xlu0 %1705  ;;  %v1708_v45 = vpop.permute.xlu1 %1707 }
 0x446   :  { %v1710_v20 = vpop.permute.xlu0 %1709  ;;  %v1712_v15 = vpop.permute.xlu1 %1711 }
 0x4c2   :  { %v2318_v3 = vpop.f32.mrf.mxu1 }
 0x4c4   :  { %v1610_v21 = vpop.f32.mrf.mxu1 }
 0x4c6   :  { %v2319_v24 = vpop.f32.mrf.mxu1 }
 0x4c8   :  { %v1613_v26 = vpop.f32.mrf.mxu1 }
 0x4ca   :  { %v2322_v4 = vpop.f32.mrf.mxu1 }
 0x4cc   :  { %v1626_v11 = vpop.f32.mrf.mxu1 }
 0x4ce   :  { %v2323_v6 = vpop.f32.mrf.mxu1 }
 0x4d0   :  { %v1629_v57 = vpop.f32.mrf.mxu1 }
 0x4d2   :  { %v3379_v27 = vpop.f32.mrf.mxu1 }
 0x4d4   :  { %v3381_v38 = vpop.f32.mrf.mxu1 }
 0x4d6   :  { %v3383_v37 = vpop.f32.mrf.mxu1 }
 0x4d8   :  { %v3385_v47 = vpop.f32.mrf.mxu1 }
 0x4da   :  { %v3387_v10 = vpop.f32.mrf.mxu1 }
 0x4dc   :  { %v3389_v43 = vpop.f32.mrf.mxu1 }
 0x4de   :  { %v3391_v1 = vpop.f32.mrf.mxu1 }
 0x4e0   :  { %v3393_v48 = vpop.f32.mrf.mxu1 }
 0x4e2   :  { %v2350_v12 = vpop.f32.mrf.mxu1 }
 0x4e3   :  { %v1780_v41 = vadd.f32 %v2350_v12, %v1694_v32 }
 0x4e4   :  { %v1771_v42 = vpop.f32.mrf.mxu1 }
 0x4e5   :  { %v1772_v22 = vadd.f32 %v1771_v42, %v1690_v51  ;;  %v1836_v30 = vadd.f32 %v2318_v3, %v1780_v41 }
 0x4e6   :  { %v2351_v63 = vpop.f32.mrf.mxu1 }
 0x4e7   :  { %v1834_v31 = vadd.f32 %v1772_v22, %v1610_v21  ;;  %v1783_v55 = vadd.f32 %v2351_v63, %v1696_v36  ;;  %v1852_v33 = vmax.f32 %v1836_v30, 0.0 }
 0x4e8   :  { %v1774_v7 = vpop.f32.mrf.mxu1 }
 0x4e9   :  { %v1775_v61 = vadd.f32 %v1774_v7, %v1692_v28  ;;  %v1850_v52 = vmax.f32 %v1834_v31, 0.0  ;;  %v1837_v59 = vadd.f32 %v2319_v24, %v1783_v55  ;;  %v1869_v25 = vsel %vm116_vm0, %v1852_v33, 0.0 }
 0x4ea   :  { %v2354_v23 = vpop.f32.mrf.mxu1 }
 0x4eb   :  { %v1835_v54 = vadd.f32 %v1775_v61, %v1613_v26  ;;  %v1796_v46 = vadd.f32 %v2354_v23, %v1702_v16  ;;  %v1866_v44 = vsel %vm116_vm0, %v1850_v52, 0.0  ;;  %v1853_v8 = vmax.f32 %v1837_v59, 0.0  ;;  %v1714_v26 = vpop.permute.xlu0 %1713 }
 0x4ec   :  { %v1787_v53 = vpop.f32.mrf.mxu1 }
 0x4ed   :  { %v1851_v34 = vmax.f32 %v1835_v54, 0.0  ;;  %v1788_v62 = vadd.f32 %v1787_v53, %v1698_v2  ;;  %v1840_v5 = vadd.f32 %v2322_v4, %v1796_v46  ;;  %v1871_v40 = vsel %vm116_vm0, %v1853_v8, 0.0  ;;  %v1716_v4 = vpop.permute.xlu1 %1715 }
 0x4ee   :  { %v2355_v17 = vpop.f32.mrf.mxu1 }
 0x4ef   :  { %v1867_v9 = vsel %vm116_vm0, %v1851_v34, 0.0  ;;  %v1838_v0 = vadd.f32 %v1788_v62, %v1626_v11  ;;  %v1799_v35 = vadd.f32 %v2355_v17, %v1704_v29  ;;  %v1856_v11 = vmax.f32 %v1840_v5, 0.0  ;;  %v1718_v7 = vpop.permute.xlu0 %1717 }
 0x4f0   :  { %v1868_v58 = vadd.f32 %v1867_v9, %v1866_v44  ;;  %v1790_v60 = vpop.f32.mrf.mxu1 }
 0x4f1   :  { %v1854_v39 = vmax.f32 %v1838_v0, 0.0  ;;  %v1791_v13 = vadd.f32 %v1790_v60, %v1700_v19  ;;  %v1841_v49 = vadd.f32 %v2323_v6, %v1799_v35  ;;  %v1877_v41 = vsel %vm116_vm0, %v1856_v11, 0.0  ;;  %v1720_v59 = vpop.permute.xlu1 %1719 }
 0x4f2   :  { %v1870_v18 = vadd.f32 %v1869_v25, %v1868_v58  ;;  %v2358_v56 = vpop.f32.mrf.mxu1 }
 0x4f3   :  { %v1839_v50 = vadd.f32 %v1791_v13, %v1629_v57  ;;  %v1812_v21 = vadd.f32 %v2358_v56, %v1710_v20  ;;  %v1873_v51 = vsel %vm116_vm0, %v1854_v39, 0.0  ;;  %v1857_v12 = vmax.f32 %v1841_v49, 0.0 }
 0x4f4   :  { %v1872_v3 = vadd.f32 %v1871_v40, %v1870_v18  ;;  %v1803_v24 = vpop.f32.mrf.mxu1 }
 0x4f5   :  { %v1855_v32 = vmax.f32 %v1839_v50, 0.0  ;;  %v1804_v28 = vadd.f32 %v1803_v24, %v1706_v14  ;;  %v1844_v57 = vadd.f32 %v3379_v27, %v1812_v21  ;;  %v1879_v14 = vsel %vm116_vm0, %v1857_v12, 0.0 }
 0x4f6   :  { %v1874_v36 = vadd.f32 %v1873_v51, %v1872_v3  ;;  %v2359_v2 = vpop.f32.mrf.mxu1 }
 0x4f7   :  { %v1875_v19 = vsel %vm116_vm0, %v1855_v32, 0.0  ;;  %v1842_v16 = vadd.f32 %v1804_v28, %v3381_v38  ;;  %v1815_v42 = vadd.f32 %v2359_v2, %v1712_v15  ;;  %v1860_v52 = vmax.f32 %v1844_v57, 0.0 }
 0x4f8   :  { %v1876_v6 = vadd.f32 %v1875_v19, %v1874_v36  ;;  %v1806_v29 = vpop.f32.mrf.mxu1 }
 0x4f9   :  { %v1858_v22 = vmax.f32 %v1842_v16, 0.0  ;;  %v1807_v63 = vadd.f32 %v1806_v29, %v1708_v45  ;;  %v1845_v30 = vadd.f32 %v3383_v37, %v1815_v42 }
 0x4fa   :  { %v1878_v31 = vadd.f32 %v1877_v41, %v1876_v6  ;;  %v2362_v55 = vpop.f32.mrf.mxu1 }
 0x4fb   :  { %v1843_v61 = vadd.f32 %v1807_v63, %v3385_v47  ;;  %v1881_v27 = vsel %vm116_vm0, %v1858_v22, 0.0  ;;  %v1828_v53 = vadd.f32 %v2362_v55, %v1718_v7  ;;  %v1861_v46 = vmax.f32 %v1845_v30, 0.0 }
 0x4fc   :  { %v1880_v38 = vadd.f32 %v1879_v14, %v1878_v31  ;;  %v1819_v23 = vpop.f32.mrf.mxu1  ;;  %v1885_v47 = vsel %vm116_vm0, %v1860_v52, 0.0 }
 0x4fd   :  { %v1859_v54 = vmax.f32 %v1843_v61, 0.0  ;;  %v1820_v33 = vadd.f32 %v1819_v23, %v1714_v26  ;;  %v1848_v8 = vadd.f32 %v3387_v10, %v1828_v53  ;;  %v1887_v58 = vsel %vm116_vm0, %v1861_v46, 0.0 }
 0x4fe   :  { %v1882_v34 = vadd.f32 %v1881_v27, %v1880_v38  ;;  %v2363_v45 = vpop.f32.mrf.mxu1 }
 0x4ff   :  { %v1883_v62 = vsel %vm116_vm0, %v1859_v54, 0.0  ;;  %v1846_v44 = vadd.f32 %v1820_v33, %v3389_v43  ;;  %v1831_v17 = vadd.f32 %v2363_v45, %v1720_v59  ;;  %v1864_v5 = vmax.f32 %v1848_v8, 0.0 }
 0x500   :  { %v1884_v37 = vadd.f32 %v1883_v62, %v1882_v34  ;;  %v1822_v20 = vpop.f32.mrf.mxu1 }
 0x501   :  { %v1862_v9 = vmax.f32 %v1846_v44, 0.0  ;;  %v1823_v0 = vadd.f32 %v1822_v20, %v1716_v4  ;;  %v1849_v60 = vadd.f32 %v3391_v1, %v1831_v17  ;;  %v1893_v10 = vsel %vm116_vm0, %v1864_v5, 0.0 }
 0x502   :  { %v1886_v35 = vadd.f32 %v1885_v47, %v1884_v37 }
 0x503   :  { %v1847_v15 = vadd.f32 %v1823_v0, %v3393_v48  ;;  %v1889_v43 = vsel %vm116_vm0, %v1862_v9, 0.0  ;;  %v1865_v18 = vmax.f32 %v1849_v60, 0.0 }
 0x504   :  { %v1888_v25 = vadd.f32 %v1887_v58, %v1886_v35 }
 0x505   :  { %v1863_v39 = vmax.f32 %v1847_v15, 0.0  ;;  %v1895_v50 = vsel %vm116_vm0, %v1865_v18, 0.0 }
 0x506   :  { %v1890_v13 = vadd.f32 %v1889_v43, %v1888_v25 }
 0x507   :  { %v1891_v56 = vsel %vm116_vm0, %v1863_v39, 0.0 }
 0x508   :  { %v1892_v40 = vadd.f32 %v1891_v56, %v1890_v13 }
 0x50a   :  { %v1894_v49 = vadd.f32 %v1893_v10, %v1892_v40 }
 0x50c   :  { %v1896_v3 = vadd.f32 %v1895_v50, %v1894_v49 }
 0x50e   :  { %v1897_v21 = vrot.slane %v1896_v3, 4 }
 0x510   :  { %v1898_v1 = vadd.f32 %v1897_v21, %v1896_v3 }
 0x512   :  { %v1899_v24 = vrot.slane %v1898_v1, 2 }
 0x514   :  { %v1900_v48 = vadd.f32 %v1899_v24, %v1898_v1 }
 0x516   :  { %v1901_v26 = vrot.slane %v1900_v48, 1 }
 0x518   :  { %v1902_v11 = vadd.f32 %v1901_v26, %v1900_v48 }
 0x51a   :  { %v1903_v51 = vmul.f32 0.0078124995, %v1902_v11 }
 0x51c   :  { %1905 = vst.msk [vmem:[%s3435_s13] sm:$0x1] %vm1904_vm1, %v1903_v51 }

</bundles_post_ra>
